<compile_context>
chip_gen: v7x
topology: tpu7x:2x2x1
jax: 0.10.0
libtpu: 0.0.40
codegen_flags: <defaults>
</compile_context>

<pallas_src>
import functools
import math

import jax
import jax.numpy as jnp
from jax import lax
from jax.experimental import pallas as pl
from jax.experimental.pallas import tpu as pltpu


# ---------------------------------------------------------------------------
# In-kernel math helpers (traced inside the Pallas kernel body)
# ---------------------------------------------------------------------------

def _erf_poly(x):
    # Abramowitz & Stegun 7.1.26 polynomial erf (|err| < 1.5e-7); built only
    # from ops guaranteed to lower in Mosaic (exp / mul / add / div / select).
    a1, a2, a3, a4, a5 = (0.254829592, -0.284496736, 1.421413741,
                          -1.453152027, 1.061405429)
    p = 0.3275911
    z = jnp.abs(x)
    t = 1.0 / (1.0 + p * z)
    poly = ((((a5 * t + a4) * t + a3) * t + a2) * t + a1) * t
    r = 1.0 - poly * jnp.exp(-z * z)
    return jnp.where(x >= 0.0, r, -r)


def _gelu_exact(x):
    # Matches torch.nn.GELU() default (erf-based, not tanh approximation).
    return 0.5 * x * (1.0 + _erf_poly(x * (1.0 / math.sqrt(2.0))))


def _layernorm(z, g, b, eps):
    mu = jnp.mean(z, axis=-1, keepdims=True)
    zc = z - mu
    var = jnp.mean(zc * zc, axis=-1, keepdims=True)
    return zc * lax.rsqrt(var + eps) * g + b


def _cplx_matmul(ar, ai, wr, wi):
    # Gauss 3-matmul complex product with bf16 MXU operands, f32 accumulate:
    #   yr = t1 - t2,  yi = t3 - t1 - t2
    ar_b = ar.astype(jnp.bfloat16)
    ai_b = ai.astype(jnp.bfloat16)
    as_b = (ar + ai).astype(jnp.bfloat16)
    wr_b = wr.astype(jnp.bfloat16)
    wi_b = wi.astype(jnp.bfloat16)
    ws_b = (wr + wi).astype(jnp.bfloat16)
    t1 = jnp.dot(ar_b, wr_b, preferred_element_type=jnp.float32)
    t2 = jnp.dot(ai_b, wi_b, preferred_element_type=jnp.float32)
    t3 = jnp.dot(as_b, ws_b, preferred_element_type=jnp.float32)
    return t1 - t2, t3 - t1 - t2


# ---------------------------------------------------------------------------
# Fused per-layer kernel: rotary + QKV + attention + O-proj + LN1 + FFN + LN2
# (+ optional head projection on the last time step, for the final layer).
# ---------------------------------------------------------------------------

def _qilm_block_kernel(
        xr_ref, xi_ref, cos_ref, sin_ref,
        wqkv_r_ref, wqkv_i_ref, bqkv_re_ref, bqkv_im_ref,
        wo_r_ref, wo_i_ref, bo_re_ref, bo_im_ref,
        ln1_gr_ref, ln1_br_ref, ln1_gi_ref, ln1_bi_ref,
        w1_r_ref, w1_i_ref, bf1_re_ref, bf1_im_ref,
        w2_r_ref, w2_i_ref, bf2_re_ref, bf2_im_ref,
        ln2_gr_ref, ln2_br_ref, ln2_gi_ref, ln2_bi_ref,
        *rest, num_heads, scale, eps, has_head):
    """One full QILM transformer block for one batch row (grid=(B,))."""
    if has_head:
        (hw_r_ref, hw_i_ref, hb_re_ref, hb_im_ref,
         yr_ref, yi_ref, lg_r_ref, lg_i_ref) = rest
    else:
        yr_ref, yi_ref = rest

    T = xr_ref.shape[1]
    D = xr_ref.shape[2]
    d = D // num_heads

    xr = xr_ref[0]            # (T, D)
    xi = xi_ref[0]
    c = cos_ref[...]          # (T, D); pass-through half has cos=1 / sin=0
    s = sin_ref[...]

    # --- rotary positional embedding (VPU work, hides under the QKV matmul) --
    rr = xr * c - xi * s
    ri = xr * s + xi * c

    # --- fused complex QKV projection: (T, D) @ (D, 3D) ---
    qkv_r, qkv_i = _cplx_matmul(rr, ri, wqkv_r_ref[...], wqkv_i_ref[...])
    qkv_r = qkv_r + bqkv_re_ref[...]
    qkv_i = qkv_i + bqkv_im_ref[...]

    # Fold 1/sqrt(d) into q (scales T*D values instead of the T*T scores).
    q_r = qkv_r[:, 0 * D:1 * D] * scale
    q_i = qkv_i[:, 0 * D:1 * D] * scale
    k_r = qkv_r[:, 1 * D:2 * D]
    k_i = qkv_i[:, 1 * D:2 * D]
    v_r = qkv_r[:, 2 * D:3 * D]
    v_i = qkv_i[:, 2 * D:3 * D]

    # --- per-head attention, heads iterated with static lane slices ---
    dn = (((1,), (1,)), ((), ()))   # contract head dim: (T,d)x(T,d)->(T,T)
    heads_r = []
    heads_i = []
    for h in range(num_heads):
        sl = slice(h * d, (h + 1) * d)
        qhr = q_r[:, sl].astype(jnp.bfloat16)
        qhi = q_i[:, sl].astype(jnp.bfloat16)
        khr = k_r[:, sl].astype(jnp.bfloat16)
        khi = k_i[:, sl].astype(jnp.bfloat16)
        # Re(q @ conj(k)^T) = qr @ kr^T + qi @ ki^T
        scores = (lax.dot_general(qhr, khr, dn,
                                  preferred_element_type=jnp.float32)
                  + lax.dot_general(qhi, khi, dn,
                                    preferred_element_type=jnp.float32))
        m = jnp.max(scores, axis=-1, keepdims=True)
        e = jnp.exp(scores - m)
        probs = e * pl.reciprocal(jnp.sum(e, axis=-1, keepdims=True),
                                  approx=True)
        probs_b = probs.astype(jnp.bfloat16)
        heads_r.append(jnp.dot(probs_b, v_r[:, sl].astype(jnp.bfloat16),
                               preferred_element_type=jnp.float32))
        heads_i.append(jnp.dot(probs_b, v_i[:, sl].astype(jnp.bfloat16),
                               preferred_element_type=jnp.float32))
    attn_r = jnp.concatenate(heads_r, axis=-1)    # lane-dense (T, D)
    attn_i = jnp.concatenate(heads_i, axis=-1)

    # --- output projection + residual + LayerNorm1 ---
    ao_r, ao_i = _cplx_matmul(attn_r, attn_i, wo_r_ref[...], wo_i_ref[...])
    ao_r = ao_r + bo_re_ref[...]
    ao_i = ao_i + bo_im_ref[...]
    h1r = _layernorm(rr + ao_r, ln1_gr_ref[...], ln1_br_ref[...], eps)
    h1i = _layernorm(ri + ao_i, ln1_gi_ref[...], ln1_bi_ref[...], eps)

    # --- FF1 -> GELU(real) -> FF2 -> residual -> LayerNorm2 ---
    f1r, f1i = _cplx_matmul(h1r, h1i, w1_r_ref[...], w1_i_ref[...])
    f1r = _gelu_exact(f1r + bf1_re_ref[...])
    f1i = f1i + bf1_im_ref[...]
    f2r, f2i = _cplx_matmul(f1r, f1i, w2_r_ref[...], w2_i_ref[...])
    f2r = f2r + bf2_re_ref[...]
    f2i = f2i + bf2_im_ref[...]
    yr = _layernorm(h1r + f2r, ln2_gr_ref[...], ln2_br_ref[...], eps)
    yi = _layernorm(h1i + f2i, ln2_gi_ref[...], ln2_bi_ref[...], eps)
    yr_ref[0] = yr
    yi_ref[0] = yi

    # --- last layer only: fused head projection on the final time step ---
    if has_head:
        last_r = yr[T - 1:T, :]          # (1, D)
        last_i = yi[T - 1:T, :]
        hd_r, hd_i = _cplx_matmul(last_r, last_i, hw_r_ref[...], hw_i_ref[...])
        lg_r_ref[0] = hd_r + hb_re_ref[...]
        lg_i_ref[0] = hd_i + hb_im_ref[...]


# ---------------------------------------------------------------------------
# Pallas wrapper: one pallas_call per layer
# ---------------------------------------------------------------------------

def _comb_bias(p):
    # PyTorch ComplexLinear applies each nn.Linear's bias inside the matmul
    # terms: real-out bias = br - bi, imag-out bias = br + bi.
    return ((p['br'] - p['bi']).reshape(1, -1),
            (p['br'] + p['bi']).reshape(1, -1))


def qilm_block_pallas(xr, xi, cos_f, sin_f, lp, *, num_heads,
                      head_params=None, eps=1e-5):
    B, T, D = xr.shape
    d = D // num_heads
    has_head = head_params is not None

    def row(a):
        return a.reshape(1, -1)

    # Fused QKV weights/biases: one (D, 3D) complex matmul instead of three.
    wqkv_r = jnp.concatenate(
        [lp['q']['wr'], lp['k']['wr'], lp['v']['wr']], axis=1)
    wqkv_i = jnp.concatenate(
        [lp['q']['wi'], lp['k']['wi'], lp['v']['wi']], axis=1)
    bq = _comb_bias(lp['q'])
    bk = _comb_bias(lp['k'])
    bv = _comb_bias(lp['v'])
    bqkv_re = jnp.concatenate([bq[0], bk[0], bv[0]], axis=1)
    bqkv_im = jnp.concatenate([bq[1], bk[1], bv[1]], axis=1)
    bo_re, bo_im = _comb_bias(lp['o'])
    bf1_re, bf1_im = _comb_bias(lp['ff1'])
    bf2_re, bf2_im = _comb_bias(lp['ff2'])
    n1, n2 = lp['norm1'], lp['norm2']

    inputs = [
        xr, xi, cos_f, sin_f,
        wqkv_r, wqkv_i, bqkv_re, bqkv_im,
        lp['o']['wr'], lp['o']['wi'], bo_re, bo_im,
        row(n1['gr']), row(n1['br']), row(n1['gi']), row(n1['bi']),
        lp['ff1']['wr'], lp['ff1']['wi'], bf1_re, bf1_im,
        lp['ff2']['wr'], lp['ff2']['wi'], bf2_re, bf2_im,
        row(n2['gr']), row(n2['br']), row(n2['gi']), row(n2['bi']),
    ]

    def const_spec(a):
        n = a.ndim
        return pl.BlockSpec(a.shape, lambda b: (0,) * n)

    batched = pl.BlockSpec((1, T, D), lambda b: (b, 0, 0))
    in_specs = [batched, batched] + [const_spec(a) for a in inputs[2:]]

    out_shape = [jax.ShapeDtypeStruct((B, T, D), jnp.float32)] * 2
    out_specs = [batched, batched]

    if has_head:
        VH = head_params['wr'].shape[1]
        hb_re, hb_im = _comb_bias(head_params)
        head_inputs = [head_params['wr'], head_params['wi'], hb_re, hb_im]
        inputs += head_inputs
        in_specs += [const_spec(a) for a in head_inputs]
        out_shape += [jax.ShapeDtypeStruct((B, 1, VH), jnp.float32)] * 2
        out_specs += [pl.BlockSpec((1, 1, VH), lambda b: (b, 0, 0))] * 2

    kernel = functools.partial(
        _qilm_block_kernel, num_heads=num_heads, scale=1.0 / math.sqrt(d),
        eps=eps, has_head=has_head)

    return pl.pallas_call(
        kernel,
        out_shape=tuple(out_shape),
        grid=(B,),
        in_specs=in_specs,
        out_specs=tuple(out_specs),
        compiler_params=pltpu.CompilerParams(
            dimension_semantics=("parallel",)),
    )(*inputs)


def qilm_forward_pallas(x, params, *, num_heads, vocab_size, horizon):
    B, T, D = x.shape

    # Split once into float32 planes; everything downstream stays split.
    xr = jnp.real(x).astype(jnp.float32)
    xi = jnp.imag(x).astype(jnp.float32)

    # Rotary tables widened to full D: first half rotates, second half is
    # identity (cos=1, sin=0) -> dense elementwise rotation, no slicing.
    half = D // 2
    pos = jnp.arange(T, dtype=jnp.float32)[:, None]
    freqs = jnp.exp(-math.log(10000.0)
                    * jnp.arange(half, dtype=jnp.float32) / half)
    ang = pos * freqs
    cos_f = jnp.concatenate(
        [jnp.cos(ang), jnp.ones((T, D - half), jnp.float32)], axis=-1)
    sin_f = jnp.concatenate(
        [jnp.sin(ang), jnp.zeros((T, D - half), jnp.float32)], axis=-1)

    layers = params['layers']
    logits_r = logits_i = None
    for idx, lp in enumerate(layers):
        is_last = idx == len(layers) - 1
        outs = qilm_block_pallas(
            xr, xi, cos_f, sin_f, lp, num_heads=num_heads,
            head_params=params['head'] if is_last else None)
        if is_last:
            xr, xi, logits_r, logits_i = outs
        else:
            xr, xi = outs

    logits = jax.lax.complex(logits_r, logits_i)     # (B, 1, vocab*horizon)
    return logits.reshape(-1, horizon, vocab_size)


# ---------------------------------------------------------------------------
# Pure-JAX reference (mirrors the PyTorch module exactly, f32 math)
# ---------------------------------------------------------------------------

def _ref_complex_linear(x, p):
    xr, xi = jnp.real(x), jnp.imag(x)
    real = (xr @ p['wr'] + p['br']) - (xi @ p['wi'] + p['bi'])
    imag = (xi @ p['wr'] + p['br']) + (xr @ p['wi'] + p['bi'])
    return jax.lax.complex(real, imag)


def _ref_ln(x, g, b, eps=1e-5):
    mu = jnp.mean(x, axis=-1, keepdims=True)
    var = jnp.mean((x - mu) ** 2, axis=-1, keepdims=True)
    return (x - mu) / jnp.sqrt(var + eps) * g + b


def _ref_complex_ln(x, p, eps=1e-5):
    return jax.lax.complex(_ref_ln(jnp.real(x), p['gr'], p['br'], eps),
                           _ref_ln(jnp.imag(x), p['gi'], p['bi'], eps))


def _ref_rotary(x):
    B, T, D = x.shape
    half = D // 2
    xr, xi = jnp.real(x), jnp.imag(x)
    pos = jnp.arange(T, dtype=jnp.float32)[:, None]
    freqs = jnp.exp(-math.log(10000.0)
                    * jnp.arange(half, dtype=jnp.float32) / half)
    ang = pos * freqs
    cos, sin = jnp.cos(ang)[None], jnp.sin(ang)[None]
    x1r, x2r = xr[:, :, :half], xr[:, :, half:]
    x1i, x2i = xi[:, :, :half], xi[:, :, half:]
    real = jnp.concatenate([x1r * cos - x1i * sin, x2r], axis=-1)
    imag = jnp.concatenate([x1r * sin + x1i * cos, x2i], axis=-1)
    return jax.lax.complex(real, imag)


def _ref_attention(x, lp, num_heads):
    B, T, D = x.shape
    H = num_heads
    d = D // H
    q = _ref_complex_linear(x, lp['q']).reshape(B, T, H, d).transpose(0, 2, 1, 3)
    k = _ref_complex_linear(x, lp['k']).reshape(B, T, H, d).transpose(0, 2, 1, 3)
    v = _ref_complex_linear(x, lp['v']).reshape(B, T, H, d).transpose(0, 2, 1, 3)
    scores = jnp.real(jnp.einsum('bhid,bhjd->bhij', q, jnp.conj(k))) / math.sqrt(d)
    probs = jax.nn.softmax(scores, axis=-1).astype(v.dtype)
    out = jnp.einsum('bhij,bhjd->bhid', probs, v)
    out = out.transpose(0, 2, 1, 3).reshape(B, T, D)
    return _ref_complex_linear(out, lp['o'])


def qilm_forward_ref(x, params, *, num_heads, vocab_size, horizon):
    for lp in params['layers']:
        x_rot = _ref_rotary(x)
        attn = _ref_attention(x_rot, lp, num_heads)
        x1 = _ref_complex_ln(x_rot + attn, lp['norm1'])
        mid = _ref_complex_linear(x1, lp['ff1'])
        mr = jnp.real(mid)
        gr = 0.5 * mr * (1.0 + lax.erf(mr / math.sqrt(2.0)))   # exact GELU
        act = jax.lax.complex(gr, jnp.imag(mid))
        ff = _ref_complex_linear(act, lp['ff2'])
        x = _ref_complex_ln(x1 + ff, lp['norm2'])
    logits = _ref_complex_linear(x[:, -1, :], params['head'])
    return logits.reshape(-1, horizon, vocab_size)


# ---------------------------------------------------------------------------
# Parameter construction
# ---------------------------------------------------------------------------

def init_params(key, vocab_size, embed_dim, num_heads, ff_dim, num_layers,
                horizon):
    def linear_params(k, fan_in, fan_out):
        k1, k2, k3, k4 = jax.random.split(k, 4)
        s = 1.0 / math.sqrt(fan_in)
        return dict(
            wr=jax.random.uniform(k1, (fan_in, fan_out), jnp.float32, -s, s),
            wi=jax.random.uniform(k2, (fan_in, fan_out), jnp.float32, -s, s),
            br=jax.random.uniform(k3, (fan_out,), jnp.float32, -s, s),
            bi=jax.random.uniform(k4, (fan_out,), jnp.float32, -s, s),
        )

    def ln_params(k, dim):
        k1, k2, k3, k4 = jax.random.split(k, 4)
        return dict(
            gr=1.0 + 0.1 * jax.random.normal(k1, (dim,), jnp.float32),
            br=0.1 * jax.random.normal(k2, (dim,), jnp.float32),
            gi=1.0 + 0.1 * jax.random.normal(k3, (dim,), jnp.float32),
            bi=0.1 * jax.random.normal(k4, (dim,), jnp.float32),
        )

    layers = []
    for _ in range(num_layers):
        key, *ks = jax.random.split(key, 9)
        layers.append(dict(
            q=linear_params(ks[0], embed_dim, embed_dim),
            k=linear_params(ks[1], embed_dim, embed_dim),
            v=linear_params(ks[2], embed_dim, embed_dim),
            o=linear_params(ks[3], embed_dim, embed_dim),
            norm1=ln_params(ks[4], embed_dim),
            ff1=linear_params(ks[5], embed_dim, ff_dim),
            ff2=linear_params(ks[6], ff_dim, embed_dim),
            norm2=ln_params(ks[7], embed_dim),
        ))
    key, khead = jax.random.split(key)
    head = linear_params(khead, embed_dim, vocab_size * horizon)
    return dict(layers=layers, head=head)


# ---------------------------------------------------------------------------
# Demo / self-check
# ---------------------------------------------------------------------------

if __name__ == "__main__":
    vocab_size = 16
    embed_dim = 32
    num_heads = 4
    ff_dim = 64
    num_layers = 2
    horizon = 2
    B, T = 2, 8

    key = jax.random.PRNGKey(0)
    kp, k_re, k_im = jax.random.split(key, 3)
    params = init_params(kp, vocab_size, embed_dim, num_heads, ff_dim,
                         num_layers, horizon)
    x = jax.lax.complex(
        jax.random.normal(k_re, (B, T, embed_dim), jnp.float32),
        jax.random.normal(k_im, (B, T, embed_dim), jnp.float32))

    fwd = jax.jit(functools.partial(
        qilm_forward_pallas, num_heads=num_heads, vocab_size=vocab_size,
        horizon=horizon))
    out = jax.block_until_ready(fwd(x, params))

    # High-precision pure-JAX reference of the same math.
    with jax.default_matmul_precision("highest"):
        ref = qilm_forward_ref(x, params, num_heads=num_heads,
                               vocab_size=vocab_size, horizon=horizon)
    ref = jax.block_until_ready(ref)

    assert out.shape == (B, horizon, vocab_size)
    assert out.dtype == jnp.complex64
    # Relative Frobenius error budget: bf16 MXU operands (per perf review)
    # compound to a few percent across 2 layers vs the f32 reference.
    num = float(jnp.sqrt(jnp.sum(jnp.abs(out - ref) ** 2)))
    den = float(jnp.sqrt(jnp.sum(jnp.abs(ref) ** 2)))
    rel = num / max(den, 1e-6)
    assert math.isfinite(rel) and rel < 0.1, f"relative error {rel}"

    print("KERNEL_OK")
</pallas_src>

<mosaic_0001>
module attributes {stable_mosaic.version = 11 : i64} {
  func.func @_qilm_block_kernel(%arg0: i32, %arg1: memref<1x8x32xf32, #tpu.memory_space<vmem>>, %arg2: memref<1x8x32xf32, #tpu.memory_space<vmem>>, %arg3: memref<8x32xf32, #tpu.memory_space<vmem>>, %arg4: memref<8x32xf32, #tpu.memory_space<vmem>>, %arg5: memref<32x96xf32, #tpu.memory_space<vmem>>, %arg6: memref<32x96xf32, #tpu.memory_space<vmem>>, %arg7: memref<1x96xf32, #tpu.memory_space<vmem>>, %arg8: memref<1x96xf32, #tpu.memory_space<vmem>>, %arg9: memref<32x32xf32, #tpu.memory_space<vmem>>, %arg10: memref<32x32xf32, #tpu.memory_space<vmem>>, %arg11: memref<1x32xf32, #tpu.memory_space<vmem>>, %arg12: memref<1x32xf32, #tpu.memory_space<vmem>>, %arg13: memref<1x32xf32, #tpu.memory_space<vmem>>, %arg14: memref<1x32xf32, #tpu.memory_space<vmem>>, %arg15: memref<1x32xf32, #tpu.memory_space<vmem>>, %arg16: memref<1x32xf32, #tpu.memory_space<vmem>>, %arg17: memref<32x64xf32, #tpu.memory_space<vmem>>, %arg18: memref<32x64xf32, #tpu.memory_space<vmem>>, %arg19: memref<1x64xf32, #tpu.memory_space<vmem>>, %arg20: memref<1x64xf32, #tpu.memory_space<vmem>>, %arg21: memref<64x32xf32, #tpu.memory_space<vmem>>, %arg22: memref<64x32xf32, #tpu.memory_space<vmem>>, %arg23: memref<1x32xf32, #tpu.memory_space<vmem>>, %arg24: memref<1x32xf32, #tpu.memory_space<vmem>>, %arg25: memref<1x32xf32, #tpu.memory_space<vmem>>, %arg26: memref<1x32xf32, #tpu.memory_space<vmem>>, %arg27: memref<1x32xf32, #tpu.memory_space<vmem>>, %arg28: memref<1x32xf32, #tpu.memory_space<vmem>>, %arg29: memref<1x8x32xf32, #tpu.memory_space<vmem>>, %arg30: memref<1x8x32xf32, #tpu.memory_space<vmem>>) attributes {dimension_semantics = [#tpu.dimension_semantics<parallel>], iteration_bounds = array<i64: 2>, scalar_prefetch = 0 : i64, scratch_operands = 0 : i64, tpu.core_type = #tpu.core_type<tc>, window_params = [{transform_indices = @transform_0, window_bounds = array<i64: 1, 8, 32>}, {transform_indices = @transform_1, window_bounds = array<i64: 1, 8, 32>}, {pipeline_mode = #tpu.pipeline_mode<synchronous>, transform_indices = @transform_2, window_bounds = array<i64: 8, 32>}, {pipeline_mode = #tpu.pipeline_mode<synchronous>, transform_indices = @transform_3, window_bounds = array<i64: 8, 32>}, {pipeline_mode = #tpu.pipeline_mode<synchronous>, transform_indices = @transform_4, window_bounds = array<i64: 32, 96>}, {pipeline_mode = #tpu.pipeline_mode<synchronous>, transform_indices = @transform_5, window_bounds = array<i64: 32, 96>}, {pipeline_mode = #tpu.pipeline_mode<synchronous>, transform_indices = @transform_6, window_bounds = array<i64: 1, 96>}, {pipeline_mode = #tpu.pipeline_mode<synchronous>, transform_indices = @transform_7, window_bounds = array<i64: 1, 96>}, {pipeline_mode = #tpu.pipeline_mode<synchronous>, transform_indices = @transform_8, window_bounds = array<i64: 32, 32>}, {pipeline_mode = #tpu.pipeline_mode<synchronous>, transform_indices = @transform_9, window_bounds = array<i64: 32, 32>}, {pipeline_mode = #tpu.pipeline_mode<synchronous>, transform_indices = @transform_10, window_bounds = array<i64: 1, 32>}, {pipeline_mode = #tpu.pipeline_mode<synchronous>, transform_indices = @transform_11, window_bounds = array<i64: 1, 32>}, {pipeline_mode = #tpu.pipeline_mode<synchronous>, transform_indices = @transform_12, window_bounds = array<i64: 1, 32>}, {pipeline_mode = #tpu.pipeline_mode<synchronous>, transform_indices = @transform_13, window_bounds = array<i64: 1, 32>}, {pipeline_mode = #tpu.pipeline_mode<synchronous>, transform_indices = @transform_14, window_bounds = array<i64: 1, 32>}, {pipeline_mode = #tpu.pipeline_mode<synchronous>, transform_indices = @transform_15, window_bounds = array<i64: 1, 32>}, {pipeline_mode = #tpu.pipeline_mode<synchronous>, transform_indices = @transform_16, window_bounds = array<i64: 32, 64>}, {pipeline_mode = #tpu.pipeline_mode<synchronous>, transform_indices = @transform_17, window_bounds = array<i64: 32, 64>}, {pipeline_mode = #tpu.pipeline_mode<synchronous>, transform_indices = @transform_18, window_bounds = array<i64: 1, 64>}, {pipeline_mode = #tpu.pipeline_mode<synchronous>, transform_indices = @transform_19, window_bounds = array<i64: 1, 64>}, {pipeline_mode = #tpu.pipeline_mode<synchronous>, transform_indices = @transform_20, window_bounds = array<i64: 64, 32>}, {pipeline_mode = #tpu.pipeline_mode<synchronous>, transform_indices = @transform_21, window_bounds = array<i64: 64, 32>}, {pipeline_mode = #tpu.pipeline_mode<synchronous>, transform_indices = @transform_22, window_bounds = array<i64: 1, 32>}, {pipeline_mode = #tpu.pipeline_mode<synchronous>, transform_indices = @transform_23, window_bounds = array<i64: 1, 32>}, {pipeline_mode = #tpu.pipeline_mode<synchronous>, transform_indices = @transform_24, window_bounds = array<i64: 1, 32>}, {pipeline_mode = #tpu.pipeline_mode<synchronous>, transform_indices = @transform_25, window_bounds = array<i64: 1, 32>}, {pipeline_mode = #tpu.pipeline_mode<synchronous>, transform_indices = @transform_26, window_bounds = array<i64: 1, 32>}, {pipeline_mode = #tpu.pipeline_mode<synchronous>, transform_indices = @transform_27, window_bounds = array<i64: 1, 32>}, {transform_indices = @transform_28, window_bounds = array<i64: 1, 8, 32>}, {transform_indices = @transform_29, window_bounds = array<i64: 1, 8, 32>}]} {
    %c0 = arith.constant 0 : index
    %c0_0 = arith.constant 0 : index
    %c0_1 = arith.constant 0 : index
    %0 = vector.load %arg1[%c0, %c0_0, %c0_1] : memref<1x8x32xf32, #tpu.memory_space<vmem>>, vector<1x8x32xf32>
    %1 = vector.shape_cast %0 : vector<1x8x32xf32> to vector<8x32xf32>
    %c0_2 = arith.constant 0 : index
    %c0_3 = arith.constant 0 : index
    %c0_4 = arith.constant 0 : index
    %2 = vector.load %arg2[%c0_2, %c0_3, %c0_4] : memref<1x8x32xf32, #tpu.memory_space<vmem>>, vector<1x8x32xf32>
    %3 = vector.shape_cast %2 : vector<1x8x32xf32> to vector<8x32xf32>
    %c0_5 = arith.constant 0 : index
    %c0_6 = arith.constant 0 : index
    %4 = vector.load %arg3[%c0_5, %c0_6] : memref<8x32xf32, #tpu.memory_space<vmem>>, vector<8x32xf32>
    %c0_7 = arith.constant 0 : index
    %c0_8 = arith.constant 0 : index
    %5 = vector.load %arg4[%c0_7, %c0_8] : memref<8x32xf32, #tpu.memory_space<vmem>>, vector<8x32xf32>
    %6 = arith.mulf %1, %4 : vector<8x32xf32>
    %7 = arith.mulf %3, %5 : vector<8x32xf32>
    %8 = arith.subf %6, %7 : vector<8x32xf32>
    %9 = arith.mulf %1, %5 : vector<8x32xf32>
    %10 = arith.mulf %3, %4 : vector<8x32xf32>
    %11 = arith.addf %9, %10 : vector<8x32xf32>
    %c0_9 = arith.constant 0 : index
    %c0_10 = arith.constant 0 : index
    %12 = vector.load %arg5[%c0_9, %c0_10] : memref<32x96xf32, #tpu.memory_space<vmem>>, vector<32x96xf32>
    %c0_11 = arith.constant 0 : index
    %c0_12 = arith.constant 0 : index
    %13 = vector.load %arg6[%c0_11, %c0_12] : memref<32x96xf32, #tpu.memory_space<vmem>>, vector<32x96xf32>
    %14 = arith.truncf %8 : vector<8x32xf32> to vector<8x32xbf16>
    %15 = arith.truncf %11 : vector<8x32xf32> to vector<8x32xbf16>
    %16 = arith.addf %8, %11 : vector<8x32xf32>
    %17 = arith.truncf %16 : vector<8x32xf32> to vector<8x32xbf16>
    %18 = arith.truncf %12 : vector<32x96xf32> to vector<32x96xbf16>
    %19 = arith.truncf %13 : vector<32x96xf32> to vector<32x96xbf16>
    %20 = arith.addf %12, %13 : vector<32x96xf32>
    %21 = arith.truncf %20 : vector<32x96xf32> to vector<32x96xbf16>
    %cst = arith.constant dense<0.000000e+00> : vector<8x96xf32>
    %22 = tpu.matmul %14, %18, %cst {dimension_numbers = #tpu.dot_dimension_numbers<[1], [0], [0], [1], [0, 0, 1, 1], [], []>} : vector<8x32xbf16>, vector<32x96xbf16>, vector<8x96xf32> -> vector<8x96xf32>
    %cst_13 = arith.constant dense<0.000000e+00> : vector<8x96xf32>
    %23 = tpu.matmul %15, %19, %cst_13 {dimension_numbers = #tpu.dot_dimension_numbers<[1], [0], [0], [1], [0, 0, 1, 1], [], []>} : vector<8x32xbf16>, vector<32x96xbf16>, vector<8x96xf32> -> vector<8x96xf32>
    %cst_14 = arith.constant dense<0.000000e+00> : vector<8x96xf32>
    %24 = tpu.matmul %17, %21, %cst_14 {dimension_numbers = #tpu.dot_dimension_numbers<[1], [0], [0], [1], [0, 0, 1, 1], [], []>} : vector<8x32xbf16>, vector<32x96xbf16>, vector<8x96xf32> -> vector<8x96xf32>
    %25 = arith.subf %22, %23 : vector<8x96xf32>
    %26 = arith.subf %24, %22 : vector<8x96xf32>
    %27 = arith.subf %26, %23 : vector<8x96xf32>
    %c0_15 = arith.constant 0 : index
    %c0_16 = arith.constant 0 : index
    %28 = vector.load %arg7[%c0_15, %c0_16] : memref<1x96xf32, #tpu.memory_space<vmem>>, vector<1x96xf32>
    %29 = vector.broadcast %28 : vector<1x96xf32> to vector<8x96xf32>
    %30 = arith.addf %25, %29 : vector<8x96xf32>
    %c0_17 = arith.constant 0 : index
    %c0_18 = arith.constant 0 : index
    %31 = vector.load %arg8[%c0_17, %c0_18] : memref<1x96xf32, #tpu.memory_space<vmem>>, vector<1x96xf32>
    %32 = vector.broadcast %31 : vector<1x96xf32> to vector<8x96xf32>
    %33 = arith.addf %27, %32 : vector<8x96xf32>
    %34 = vector.extract_strided_slice %30 {offsets = [0, 0], sizes = [8, 32], strides = [1, 1]} : vector<8x96xf32> to vector<8x32xf32>
    %cst_19 = arith.constant 0.353553385 : f32
    %35 = vector.broadcast %cst_19 : f32 to vector<8x32xf32>
    %36 = arith.mulf %34, %35 : vector<8x32xf32>
    %37 = vector.extract_strided_slice %33 {offsets = [0, 0], sizes = [8, 32], strides = [1, 1]} : vector<8x96xf32> to vector<8x32xf32>
    %cst_20 = arith.constant 0.353553385 : f32
    %38 = vector.broadcast %cst_20 : f32 to vector<8x32xf32>
    %39 = arith.mulf %37, %38 : vector<8x32xf32>
    %40 = vector.extract_strided_slice %30 {offsets = [0, 32], sizes = [8, 32], strides = [1, 1]} : vector<8x96xf32> to vector<8x32xf32>
    %41 = vector.extract_strided_slice %33 {offsets = [0, 32], sizes = [8, 32], strides = [1, 1]} : vector<8x96xf32> to vector<8x32xf32>
    %42 = vector.extract_strided_slice %30 {offsets = [0, 64], sizes = [8, 32], strides = [1, 1]} : vector<8x96xf32> to vector<8x32xf32>
    %43 = vector.extract_strided_slice %33 {offsets = [0, 64], sizes = [8, 32], strides = [1, 1]} : vector<8x96xf32> to vector<8x32xf32>
    %44 = vector.extract_strided_slice %36 {offsets = [0, 0], sizes = [8, 8], strides = [1, 1]} : vector<8x32xf32> to vector<8x8xf32>
    %45 = arith.truncf %44 : vector<8x8xf32> to vector<8x8xbf16>
    %46 = vector.extract_strided_slice %39 {offsets = [0, 0], sizes = [8, 8], strides = [1, 1]} : vector<8x32xf32> to vector<8x8xf32>
    %47 = arith.truncf %46 : vector<8x8xf32> to vector<8x8xbf16>
    %48 = vector.extract_strided_slice %40 {offsets = [0, 0], sizes = [8, 8], strides = [1, 1]} : vector<8x32xf32> to vector<8x8xf32>
    %49 = arith.truncf %48 : vector<8x8xf32> to vector<8x8xbf16>
    %50 = vector.extract_strided_slice %41 {offsets = [0, 0], sizes = [8, 8], strides = [1, 1]} : vector<8x32xf32> to vector<8x8xf32>
    %51 = arith.truncf %50 : vector<8x8xf32> to vector<8x8xbf16>
    %cst_21 = arith.constant dense<0.000000e+00> : vector<8x8xf32>
    %52 = tpu.matmul %45, %49, %cst_21 {dimension_numbers = #tpu.dot_dimension_numbers<[1], [1], [0], [0], [0, 0, 1, 0], [], []>} : vector<8x8xbf16>, vector<8x8xbf16>, vector<8x8xf32> -> vector<8x8xf32>
    %cst_22 = arith.constant dense<0.000000e+00> : vector<8x8xf32>
    %53 = tpu.matmul %47, %51, %cst_22 {dimension_numbers = #tpu.dot_dimension_numbers<[1], [1], [0], [0], [0, 0, 1, 0], [], []>} : vector<8x8xbf16>, vector<8x8xbf16>, vector<8x8xf32> -> vector<8x8xf32>
    %54 = arith.addf %52, %53 : vector<8x8xf32>
    %cst_23 = arith.constant dense<0xFF800000> : vector<8xf32>
    %55 = vector.multi_reduction <maximumf>, %54, %cst_23 [1] : vector<8x8xf32> to vector<8xf32>
    %56 = vector.shape_cast %55 : vector<8xf32> to vector<8x1xf32>
    %57 = vector.broadcast %56 : vector<8x1xf32> to vector<8x8xf32>
    %58 = arith.subf %54, %57 : vector<8x8xf32>
    %59 = math.exp %58 : vector<8x8xf32>
    %cst_24 = arith.constant dense<0.000000e+00> : vector<8xf32>
    %60 = vector.multi_reduction <add>, %59, %cst_24 [1] : vector<8x8xf32> to vector<8xf32>
    %61 = vector.shape_cast %60 : vector<8xf32> to vector<8x1xf32>
    %62 = tpu.reciprocal %61 {approx = true} : vector<8x1xf32> -> vector<8x1xf32>
    %63 = vector.broadcast %62 : vector<8x1xf32> to vector<8x8xf32>
    %64 = arith.mulf %59, %63 : vector<8x8xf32>
    %65 = arith.truncf %64 : vector<8x8xf32> to vector<8x8xbf16>
    %66 = vector.extract_strided_slice %42 {offsets = [0, 0], sizes = [8, 8], strides = [1, 1]} : vector<8x32xf32> to vector<8x8xf32>
    %67 = arith.truncf %66 : vector<8x8xf32> to vector<8x8xbf16>
    %cst_25 = arith.constant dense<0.000000e+00> : vector<8x8xf32>
    %68 = tpu.matmul %65, %67, %cst_25 {dimension_numbers = #tpu.dot_dimension_numbers<[1], [0], [0], [1], [0, 0, 1, 1], [], []>} : vector<8x8xbf16>, vector<8x8xbf16>, vector<8x8xf32> -> vector<8x8xf32>
    %69 = vector.extract_strided_slice %43 {offsets = [0, 0], sizes = [8, 8], strides = [1, 1]} : vector<8x32xf32> to vector<8x8xf32>
    %70 = arith.truncf %69 : vector<8x8xf32> to vector<8x8xbf16>
    %cst_26 = arith.constant dense<0.000000e+00> : vector<8x8xf32>
    %71 = tpu.matmul %65, %70, %cst_26 {dimension_numbers = #tpu.dot_dimension_numbers<[1], [0], [0], [1], [0, 0, 1, 1], [], []>} : vector<8x8xbf16>, vector<8x8xbf16>, vector<8x8xf32> -> vector<8x8xf32>
    %72 = vector.extract_strided_slice %36 {offsets = [0, 8], sizes = [8, 8], strides = [1, 1]} : vector<8x32xf32> to vector<8x8xf32>
    %73 = arith.truncf %72 : vector<8x8xf32> to vector<8x8xbf16>
    %74 = vector.extract_strided_slice %39 {offsets = [0, 8], sizes = [8, 8], strides = [1, 1]} : vector<8x32xf32> to vector<8x8xf32>
    %75 = arith.truncf %74 : vector<8x8xf32> to vector<8x8xbf16>
    %76 = vector.extract_strided_slice %40 {offsets = [0, 8], sizes = [8, 8], strides = [1, 1]} : vector<8x32xf32> to vector<8x8xf32>
    %77 = arith.truncf %76 : vector<8x8xf32> to vector<8x8xbf16>
    %78 = vector.extract_strided_slice %41 {offsets = [0, 8], sizes = [8, 8], strides = [1, 1]} : vector<8x32xf32> to vector<8x8xf32>
    %79 = arith.truncf %78 : vector<8x8xf32> to vector<8x8xbf16>
    %cst_27 = arith.constant dense<0.000000e+00> : vector<8x8xf32>
    %80 = tpu.matmul %73, %77, %cst_27 {dimension_numbers = #tpu.dot_dimension_numbers<[1], [1], [0], [0], [0, 0, 1, 0], [], []>} : vector<8x8xbf16>, vector<8x8xbf16>, vector<8x8xf32> -> vector<8x8xf32>
    %cst_28 = arith.constant dense<0.000000e+00> : vector<8x8xf32>
    %81 = tpu.matmul %75, %79, %cst_28 {dimension_numbers = #tpu.dot_dimension_numbers<[1], [1], [0], [0], [0, 0, 1, 0], [], []>} : vector<8x8xbf16>, vector<8x8xbf16>, vector<8x8xf32> -> vector<8x8xf32>
    %82 = arith.addf %80, %81 : vector<8x8xf32>
    %cst_29 = arith.constant dense<0xFF800000> : vector<8xf32>
    %83 = vector.multi_reduction <maximumf>, %82, %cst_29 [1] : vector<8x8xf32> to vector<8xf32>
    %84 = vector.shape_cast %83 : vector<8xf32> to vector<8x1xf32>
    %85 = vector.broadcast %84 : vector<8x1xf32> to vector<8x8xf32>
    %86 = arith.subf %82, %85 : vector<8x8xf32>
    %87 = math.exp %86 : vector<8x8xf32>
    %cst_30 = arith.constant dense<0.000000e+00> : vector<8xf32>
    %88 = vector.multi_reduction <add>, %87, %cst_30 [1] : vector<8x8xf32> to vector<8xf32>
    %89 = vector.shape_cast %88 : vector<8xf32> to vector<8x1xf32>
    %90 = tpu.reciprocal %89 {approx = true} : vector<8x1xf32> -> vector<8x1xf32>
    %91 = vector.broadcast %90 : vector<8x1xf32> to vector<8x8xf32>
    %92 = arith.mulf %87, %91 : vector<8x8xf32>
    %93 = arith.truncf %92 : vector<8x8xf32> to vector<8x8xbf16>
    %94 = vector.extract_strided_slice %42 {offsets = [0, 8], sizes = [8, 8], strides = [1, 1]} : vector<8x32xf32> to vector<8x8xf32>
    %95 = arith.truncf %94 : vector<8x8xf32> to vector<8x8xbf16>
    %cst_31 = arith.constant dense<0.000000e+00> : vector<8x8xf32>
    %96 = tpu.matmul %93, %95, %cst_31 {dimension_numbers = #tpu.dot_dimension_numbers<[1], [0], [0], [1], [0, 0, 1, 1], [], []>} : vector<8x8xbf16>, vector<8x8xbf16>, vector<8x8xf32> -> vector<8x8xf32>
    %97 = vector.extract_strided_slice %43 {offsets = [0, 8], sizes = [8, 8], strides = [1, 1]} : vector<8x32xf32> to vector<8x8xf32>
    %98 = arith.truncf %97 : vector<8x8xf32> to vector<8x8xbf16>
    %cst_32 = arith.constant dense<0.000000e+00> : vector<8x8xf32>
    %99 = tpu.matmul %93, %98, %cst_32 {dimension_numbers = #tpu.dot_dimension_numbers<[1], [0], [0], [1], [0, 0, 1, 1], [], []>} : vector<8x8xbf16>, vector<8x8xbf16>, vector<8x8xf32> -> vector<8x8xf32>
    %100 = vector.extract_strided_slice %36 {offsets = [0, 16], sizes = [8, 8], strides = [1, 1]} : vector<8x32xf32> to vector<8x8xf32>
    %101 = arith.truncf %100 : vector<8x8xf32> to vector<8x8xbf16>
    %102 = vector.extract_strided_slice %39 {offsets = [0, 16], sizes = [8, 8], strides = [1, 1]} : vector<8x32xf32> to vector<8x8xf32>
    %103 = arith.truncf %102 : vector<8x8xf32> to vector<8x8xbf16>
    %104 = vector.extract_strided_slice %40 {offsets = [0, 16], sizes = [8, 8], strides = [1, 1]} : vector<8x32xf32> to vector<8x8xf32>
    %105 = arith.truncf %104 : vector<8x8xf32> to vector<8x8xbf16>
    %106 = vector.extract_strided_slice %41 {offsets = [0, 16], sizes = [8, 8], strides = [1, 1]} : vector<8x32xf32> to vector<8x8xf32>
    %107 = arith.truncf %106 : vector<8x8xf32> to vector<8x8xbf16>
    %cst_33 = arith.constant dense<0.000000e+00> : vector<8x8xf32>
    %108 = tpu.matmul %101, %105, %cst_33 {dimension_numbers = #tpu.dot_dimension_numbers<[1], [1], [0], [0], [0, 0, 1, 0], [], []>} : vector<8x8xbf16>, vector<8x8xbf16>, vector<8x8xf32> -> vector<8x8xf32>
    %cst_34 = arith.constant dense<0.000000e+00> : vector<8x8xf32>
    %109 = tpu.matmul %103, %107, %cst_34 {dimension_numbers = #tpu.dot_dimension_numbers<[1], [1], [0], [0], [0, 0, 1, 0], [], []>} : vector<8x8xbf16>, vector<8x8xbf16>, vector<8x8xf32> -> vector<8x8xf32>
    %110 = arith.addf %108, %109 : vector<8x8xf32>
    %cst_35 = arith.constant dense<0xFF800000> : vector<8xf32>
    %111 = vector.multi_reduction <maximumf>, %110, %cst_35 [1] : vector<8x8xf32> to vector<8xf32>
    %112 = vector.shape_cast %111 : vector<8xf32> to vector<8x1xf32>
    %113 = vector.broadcast %112 : vector<8x1xf32> to vector<8x8xf32>
    %114 = arith.subf %110, %113 : vector<8x8xf32>
    %115 = math.exp %114 : vector<8x8xf32>
    %cst_36 = arith.constant dense<0.000000e+00> : vector<8xf32>
    %116 = vector.multi_reduction <add>, %115, %cst_36 [1] : vector<8x8xf32> to vector<8xf32>
    %117 = vector.shape_cast %116 : vector<8xf32> to vector<8x1xf32>
    %118 = tpu.reciprocal %117 {approx = true} : vector<8x1xf32> -> vector<8x1xf32>
    %119 = vector.broadcast %118 : vector<8x1xf32> to vector<8x8xf32>
    %120 = arith.mulf %115, %119 : vector<8x8xf32>
    %121 = arith.truncf %120 : vector<8x8xf32> to vector<8x8xbf16>
    %122 = vector.extract_strided_slice %42 {offsets = [0, 16], sizes = [8, 8], strides = [1, 1]} : vector<8x32xf32> to vector<8x8xf32>
    %123 = arith.truncf %122 : vector<8x8xf32> to vector<8x8xbf16>
    %cst_37 = arith.constant dense<0.000000e+00> : vector<8x8xf32>
    %124 = tpu.matmul %121, %123, %cst_37 {dimension_numbers = #tpu.dot_dimension_numbers<[1], [0], [0], [1], [0, 0, 1, 1], [], []>} : vector<8x8xbf16>, vector<8x8xbf16>, vector<8x8xf32> -> vector<8x8xf32>
    %125 = vector.extract_strided_slice %43 {offsets = [0, 16], sizes = [8, 8], strides = [1, 1]} : vector<8x32xf32> to vector<8x8xf32>
    %126 = arith.truncf %125 : vector<8x8xf32> to vector<8x8xbf16>
    %cst_38 = arith.constant dense<0.000000e+00> : vector<8x8xf32>
    %127 = tpu.matmul %121, %126, %cst_38 {dimension_numbers = #tpu.dot_dimension_numbers<[1], [0], [0], [1], [0, 0, 1, 1], [], []>} : vector<8x8xbf16>, vector<8x8xbf16>, vector<8x8xf32> -> vector<8x8xf32>
    %128 = vector.extract_strided_slice %36 {offsets = [0, 24], sizes = [8, 8], strides = [1, 1]} : vector<8x32xf32> to vector<8x8xf32>
    %129 = arith.truncf %128 : vector<8x8xf32> to vector<8x8xbf16>
    %130 = vector.extract_strided_slice %39 {offsets = [0, 24], sizes = [8, 8], strides = [1, 1]} : vector<8x32xf32> to vector<8x8xf32>
    %131 = arith.truncf %130 : vector<8x8xf32> to vector<8x8xbf16>
    %132 = vector.extract_strided_slice %40 {offsets = [0, 24], sizes = [8, 8], strides = [1, 1]} : vector<8x32xf32> to vector<8x8xf32>
    %133 = arith.truncf %132 : vector<8x8xf32> to vector<8x8xbf16>
    %134 = vector.extract_strided_slice %41 {offsets = [0, 24], sizes = [8, 8], strides = [1, 1]} : vector<8x32xf32> to vector<8x8xf32>
    %135 = arith.truncf %134 : vector<8x8xf32> to vector<8x8xbf16>
    %cst_39 = arith.constant dense<0.000000e+00> : vector<8x8xf32>
    %136 = tpu.matmul %129, %133, %cst_39 {dimension_numbers = #tpu.dot_dimension_numbers<[1], [1], [0], [0], [0, 0, 1, 0], [], []>} : vector<8x8xbf16>, vector<8x8xbf16>, vector<8x8xf32> -> vector<8x8xf32>
    %cst_40 = arith.constant dense<0.000000e+00> : vector<8x8xf32>
    %137 = tpu.matmul %131, %135, %cst_40 {dimension_numbers = #tpu.dot_dimension_numbers<[1], [1], [0], [0], [0, 0, 1, 0], [], []>} : vector<8x8xbf16>, vector<8x8xbf16>, vector<8x8xf32> -> vector<8x8xf32>
    %138 = arith.addf %136, %137 : vector<8x8xf32>
    %cst_41 = arith.constant dense<0xFF800000> : vector<8xf32>
    %139 = vector.multi_reduction <maximumf>, %138, %cst_41 [1] : vector<8x8xf32> to vector<8xf32>
    %140 = vector.shape_cast %139 : vector<8xf32> to vector<8x1xf32>
    %141 = vector.broadcast %140 : vector<8x1xf32> to vector<8x8xf32>
    %142 = arith.subf %138, %141 : vector<8x8xf32>
    %143 = math.exp %142 : vector<8x8xf32>
    %cst_42 = arith.constant dense<0.000000e+00> : vector<8xf32>
    %144 = vector.multi_reduction <add>, %143, %cst_42 [1] : vector<8x8xf32> to vector<8xf32>
    %145 = vector.shape_cast %144 : vector<8xf32> to vector<8x1xf32>
    %146 = tpu.reciprocal %145 {approx = true} : vector<8x1xf32> -> vector<8x1xf32>
    %147 = vector.broadcast %146 : vector<8x1xf32> to vector<8x8xf32>
    %148 = arith.mulf %143, %147 : vector<8x8xf32>
    %149 = arith.truncf %148 : vector<8x8xf32> to vector<8x8xbf16>
    %150 = vector.extract_strided_slice %42 {offsets = [0, 24], sizes = [8, 8], strides = [1, 1]} : vector<8x32xf32> to vector<8x8xf32>
    %151 = arith.truncf %150 : vector<8x8xf32> to vector<8x8xbf16>
    %cst_43 = arith.constant dense<0.000000e+00> : vector<8x8xf32>
    %152 = tpu.matmul %149, %151, %cst_43 {dimension_numbers = #tpu.dot_dimension_numbers<[1], [0], [0], [1], [0, 0, 1, 1], [], []>} : vector<8x8xbf16>, vector<8x8xbf16>, vector<8x8xf32> -> vector<8x8xf32>
    %153 = vector.extract_strided_slice %43 {offsets = [0, 24], sizes = [8, 8], strides = [1, 1]} : vector<8x32xf32> to vector<8x8xf32>
    %154 = arith.truncf %153 : vector<8x8xf32> to vector<8x8xbf16>
    %cst_44 = arith.constant dense<0.000000e+00> : vector<8x8xf32>
    %155 = tpu.matmul %149, %154, %cst_44 {dimension_numbers = #tpu.dot_dimension_numbers<[1], [0], [0], [1], [0, 0, 1, 1], [], []>} : vector<8x8xbf16>, vector<8x8xbf16>, vector<8x8xf32> -> vector<8x8xf32>
    %156 = tpu.concatenate %68, %96, %124, %152 in 1 : vector<8x8xf32>, vector<8x8xf32>, vector<8x8xf32>, vector<8x8xf32> -> vector<8x32xf32>
    %157 = tpu.concatenate %71, %99, %127, %155 in 1 : vector<8x8xf32>, vector<8x8xf32>, vector<8x8xf32>, vector<8x8xf32> -> vector<8x32xf32>
    %c0_45 = arith.constant 0 : index
    %c0_46 = arith.constant 0 : index
    %158 = vector.load %arg9[%c0_45, %c0_46] : memref<32x32xf32, #tpu.memory_space<vmem>>, vector<32x32xf32>
    %c0_47 = arith.constant 0 : index
    %c0_48 = arith.constant 0 : index
    %159 = vector.load %arg10[%c0_47, %c0_48] : memref<32x32xf32, #tpu.memory_space<vmem>>, vector<32x32xf32>
    %160 = arith.truncf %156 : vector<8x32xf32> to vector<8x32xbf16>
    %161 = arith.truncf %157 : vector<8x32xf32> to vector<8x32xbf16>
    %162 = arith.addf %156, %157 : vector<8x32xf32>
    %163 = arith.truncf %162 : vector<8x32xf32> to vector<8x32xbf16>
    %164 = arith.truncf %158 : vector<32x32xf32> to vector<32x32xbf16>
    %165 = arith.truncf %159 : vector<32x32xf32> to vector<32x32xbf16>
    %166 = arith.addf %158, %159 : vector<32x32xf32>
    %167 = arith.truncf %166 : vector<32x32xf32> to vector<32x32xbf16>
    %cst_49 = arith.constant dense<0.000000e+00> : vector<8x32xf32>
    %168 = tpu.matmul %160, %164, %cst_49 {dimension_numbers = #tpu.dot_dimension_numbers<[1], [0], [0], [1], [0, 0, 1, 1], [], []>} : vector<8x32xbf16>, vector<32x32xbf16>, vector<8x32xf32> -> vector<8x32xf32>
    %cst_50 = arith.constant dense<0.000000e+00> : vector<8x32xf32>
    %169 = tpu.matmul %161, %165, %cst_50 {dimension_numbers = #tpu.dot_dimension_numbers<[1], [0], [0], [1], [0, 0, 1, 1], [], []>} : vector<8x32xbf16>, vector<32x32xbf16>, vector<8x32xf32> -> vector<8x32xf32>
    %cst_51 = arith.constant dense<0.000000e+00> : vector<8x32xf32>
    %170 = tpu.matmul %163, %167, %cst_51 {dimension_numbers = #tpu.dot_dimension_numbers<[1], [0], [0], [1], [0, 0, 1, 1], [], []>} : vector<8x32xbf16>, vector<32x32xbf16>, vector<8x32xf32> -> vector<8x32xf32>
    %171 = arith.subf %168, %169 : vector<8x32xf32>
    %172 = arith.subf %170, %168 : vector<8x32xf32>
    %173 = arith.subf %172, %169 : vector<8x32xf32>
    %c0_52 = arith.constant 0 : index
    %c0_53 = arith.constant 0 : index
    %174 = vector.load %arg11[%c0_52, %c0_53] : memref<1x32xf32, #tpu.memory_space<vmem>>, vector<1x32xf32>
    %175 = vector.broadcast %174 : vector<1x32xf32> to vector<8x32xf32>
    %176 = arith.addf %171, %175 : vector<8x32xf32>
    %c0_54 = arith.constant 0 : index
    %c0_55 = arith.constant 0 : index
    %177 = vector.load %arg12[%c0_54, %c0_55] : memref<1x32xf32, #tpu.memory_space<vmem>>, vector<1x32xf32>
    %178 = vector.broadcast %177 : vector<1x32xf32> to vector<8x32xf32>
    %179 = arith.addf %173, %178 : vector<8x32xf32>
    %180 = arith.addf %8, %176 : vector<8x32xf32>
    %c0_56 = arith.constant 0 : index
    %c0_57 = arith.constant 0 : index
    %181 = vector.load %arg13[%c0_56, %c0_57] : memref<1x32xf32, #tpu.memory_space<vmem>>, vector<1x32xf32>
    %c0_58 = arith.constant 0 : index
    %c0_59 = arith.constant 0 : index
    %182 = vector.load %arg14[%c0_58, %c0_59] : memref<1x32xf32, #tpu.memory_space<vmem>>, vector<1x32xf32>
    %cst_60 = arith.constant dense<0.000000e+00> : vector<8xf32>
    %183 = vector.multi_reduction <add>, %180, %cst_60 [1] : vector<8x32xf32> to vector<8xf32>
    %184 = vector.shape_cast %183 : vector<8xf32> to vector<8x1xf32>
    %cst_61 = arith.constant 3.200000e+01 : f32
    %185 = vector.broadcast %cst_61 : f32 to vector<8x1xf32>
    %186 = arith.divf %184, %185 : vector<8x1xf32>
    %187 = vector.broadcast %186 : vector<8x1xf32> to vector<8x32xf32>
    %188 = arith.subf %180, %187 : vector<8x32xf32>
    %189 = arith.mulf %188, %188 : vector<8x32xf32>
    %cst_62 = arith.constant dense<0.000000e+00> : vector<8xf32>
    %190 = vector.multi_reduction <add>, %189, %cst_62 [1] : vector<8x32xf32> to vector<8xf32>
    %191 = vector.shape_cast %190 : vector<8xf32> to vector<8x1xf32>
    %cst_63 = arith.constant 3.200000e+01 : f32
    %192 = vector.broadcast %cst_63 : f32 to vector<8x1xf32>
    %193 = arith.divf %191, %192 : vector<8x1xf32>
    %cst_64 = arith.constant 9.99999974E-6 : f32
    %194 = vector.broadcast %cst_64 : f32 to vector<8x1xf32>
    %195 = arith.addf %193, %194 : vector<8x1xf32>
    %196 = math.rsqrt %195 : vector<8x1xf32>
    %197 = vector.broadcast %196 : vector<8x1xf32> to vector<8x32xf32>
    %198 = arith.mulf %188, %197 : vector<8x32xf32>
    %199 = vector.broadcast %181 : vector<1x32xf32> to vector<8x32xf32>
    %200 = arith.mulf %198, %199 : vector<8x32xf32>
    %201 = vector.broadcast %182 : vector<1x32xf32> to vector<8x32xf32>
    %202 = arith.addf %200, %201 : vector<8x32xf32>
    %203 = arith.addf %11, %179 : vector<8x32xf32>
    %c0_65 = arith.constant 0 : index
    %c0_66 = arith.constant 0 : index
    %204 = vector.load %arg15[%c0_65, %c0_66] : memref<1x32xf32, #tpu.memory_space<vmem>>, vector<1x32xf32>
    %c0_67 = arith.constant 0 : index
    %c0_68 = arith.constant 0 : index
    %205 = vector.load %arg16[%c0_67, %c0_68] : memref<1x32xf32, #tpu.memory_space<vmem>>, vector<1x32xf32>
    %cst_69 = arith.constant dense<0.000000e+00> : vector<8xf32>
    %206 = vector.multi_reduction <add>, %203, %cst_69 [1] : vector<8x32xf32> to vector<8xf32>
    %207 = vector.shape_cast %206 : vector<8xf32> to vector<8x1xf32>
    %cst_70 = arith.constant 3.200000e+01 : f32
    %208 = vector.broadcast %cst_70 : f32 to vector<8x1xf32>
    %209 = arith.divf %207, %208 : vector<8x1xf32>
    %210 = vector.broadcast %209 : vector<8x1xf32> to vector<8x32xf32>
    %211 = arith.subf %203, %210 : vector<8x32xf32>
    %212 = arith.mulf %211, %211 : vector<8x32xf32>
    %cst_71 = arith.constant dense<0.000000e+00> : vector<8xf32>
    %213 = vector.multi_reduction <add>, %212, %cst_71 [1] : vector<8x32xf32> to vector<8xf32>
    %214 = vector.shape_cast %213 : vector<8xf32> to vector<8x1xf32>
    %cst_72 = arith.constant 3.200000e+01 : f32
    %215 = vector.broadcast %cst_72 : f32 to vector<8x1xf32>
    %216 = arith.divf %214, %215 : vector<8x1xf32>
    %cst_73 = arith.constant 9.99999974E-6 : f32
    %217 = vector.broadcast %cst_73 : f32 to vector<8x1xf32>
    %218 = arith.addf %216, %217 : vector<8x1xf32>
    %219 = math.rsqrt %218 : vector<8x1xf32>
    %220 = vector.broadcast %219 : vector<8x1xf32> to vector<8x32xf32>
    %221 = arith.mulf %211, %220 : vector<8x32xf32>
    %222 = vector.broadcast %204 : vector<1x32xf32> to vector<8x32xf32>
    %223 = arith.mulf %221, %222 : vector<8x32xf32>
    %224 = vector.broadcast %205 : vector<1x32xf32> to vector<8x32xf32>
    %225 = arith.addf %223, %224 : vector<8x32xf32>
    %c0_74 = arith.constant 0 : index
    %c0_75 = arith.constant 0 : index
    %226 = vector.load %arg17[%c0_74, %c0_75] : memref<32x64xf32, #tpu.memory_space<vmem>>, vector<32x64xf32>
    %c0_76 = arith.constant 0 : index
    %c0_77 = arith.constant 0 : index
    %227 = vector.load %arg18[%c0_76, %c0_77] : memref<32x64xf32, #tpu.memory_space<vmem>>, vector<32x64xf32>
    %228 = arith.truncf %202 : vector<8x32xf32> to vector<8x32xbf16>
    %229 = arith.truncf %225 : vector<8x32xf32> to vector<8x32xbf16>
    %230 = arith.addf %202, %225 : vector<8x32xf32>
    %231 = arith.truncf %230 : vector<8x32xf32> to vector<8x32xbf16>
    %232 = arith.truncf %226 : vector<32x64xf32> to vector<32x64xbf16>
    %233 = arith.truncf %227 : vector<32x64xf32> to vector<32x64xbf16>
    %234 = arith.addf %226, %227 : vector<32x64xf32>
    %235 = arith.truncf %234 : vector<32x64xf32> to vector<32x64xbf16>
    %cst_78 = arith.constant dense<0.000000e+00> : vector<8x64xf32>
    %236 = tpu.matmul %228, %232, %cst_78 {dimension_numbers = #tpu.dot_dimension_numbers<[1], [0], [0], [1], [0, 0, 1, 1], [], []>} : vector<8x32xbf16>, vector<32x64xbf16>, vector<8x64xf32> -> vector<8x64xf32>
    %cst_79 = arith.constant dense<0.000000e+00> : vector<8x64xf32>
    %237 = tpu.matmul %229, %233, %cst_79 {dimension_numbers = #tpu.dot_dimension_numbers<[1], [0], [0], [1], [0, 0, 1, 1], [], []>} : vector<8x32xbf16>, vector<32x64xbf16>, vector<8x64xf32> -> vector<8x64xf32>
    %cst_80 = arith.constant dense<0.000000e+00> : vector<8x64xf32>
    %238 = tpu.matmul %231, %235, %cst_80 {dimension_numbers = #tpu.dot_dimension_numbers<[1], [0], [0], [1], [0, 0, 1, 1], [], []>} : vector<8x32xbf16>, vector<32x64xbf16>, vector<8x64xf32> -> vector<8x64xf32>
    %239 = arith.subf %236, %237 : vector<8x64xf32>
    %240 = arith.subf %238, %236 : vector<8x64xf32>
    %241 = arith.subf %240, %237 : vector<8x64xf32>
    %c0_81 = arith.constant 0 : index
    %c0_82 = arith.constant 0 : index
    %242 = vector.load %arg19[%c0_81, %c0_82] : memref<1x64xf32, #tpu.memory_space<vmem>>, vector<1x64xf32>
    %243 = vector.broadcast %242 : vector<1x64xf32> to vector<8x64xf32>
    %244 = arith.addf %239, %243 : vector<8x64xf32>
    %cst_83 = arith.constant 5.000000e-01 : f32
    %245 = vector.broadcast %cst_83 : f32 to vector<8x64xf32>
    %246 = arith.mulf %245, %244 : vector<8x64xf32>
    %cst_84 = arith.constant 0.707106769 : f32
    %247 = vector.broadcast %cst_84 : f32 to vector<8x64xf32>
    %248 = arith.mulf %244, %247 : vector<8x64xf32>
    %249 = math.absf %248 : vector<8x64xf32>
    %cst_85 = arith.constant 0.327591091 : f32
    %250 = vector.broadcast %cst_85 : f32 to vector<8x64xf32>
    %251 = arith.mulf %250, %249 : vector<8x64xf32>
    %cst_86 = arith.constant 1.000000e+00 : f32
    %252 = vector.broadcast %cst_86 : f32 to vector<8x64xf32>
    %253 = arith.addf %252, %251 : vector<8x64xf32>
    %cst_87 = arith.constant 1.000000e+00 : f32
    %254 = vector.broadcast %cst_87 : f32 to vector<8x64xf32>
    %255 = arith.divf %254, %253 : vector<8x64xf32>
    %cst_88 = arith.constant 1.06140542 : f32
    %256 = vector.broadcast %cst_88 : f32 to vector<8x64xf32>
    %257 = arith.mulf %256, %255 : vector<8x64xf32>
    %cst_89 = arith.constant -1.45315206 : f32
    %258 = vector.broadcast %cst_89 : f32 to vector<8x64xf32>
    %259 = arith.addf %257, %258 : vector<8x64xf32>
    %260 = arith.mulf %259, %255 : vector<8x64xf32>
    %cst_90 = arith.constant 1.42141378 : f32
    %261 = vector.broadcast %cst_90 : f32 to vector<8x64xf32>
    %262 = arith.addf %260, %261 : vector<8x64xf32>
    %263 = arith.mulf %262, %255 : vector<8x64xf32>
    %cst_91 = arith.constant -0.284496725 : f32
    %264 = vector.broadcast %cst_91 : f32 to vector<8x64xf32>
    %265 = arith.addf %263, %264 : vector<8x64xf32>
    %266 = arith.mulf %265, %255 : vector<8x64xf32>
    %cst_92 = arith.constant 0.254829586 : f32
    %267 = vector.broadcast %cst_92 : f32 to vector<8x64xf32>
    %268 = arith.addf %266, %267 : vector<8x64xf32>
    %269 = arith.mulf %268, %255 : vector<8x64xf32>
    %cst_93 = arith.constant 0.000000e+00 : f32
    %270 = vector.broadcast %cst_93 : f32 to vector<8x64xf32>
    %271 = arith.subf %270, %249 : vector<8x64xf32>
    %272 = arith.mulf %271, %249 : vector<8x64xf32>
    %273 = math.exp %272 : vector<8x64xf32>
    %274 = arith.mulf %269, %273 : vector<8x64xf32>
    %cst_94 = arith.constant 1.000000e+00 : f32
    %275 = vector.broadcast %cst_94 : f32 to vector<8x64xf32>
    %276 = arith.subf %275, %274 : vector<8x64xf32>
    %cst_95 = arith.constant 0.000000e+00 : f32
    %277 = vector.broadcast %cst_95 : f32 to vector<8x64xf32>
    %278 = arith.cmpf oge, %248, %277 : vector<8x64xf32>
    %cst_96 = arith.constant 0.000000e+00 : f32
    %279 = vector.broadcast %cst_96 : f32 to vector<8x64xf32>
    %280 = arith.subf %279, %276 : vector<8x64xf32>
    %281 = arith.select %278, %276, %280 : vector<8x64xi1>, vector<8x64xf32>
    %cst_97 = arith.constant 1.000000e+00 : f32
    %282 = vector.broadcast %cst_97 : f32 to vector<8x64xf32>
    %283 = arith.addf %282, %281 : vector<8x64xf32>
    %284 = arith.mulf %246, %283 : vector<8x64xf32>
    %c0_98 = arith.constant 0 : index
    %c0_99 = arith.constant 0 : index
    %285 = vector.load %arg20[%c0_98, %c0_99] : memref<1x64xf32, #tpu.memory_space<vmem>>, vector<1x64xf32>
    %286 = vector.broadcast %285 : vector<1x64xf32> to vector<8x64xf32>
    %287 = arith.addf %241, %286 : vector<8x64xf32>
    %c0_100 = arith.constant 0 : index
    %c0_101 = arith.constant 0 : index
    %288 = vector.load %arg21[%c0_100, %c0_101] : memref<64x32xf32, #tpu.memory_space<vmem>>, vector<64x32xf32>
    %c0_102 = arith.constant 0 : index
    %c0_103 = arith.constant 0 : index
    %289 = vector.load %arg22[%c0_102, %c0_103] : memref<64x32xf32, #tpu.memory_space<vmem>>, vector<64x32xf32>
    %290 = arith.truncf %284 : vector<8x64xf32> to vector<8x64xbf16>
    %291 = arith.truncf %287 : vector<8x64xf32> to vector<8x64xbf16>
    %292 = arith.addf %284, %287 : vector<8x64xf32>
    %293 = arith.truncf %292 : vector<8x64xf32> to vector<8x64xbf16>
    %294 = arith.truncf %288 : vector<64x32xf32> to vector<64x32xbf16>
    %295 = arith.truncf %289 : vector<64x32xf32> to vector<64x32xbf16>
    %296 = arith.addf %288, %289 : vector<64x32xf32>
    %297 = arith.truncf %296 : vector<64x32xf32> to vector<64x32xbf16>
    %cst_104 = arith.constant dense<0.000000e+00> : vector<8x32xf32>
    %298 = tpu.matmul %290, %294, %cst_104 {dimension_numbers = #tpu.dot_dimension_numbers<[1], [0], [0], [1], [0, 0, 1, 1], [], []>} : vector<8x64xbf16>, vector<64x32xbf16>, vector<8x32xf32> -> vector<8x32xf32>
    %cst_105 = arith.constant dense<0.000000e+00> : vector<8x32xf32>
    %299 = tpu.matmul %291, %295, %cst_105 {dimension_numbers = #tpu.dot_dimension_numbers<[1], [0], [0], [1], [0, 0, 1, 1], [], []>} : vector<8x64xbf16>, vector<64x32xbf16>, vector<8x32xf32> -> vector<8x32xf32>
    %cst_106 = arith.constant dense<0.000000e+00> : vector<8x32xf32>
    %300 = tpu.matmul %293, %297, %cst_106 {dimension_numbers = #tpu.dot_dimension_numbers<[1], [0], [0], [1], [0, 0, 1, 1], [], []>} : vector<8x64xbf16>, vector<64x32xbf16>, vector<8x32xf32> -> vector<8x32xf32>
    %301 = arith.subf %298, %299 : vector<8x32xf32>
    %302 = arith.subf %300, %298 : vector<8x32xf32>
    %303 = arith.subf %302, %299 : vector<8x32xf32>
    %c0_107 = arith.constant 0 : index
    %c0_108 = arith.constant 0 : index
    %304 = vector.load %arg23[%c0_107, %c0_108] : memref<1x32xf32, #tpu.memory_space<vmem>>, vector<1x32xf32>
    %305 = vector.broadcast %304 : vector<1x32xf32> to vector<8x32xf32>
    %306 = arith.addf %301, %305 : vector<8x32xf32>
    %c0_109 = arith.constant 0 : index
    %c0_110 = arith.constant 0 : index
    %307 = vector.load %arg24[%c0_109, %c0_110] : memref<1x32xf32, #tpu.memory_space<vmem>>, vector<1x32xf32>
    %308 = vector.broadcast %307 : vector<1x32xf32> to vector<8x32xf32>
    %309 = arith.addf %303, %308 : vector<8x32xf32>
    %310 = arith.addf %202, %306 : vector<8x32xf32>
    %c0_111 = arith.constant 0 : index
    %c0_112 = arith.constant 0 : index
    %311 = vector.load %arg25[%c0_111, %c0_112] : memref<1x32xf32, #tpu.memory_space<vmem>>, vector<1x32xf32>
    %c0_113 = arith.constant 0 : index
    %c0_114 = arith.constant 0 : index
    %312 = vector.load %arg26[%c0_113, %c0_114] : memref<1x32xf32, #tpu.memory_space<vmem>>, vector<1x32xf32>
    %cst_115 = arith.constant dense<0.000000e+00> : vector<8xf32>
    %313 = vector.multi_reduction <add>, %310, %cst_115 [1] : vector<8x32xf32> to vector<8xf32>
    %314 = vector.shape_cast %313 : vector<8xf32> to vector<8x1xf32>
    %cst_116 = arith.constant 3.200000e+01 : f32
    %315 = vector.broadcast %cst_116 : f32 to vector<8x1xf32>
    %316 = arith.divf %314, %315 : vector<8x1xf32>
    %317 = vector.broadcast %316 : vector<8x1xf32> to vector<8x32xf32>
    %318 = arith.subf %310, %317 : vector<8x32xf32>
    %319 = arith.mulf %318, %318 : vector<8x32xf32>
    %cst_117 = arith.constant dense<0.000000e+00> : vector<8xf32>
    %320 = vector.multi_reduction <add>, %319, %cst_117 [1] : vector<8x32xf32> to vector<8xf32>
    %321 = vector.shape_cast %320 : vector<8xf32> to vector<8x1xf32>
    %cst_118 = arith.constant 3.200000e+01 : f32
    %322 = vector.broadcast %cst_118 : f32 to vector<8x1xf32>
    %323 = arith.divf %321, %322 : vector<8x1xf32>
    %cst_119 = arith.constant 9.99999974E-6 : f32
    %324 = vector.broadcast %cst_119 : f32 to vector<8x1xf32>
    %325 = arith.addf %323, %324 : vector<8x1xf32>
    %326 = math.rsqrt %325 : vector<8x1xf32>
    %327 = vector.broadcast %326 : vector<8x1xf32> to vector<8x32xf32>
    %328 = arith.mulf %318, %327 : vector<8x32xf32>
    %329 = vector.broadcast %311 : vector<1x32xf32> to vector<8x32xf32>
    %330 = arith.mulf %328, %329 : vector<8x32xf32>
    %331 = vector.broadcast %312 : vector<1x32xf32> to vector<8x32xf32>
    %332 = arith.addf %330, %331 : vector<8x32xf32>
    %333 = arith.addf %225, %309 : vector<8x32xf32>
    %c0_120 = arith.constant 0 : index
    %c0_121 = arith.constant 0 : index
    %334 = vector.load %arg27[%c0_120, %c0_121] : memref<1x32xf32, #tpu.memory_space<vmem>>, vector<1x32xf32>
    %c0_122 = arith.constant 0 : index
    %c0_123 = arith.constant 0 : index
    %335 = vector.load %arg28[%c0_122, %c0_123] : memref<1x32xf32, #tpu.memory_space<vmem>>, vector<1x32xf32>
    %cst_124 = arith.constant dense<0.000000e+00> : vector<8xf32>
    %336 = vector.multi_reduction <add>, %333, %cst_124 [1] : vector<8x32xf32> to vector<8xf32>
    %337 = vector.shape_cast %336 : vector<8xf32> to vector<8x1xf32>
    %cst_125 = arith.constant 3.200000e+01 : f32
    %338 = vector.broadcast %cst_125 : f32 to vector<8x1xf32>
    %339 = arith.divf %337, %338 : vector<8x1xf32>
    %340 = vector.broadcast %339 : vector<8x1xf32> to vector<8x32xf32>
    %341 = arith.subf %333, %340 : vector<8x32xf32>
    %342 = arith.mulf %341, %341 : vector<8x32xf32>
    %cst_126 = arith.constant dense<0.000000e+00> : vector<8xf32>
    %343 = vector.multi_reduction <add>, %342, %cst_126 [1] : vector<8x32xf32> to vector<8xf32>
    %344 = vector.shape_cast %343 : vector<8xf32> to vector<8x1xf32>
    %cst_127 = arith.constant 3.200000e+01 : f32
    %345 = vector.broadcast %cst_127 : f32 to vector<8x1xf32>
    %346 = arith.divf %344, %345 : vector<8x1xf32>
    %cst_128 = arith.constant 9.99999974E-6 : f32
    %347 = vector.broadcast %cst_128 : f32 to vector<8x1xf32>
    %348 = arith.addf %346, %347 : vector<8x1xf32>
    %349 = math.rsqrt %348 : vector<8x1xf32>
    %350 = vector.broadcast %349 : vector<8x1xf32> to vector<8x32xf32>
    %351 = arith.mulf %341, %350 : vector<8x32xf32>
    %352 = vector.broadcast %334 : vector<1x32xf32> to vector<8x32xf32>
    %353 = arith.mulf %351, %352 : vector<8x32xf32>
    %354 = vector.broadcast %335 : vector<1x32xf32> to vector<8x32xf32>
    %355 = arith.addf %353, %354 : vector<8x32xf32>
    %c0_129 = arith.constant 0 : index
    %c0_130 = arith.constant 0 : index
    %c0_131 = arith.constant 0 : index
    %356 = vector.load %arg29[%c0_129, %c0_130, %c0_131] : memref<1x8x32xf32, #tpu.memory_space<vmem>>, vector<1x8x32xf32>
    %357 = vector.shape_cast %356 : vector<1x8x32xf32> to vector<8x32xf32>
    %358 = vector.shape_cast %332 : vector<8x32xf32> to vector<1x8x32xf32>
    tpu.vector_store %arg29[%c0_129, %c0_130, %c0_131], %358 {strides = array<i32>} : memref<1x8x32xf32, #tpu.memory_space<vmem>>, vector<1x8x32xf32>,
    %c0_132 = arith.constant 0 : index
    %c0_133 = arith.constant 0 : index
    %c0_134 = arith.constant 0 : index
    %359 = vector.load %arg30[%c0_132, %c0_133, %c0_134] : memref<1x8x32xf32, #tpu.memory_space<vmem>>, vector<1x8x32xf32>
    %360 = vector.shape_cast %359 : vector<1x8x32xf32> to vector<8x32xf32>
    %361 = vector.shape_cast %355 : vector<8x32xf32> to vector<1x8x32xf32>
    tpu.vector_store %arg30[%c0_132, %c0_133, %c0_134], %361 {strides = array<i32>} : memref<1x8x32xf32, #tpu.memory_space<vmem>>, vector<1x8x32xf32>,
    return
  }
  func.func @transform_0(%arg0: i32) -> (i32, i32, i32) {
    %c0_i32 = arith.constant 0 : i32
    %c0_i32_0 = arith.constant 0 : i32
    %c0_i32_1 = arith.constant 0 : i32
    return %arg0, %c0_i32, %c0_i32_0 : i32, i32, i32
  }
  func.func @transform_1(%arg0: i32) -> (i32, i32, i32) {
    %c0_i32 = arith.constant 0 : i32
    %c0_i32_0 = arith.constant 0 : i32
    %c0_i32_1 = arith.constant 0 : i32
    return %arg0, %c0_i32, %c0_i32_0 : i32, i32, i32
  }
  func.func @transform_2(%arg0: i32) -> (i32, i32) {
    %c0_i32 = arith.constant 0 : i32
    %c0_i32_0 = arith.constant 0 : i32
    %c0_i32_1 = arith.constant 0 : i32
    return %c0_i32, %c0_i32_0 : i32, i32
  }
  func.func @transform_3(%arg0: i32) -> (i32, i32) {
    %c0_i32 = arith.constant 0 : i32
    %c0_i32_0 = arith.constant 0 : i32
    %c0_i32_1 = arith.constant 0 : i32
    return %c0_i32, %c0_i32_0 : i32, i32
  }
  func.func @transform_4(%arg0: i32) -> (i32, i32) {
    %c0_i32 = arith.constant 0 : i32
    %c0_i32_0 = arith.constant 0 : i32
    %c0_i32_1 = arith.constant 0 : i32
    return %c0_i32, %c0_i32_0 : i32, i32
  }
  func.func @transform_5(%arg0: i32) -> (i32, i32) {
    %c0_i32 = arith.constant 0 : i32
    %c0_i32_0 = arith.constant 0 : i32
    %c0_i32_1 = arith.constant 0 : i32
    return %c0_i32, %c0_i32_0 : i32, i32
  }
  func.func @transform_6(%arg0: i32) -> (i32, i32) {
    %c0_i32 = arith.constant 0 : i32
    %c0_i32_0 = arith.constant 0 : i32
    %c0_i32_1 = arith.constant 0 : i32
    return %c0_i32, %c0_i32_0 : i32, i32
  }
  func.func @transform_7(%arg0: i32) -> (i32, i32) {
    %c0_i32 = arith.constant 0 : i32
    %c0_i32_0 = arith.constant 0 : i32
    %c0_i32_1 = arith.constant 0 : i32
    return %c0_i32, %c0_i32_0 : i32, i32
  }
  func.func @transform_8(%arg0: i32) -> (i32, i32) {
    %c0_i32 = arith.constant 0 : i32
    %c0_i32_0 = arith.constant 0 : i32
    %c0_i32_1 = arith.constant 0 : i32
    return %c0_i32, %c0_i32_0 : i32, i32
  }
  func.func @transform_9(%arg0: i32) -> (i32, i32) {
    %c0_i32 = arith.constant 0 : i32
    %c0_i32_0 = arith.constant 0 : i32
    %c0_i32_1 = arith.constant 0 : i32
    return %c0_i32, %c0_i32_0 : i32, i32
  }
  func.func @transform_10(%arg0: i32) -> (i32, i32) {
    %c0_i32 = arith.constant 0 : i32
    %c0_i32_0 = arith.constant 0 : i32
    %c0_i32_1 = arith.constant 0 : i32
    return %c0_i32, %c0_i32_0 : i32, i32
  }
  func.func @transform_11(%arg0: i32) -> (i32, i32) {
    %c0_i32 = arith.constant 0 : i32
    %c0_i32_0 = arith.constant 0 : i32
    %c0_i32_1 = arith.constant 0 : i32
    return %c0_i32, %c0_i32_0 : i32, i32
  }
  func.func @transform_12(%arg0: i32) -> (i32, i32) {
    %c0_i32 = arith.constant 0 : i32
    %c0_i32_0 = arith.constant 0 : i32
    %c0_i32_1 = arith.constant 0 : i32
    return %c0_i32, %c0_i32_0 : i32, i32
  }
  func.func @transform_13(%arg0: i32) -> (i32, i32) {
    %c0_i32 = arith.constant 0 : i32
    %c0_i32_0 = arith.constant 0 : i32
    %c0_i32_1 = arith.constant 0 : i32
    return %c0_i32, %c0_i32_0 : i32, i32
  }
  func.func @transform_14(%arg0: i32) -> (i32, i32) {
    %c0_i32 = arith.constant 0 : i32
    %c0_i32_0 = arith.constant 0 : i32
    %c0_i32_1 = arith.constant 0 : i32
    return %c0_i32, %c0_i32_0 : i32, i32
  }
  func.func @transform_15(%arg0: i32) -> (i32, i32) {
    %c0_i32 = arith.constant 0 : i32
    %c0_i32_0 = arith.constant 0 : i32
    %c0_i32_1 = arith.constant 0 : i32
    return %c0_i32, %c0_i32_0 : i32, i32
  }
  func.func @transform_16(%arg0: i32) -> (i32, i32) {
    %c0_i32 = arith.constant 0 : i32
    %c0_i32_0 = arith.constant 0 : i32
    %c0_i32_1 = arith.constant 0 : i32
    return %c0_i32, %c0_i32_0 : i32, i32
  }
  func.func @transform_17(%arg0: i32) -> (i32, i32) {
    %c0_i32 = arith.constant 0 : i32
    %c0_i32_0 = arith.constant 0 : i32
    %c0_i32_1 = arith.constant 0 : i32
    return %c0_i32, %c0_i32_0 : i32, i32
  }
  func.func @transform_18(%arg0: i32) -> (i32, i32) {
    %c0_i32 = arith.constant 0 : i32
    %c0_i32_0 = arith.constant 0 : i32
    %c0_i32_1 = arith.constant 0 : i32
    return %c0_i32, %c0_i32_0 : i32, i32
  }
  func.func @transform_19(%arg0: i32) -> (i32, i32) {
    %c0_i32 = arith.constant 0 : i32
    %c0_i32_0 = arith.constant 0 : i32
    %c0_i32_1 = arith.constant 0 : i32
    return %c0_i32, %c0_i32_0 : i32, i32
  }
  func.func @transform_20(%arg0: i32) -> (i32, i32) {
    %c0_i32 = arith.constant 0 : i32
    %c0_i32_0 = arith.constant 0 : i32
    %c0_i32_1 = arith.constant 0 : i32
    return %c0_i32, %c0_i32_0 : i32, i32
  }
  func.func @transform_21(%arg0: i32) -> (i32, i32) {
    %c0_i32 = arith.constant 0 : i32
    %c0_i32_0 = arith.constant 0 : i32
    %c0_i32_1 = arith.constant 0 : i32
    return %c0_i32, %c0_i32_0 : i32, i32
  }
  func.func @transform_22(%arg0: i32) -> (i32, i32) {
    %c0_i32 = arith.constant 0 : i32
    %c0_i32_0 = arith.constant 0 : i32
    %c0_i32_1 = arith.constant 0 : i32
    return %c0_i32, %c0_i32_0 : i32, i32
  }
  func.func @transform_23(%arg0: i32) -> (i32, i32) {
    %c0_i32 = arith.constant 0 : i32
    %c0_i32_0 = arith.constant 0 : i32
    %c0_i32_1 = arith.constant 0 : i32
    return %c0_i32, %c0_i32_0 : i32, i32
  }
  func.func @transform_24(%arg0: i32) -> (i32, i32) {
    %c0_i32 = arith.constant 0 : i32
    %c0_i32_0 = arith.constant 0 : i32
    %c0_i32_1 = arith.constant 0 : i32
    return %c0_i32, %c0_i32_0 : i32, i32
  }
  func.func @transform_25(%arg0: i32) -> (i32, i32) {
    %c0_i32 = arith.constant 0 : i32
    %c0_i32_0 = arith.constant 0 : i32
    %c0_i32_1 = arith.constant 0 : i32
    return %c0_i32, %c0_i32_0 : i32, i32
  }
  func.func @transform_26(%arg0: i32) -> (i32, i32) {
    %c0_i32 = arith.constant 0 : i32
    %c0_i32_0 = arith.constant 0 : i32
    %c0_i32_1 = arith.constant 0 : i32
    return %c0_i32, %c0_i32_0 : i32, i32
  }
  func.func @transform_27(%arg0: i32) -> (i32, i32) {
    %c0_i32 = arith.constant 0 : i32
    %c0_i32_0 = arith.constant 0 : i32
    %c0_i32_1 = arith.constant 0 : i32
    return %c0_i32, %c0_i32_0 : i32, i32
  }
  func.func @transform_28(%arg0: i32) -> (i32, i32, i32) {
    %c0_i32 = arith.constant 0 : i32
    %c0_i32_0 = arith.constant 0 : i32
    %c0_i32_1 = arith.constant 0 : i32
    return %arg0, %c0_i32, %c0_i32_0 : i32, i32, i32
  }
  func.func @transform_29(%arg0: i32) -> (i32, i32, i32) {
    %c0_i32 = arith.constant 0 : i32
    %c0_i32_0 = arith.constant 0 : i32
    %c0_i32_1 = arith.constant 0 : i32
    return %arg0, %c0_i32, %c0_i32_0 : i32, i32, i32
  }
}

module attributes {stable_mosaic.version = 11 : i64} {
  func.func @_qilm_block_kernel(%arg0: i32, %arg1: memref<1x8x32xf32, #tpu.memory_space<vmem>>, %arg2: memref<1x8x32xf32, #tpu.memory_space<vmem>>, %arg3: memref<8x32xf32, #tpu.memory_space<vmem>>, %arg4: memref<8x32xf32, #tpu.memory_space<vmem>>, %arg5: memref<32x96xf32, #tpu.memory_space<vmem>>, %arg6: memref<32x96xf32, #tpu.memory_space<vmem>>, %arg7: memref<1x96xf32, #tpu.memory_space<vmem>>, %arg8: memref<1x96xf32, #tpu.memory_space<vmem>>, %arg9: memref<32x32xf32, #tpu.memory_space<vmem>>, %arg10: memref<32x32xf32, #tpu.memory_space<vmem>>, %arg11: memref<1x32xf32, #tpu.memory_space<vmem>>, %arg12: memref<1x32xf32, #tpu.memory_space<vmem>>, %arg13: memref<1x32xf32, #tpu.memory_space<vmem>>, %arg14: memref<1x32xf32, #tpu.memory_space<vmem>>, %arg15: memref<1x32xf32, #tpu.memory_space<vmem>>, %arg16: memref<1x32xf32, #tpu.memory_space<vmem>>, %arg17: memref<32x64xf32, #tpu.memory_space<vmem>>, %arg18: memref<32x64xf32, #tpu.memory_space<vmem>>, %arg19: memref<1x64xf32, #tpu.memory_space<vmem>>, %arg20: memref<1x64xf32, #tpu.memory_space<vmem>>, %arg21: memref<64x32xf32, #tpu.memory_space<vmem>>, %arg22: memref<64x32xf32, #tpu.memory_space<vmem>>, %arg23: memref<1x32xf32, #tpu.memory_space<vmem>>, %arg24: memref<1x32xf32, #tpu.memory_space<vmem>>, %arg25: memref<1x32xf32, #tpu.memory_space<vmem>>, %arg26: memref<1x32xf32, #tpu.memory_space<vmem>>, %arg27: memref<1x32xf32, #tpu.memory_space<vmem>>, %arg28: memref<1x32xf32, #tpu.memory_space<vmem>>, %arg29: memref<32x32xf32, #tpu.memory_space<vmem>>, %arg30: memref<32x32xf32, #tpu.memory_space<vmem>>, %arg31: memref<1x32xf32, #tpu.memory_space<vmem>>, %arg32: memref<1x32xf32, #tpu.memory_space<vmem>>, %arg33: memref<1x8x32xf32, #tpu.memory_space<vmem>>, %arg34: memref<1x8x32xf32, #tpu.memory_space<vmem>>, %arg35: memref<1x1x32xf32, #tpu.memory_space<vmem>>, %arg36: memref<1x1x32xf32, #tpu.memory_space<vmem>>) attributes {dimension_semantics = [#tpu.dimension_semantics<parallel>], iteration_bounds = array<i64: 2>, scalar_prefetch = 0 : i64, scratch_operands = 0 : i64, tpu.core_type = #tpu.core_type<tc>, window_params = [{transform_indices = @transform_0, window_bounds = array<i64: 1, 8, 32>}, {transform_indices = @transform_1, window_bounds = array<i64: 1, 8, 32>}, {pipeline_mode = #tpu.pipeline_mode<synchronous>, transform_indices = @transform_2, window_bounds = array<i64: 8, 32>}, {pipeline_mode = #tpu.pipeline_mode<synchronous>, transform_indices = @transform_3, window_bounds = array<i64: 8, 32>}, {pipeline_mode = #tpu.pipeline_mode<synchronous>, transform_indices = @transform_4, window_bounds = array<i64: 32, 96>}, {pipeline_mode = #tpu.pipeline_mode<synchronous>, transform_indices = @transform_5, window_bounds = array<i64: 32, 96>}, {pipeline_mode = #tpu.pipeline_mode<synchronous>, transform_indices = @transform_6, window_bounds = array<i64: 1, 96>}, {pipeline_mode = #tpu.pipeline_mode<synchronous>, transform_indices = @transform_7, window_bounds = array<i64: 1, 96>}, {pipeline_mode = #tpu.pipeline_mode<synchronous>, transform_indices = @transform_8, window_bounds = array<i64: 32, 32>}, {pipeline_mode = #tpu.pipeline_mode<synchronous>, transform_indices = @transform_9, window_bounds = array<i64: 32, 32>}, {pipeline_mode = #tpu.pipeline_mode<synchronous>, transform_indices = @transform_10, window_bounds = array<i64: 1, 32>}, {pipeline_mode = #tpu.pipeline_mode<synchronous>, transform_indices = @transform_11, window_bounds = array<i64: 1, 32>}, {pipeline_mode = #tpu.pipeline_mode<synchronous>, transform_indices = @transform_12, window_bounds = array<i64: 1, 32>}, {pipeline_mode = #tpu.pipeline_mode<synchronous>, transform_indices = @transform_13, window_bounds = array<i64: 1, 32>}, {pipeline_mode = #tpu.pipeline_mode<synchronous>, transform_indices = @transform_14, window_bounds = array<i64: 1, 32>}, {pipeline_mode = #tpu.pipeline_mode<synchronous>, transform_indices = @transform_15, window_bounds = array<i64: 1, 32>}, {pipeline_mode = #tpu.pipeline_mode<synchronous>, transform_indices = @transform_16, window_bounds = array<i64: 32, 64>}, {pipeline_mode = #tpu.pipeline_mode<synchronous>, transform_indices = @transform_17, window_bounds = array<i64: 32, 64>}, {pipeline_mode = #tpu.pipeline_mode<synchronous>, transform_indices = @transform_18, window_bounds = array<i64: 1, 64>}, {pipeline_mode = #tpu.pipeline_mode<synchronous>, transform_indices = @transform_19, window_bounds = array<i64: 1, 64>}, {pipeline_mode = #tpu.pipeline_mode<synchronous>, transform_indices = @transform_20, window_bounds = array<i64: 64, 32>}, {pipeline_mode = #tpu.pipeline_mode<synchronous>, transform_indices = @transform_21, window_bounds = array<i64: 64, 32>}, {pipeline_mode = #tpu.pipeline_mode<synchronous>, transform_indices = @transform_22, window_bounds = array<i64: 1, 32>}, {pipeline_mode = #tpu.pipeline_mode<synchronous>, transform_indices = @transform_23, window_bounds = array<i64: 1, 32>}, {pipeline_mode = #tpu.pipeline_mode<synchronous>, transform_indices = @transform_24, window_bounds = array<i64: 1, 32>}, {pipeline_mode = #tpu.pipeline_mode<synchronous>, transform_indices = @transform_25, window_bounds = array<i64: 1, 32>}, {pipeline_mode = #tpu.pipeline_mode<synchronous>, transform_indices = @transform_26, window_bounds = array<i64: 1, 32>}, {pipeline_mode = #tpu.pipeline_mode<synchronous>, transform_indices = @transform_27, window_bounds = array<i64: 1, 32>}, {pipeline_mode = #tpu.pipeline_mode<synchronous>, transform_indices = @transform_28, window_bounds = array<i64: 32, 32>}, {pipeline_mode = #tpu.pipeline_mode<synchronous>, transform_indices = @transform_29, window_bounds = array<i64: 32, 32>}, {pipeline_mode = #tpu.pipeline_mode<synchronous>, transform_indices = @transform_30, window_bounds = array<i64: 1, 32>}, {pipeline_mode = #tpu.pipeline_mode<synchronous>, transform_indices = @transform_31, window_bounds = array<i64: 1, 32>}, {transform_indices = @transform_32, window_bounds = array<i64: 1, 8, 32>}, {transform_indices = @transform_33, window_bounds = array<i64: 1, 8, 32>}, {transform_indices = @transform_34, window_bounds = array<i64: 1, 1, 32>}, {transform_indices = @transform_35, window_bounds = array<i64: 1, 1, 32>}]} {
    %c0 = arith.constant 0 : index
    %c0_0 = arith.constant 0 : index
    %c0_1 = arith.constant 0 : index
    %0 = vector.load %arg1[%c0, %c0_0, %c0_1] : memref<1x8x32xf32, #tpu.memory_space<vmem>>, vector<1x8x32xf32>
    %1 = vector.shape_cast %0 : vector<1x8x32xf32> to vector<8x32xf32>
    %c0_2 = arith.constant 0 : index
    %c0_3 = arith.constant 0 : index
    %c0_4 = arith.constant 0 : index
    %2 = vector.load %arg2[%c0_2, %c0_3, %c0_4] : memref<1x8x32xf32, #tpu.memory_space<vmem>>, vector<1x8x32xf32>
    %3 = vector.shape_cast %2 : vector<1x8x32xf32> to vector<8x32xf32>
    %c0_5 = arith.constant 0 : index
    %c0_6 = arith.constant 0 : index
    %4 = vector.load %arg3[%c0_5, %c0_6] : memref<8x32xf32, #tpu.memory_space<vmem>>, vector<8x32xf32>
    %c0_7 = arith.constant 0 : index
    %c0_8 = arith.constant 0 : index
    %5 = vector.load %arg4[%c0_7, %c0_8] : memref<8x32xf32, #tpu.memory_space<vmem>>, vector<8x32xf32>
    %6 = arith.mulf %1, %4 : vector<8x32xf32>
    %7 = arith.mulf %3, %5 : vector<8x32xf32>
    %8 = arith.subf %6, %7 : vector<8x32xf32>
    %9 = arith.mulf %1, %5 : vector<8x32xf32>
    %10 = arith.mulf %3, %4 : vector<8x32xf32>
    %11 = arith.addf %9, %10 : vector<8x32xf32>
    %c0_9 = arith.constant 0 : index
    %c0_10 = arith.constant 0 : index
    %12 = vector.load %arg5[%c0_9, %c0_10] : memref<32x96xf32, #tpu.memory_space<vmem>>, vector<32x96xf32>
    %c0_11 = arith.constant 0 : index
    %c0_12 = arith.constant 0 : index
    %13 = vector.load %arg6[%c0_11, %c0_12] : memref<32x96xf32, #tpu.memory_space<vmem>>, vector<32x96xf32>
    %14 = arith.truncf %8 : vector<8x32xf32> to vector<8x32xbf16>
    %15 = arith.truncf %11 : vector<8x32xf32> to vector<8x32xbf16>
    %16 = arith.addf %8, %11 : vector<8x32xf32>
    %17 = arith.truncf %16 : vector<8x32xf32> to vector<8x32xbf16>
    %18 = arith.truncf %12 : vector<32x96xf32> to vector<32x96xbf16>
    %19 = arith.truncf %13 : vector<32x96xf32> to vector<32x96xbf16>
    %20 = arith.addf %12, %13 : vector<32x96xf32>
    %21 = arith.truncf %20 : vector<32x96xf32> to vector<32x96xbf16>
    %cst = arith.constant dense<0.000000e+00> : vector<8x96xf32>
    %22 = tpu.matmul %14, %18, %cst {dimension_numbers = #tpu.dot_dimension_numbers<[1], [0], [0], [1], [0, 0, 1, 1], [], []>} : vector<8x32xbf16>, vector<32x96xbf16>, vector<8x96xf32> -> vector<8x96xf32>
    %cst_13 = arith.constant dense<0.000000e+00> : vector<8x96xf32>
    %23 = tpu.matmul %15, %19, %cst_13 {dimension_numbers = #tpu.dot_dimension_numbers<[1], [0], [0], [1], [0, 0, 1, 1], [], []>} : vector<8x32xbf16>, vector<32x96xbf16>, vector<8x96xf32> -> vector<8x96xf32>
    %cst_14 = arith.constant dense<0.000000e+00> : vector<8x96xf32>
    %24 = tpu.matmul %17, %21, %cst_14 {dimension_numbers = #tpu.dot_dimension_numbers<[1], [0], [0], [1], [0, 0, 1, 1], [], []>} : vector<8x32xbf16>, vector<32x96xbf16>, vector<8x96xf32> -> vector<8x96xf32>
    %25 = arith.subf %22, %23 : vector<8x96xf32>
    %26 = arith.subf %24, %22 : vector<8x96xf32>
    %27 = arith.subf %26, %23 : vector<8x96xf32>
    %c0_15 = arith.constant 0 : index
    %c0_16 = arith.constant 0 : index
    %28 = vector.load %arg7[%c0_15, %c0_16] : memref<1x96xf32, #tpu.memory_space<vmem>>, vector<1x96xf32>
    %29 = vector.broadcast %28 : vector<1x96xf32> to vector<8x96xf32>
    %30 = arith.addf %25, %29 : vector<8x96xf32>
    %c0_17 = arith.constant 0 : index
    %c0_18 = arith.constant 0 : index
    %31 = vector.load %arg8[%c0_17, %c0_18] : memref<1x96xf32, #tpu.memory_space<vmem>>, vector<1x96xf32>
    %32 = vector.broadcast %31 : vector<1x96xf32> to vector<8x96xf32>
    %33 = arith.addf %27, %32 : vector<8x96xf32>
    %34 = vector.extract_strided_slice %30 {offsets = [0, 0], sizes = [8, 32], strides = [1, 1]} : vector<8x96xf32> to vector<8x32xf32>
    %cst_19 = arith.constant 0.353553385 : f32
    %35 = vector.broadcast %cst_19 : f32 to vector<8x32xf32>
    %36 = arith.mulf %34, %35 : vector<8x32xf32>
    %37 = vector.extract_strided_slice %33 {offsets = [0, 0], sizes = [8, 32], strides = [1, 1]} : vector<8x96xf32> to vector<8x32xf32>
    %cst_20 = arith.constant 0.353553385 : f32
    %38 = vector.broadcast %cst_20 : f32 to vector<8x32xf32>
    %39 = arith.mulf %37, %38 : vector<8x32xf32>
    %40 = vector.extract_strided_slice %30 {offsets = [0, 32], sizes = [8, 32], strides = [1, 1]} : vector<8x96xf32> to vector<8x32xf32>
    %41 = vector.extract_strided_slice %33 {offsets = [0, 32], sizes = [8, 32], strides = [1, 1]} : vector<8x96xf32> to vector<8x32xf32>
    %42 = vector.extract_strided_slice %30 {offsets = [0, 64], sizes = [8, 32], strides = [1, 1]} : vector<8x96xf32> to vector<8x32xf32>
    %43 = vector.extract_strided_slice %33 {offsets = [0, 64], sizes = [8, 32], strides = [1, 1]} : vector<8x96xf32> to vector<8x32xf32>
    %44 = vector.extract_strided_slice %36 {offsets = [0, 0], sizes = [8, 8], strides = [1, 1]} : vector<8x32xf32> to vector<8x8xf32>
    %45 = arith.truncf %44 : vector<8x8xf32> to vector<8x8xbf16>
    %46 = vector.extract_strided_slice %39 {offsets = [0, 0], sizes = [8, 8], strides = [1, 1]} : vector<8x32xf32> to vector<8x8xf32>
    %47 = arith.truncf %46 : vector<8x8xf32> to vector<8x8xbf16>
    %48 = vector.extract_strided_slice %40 {offsets = [0, 0], sizes = [8, 8], strides = [1, 1]} : vector<8x32xf32> to vector<8x8xf32>
    %49 = arith.truncf %48 : vector<8x8xf32> to vector<8x8xbf16>
    %50 = vector.extract_strided_slice %41 {offsets = [0, 0], sizes = [8, 8], strides = [1, 1]} : vector<8x32xf32> to vector<8x8xf32>
    %51 = arith.truncf %50 : vector<8x8xf32> to vector<8x8xbf16>
    %cst_21 = arith.constant dense<0.000000e+00> : vector<8x8xf32>
    %52 = tpu.matmul %45, %49, %cst_21 {dimension_numbers = #tpu.dot_dimension_numbers<[1], [1], [0], [0], [0, 0, 1, 0], [], []>} : vector<8x8xbf16>, vector<8x8xbf16>, vector<8x8xf32> -> vector<8x8xf32>
    %cst_22 = arith.constant dense<0.000000e+00> : vector<8x8xf32>
    %53 = tpu.matmul %47, %51, %cst_22 {dimension_numbers = #tpu.dot_dimension_numbers<[1], [1], [0], [0], [0, 0, 1, 0], [], []>} : vector<8x8xbf16>, vector<8x8xbf16>, vector<8x8xf32> -> vector<8x8xf32>
    %54 = arith.addf %52, %53 : vector<8x8xf32>
    %cst_23 = arith.constant dense<0xFF800000> : vector<8xf32>
    %55 = vector.multi_reduction <maximumf>, %54, %cst_23 [1] : vector<8x8xf32> to vector<8xf32>
    %56 = vector.shape_cast %55 : vector<8xf32> to vector<8x1xf32>
    %57 = vector.broadcast %56 : vector<8x1xf32> to vector<8x8xf32>
    %58 = arith.subf %54, %57 : vector<8x8xf32>
    %59 = math.exp %58 : vector<8x8xf32>
    %cst_24 = arith.constant dense<0.000000e+00> : vector<8xf32>
    %60 = vector.multi_reduction <add>, %59, %cst_24 [1] : vector<8x8xf32> to vector<8xf32>
    %61 = vector.shape_cast %60 : vector<8xf32> to vector<8x1xf32>
    %62 = tpu.reciprocal %61 {approx = true} : vector<8x1xf32> -> vector<8x1xf32>
    %63 = vector.broadcast %62 : vector<8x1xf32> to vector<8x8xf32>
    %64 = arith.mulf %59, %63 : vector<8x8xf32>
    %65 = arith.truncf %64 : vector<8x8xf32> to vector<8x8xbf16>
    %66 = vector.extract_strided_slice %42 {offsets = [0, 0], sizes = [8, 8], strides = [1, 1]} : vector<8x32xf32> to vector<8x8xf32>
    %67 = arith.truncf %66 : vector<8x8xf32> to vector<8x8xbf16>
    %cst_25 = arith.constant dense<0.000000e+00> : vector<8x8xf32>
    %68 = tpu.matmul %65, %67, %cst_25 {dimension_numbers = #tpu.dot_dimension_numbers<[1], [0], [0], [1], [0, 0, 1, 1], [], []>} : vector<8x8xbf16>, vector<8x8xbf16>, vector<8x8xf32> -> vector<8x8xf32>
    %69 = vector.extract_strided_slice %43 {offsets = [0, 0], sizes = [8, 8], strides = [1, 1]} : vector<8x32xf32> to vector<8x8xf32>
    %70 = arith.truncf %69 : vector<8x8xf32> to vector<8x8xbf16>
    %cst_26 = arith.constant dense<0.000000e+00> : vector<8x8xf32>
    %71 = tpu.matmul %65, %70, %cst_26 {dimension_numbers = #tpu.dot_dimension_numbers<[1], [0], [0], [1], [0, 0, 1, 1], [], []>} : vector<8x8xbf16>, vector<8x8xbf16>, vector<8x8xf32> -> vector<8x8xf32>
    %72 = vector.extract_strided_slice %36 {offsets = [0, 8], sizes = [8, 8], strides = [1, 1]} : vector<8x32xf32> to vector<8x8xf32>
    %73 = arith.truncf %72 : vector<8x8xf32> to vector<8x8xbf16>
    %74 = vector.extract_strided_slice %39 {offsets = [0, 8], sizes = [8, 8], strides = [1, 1]} : vector<8x32xf32> to vector<8x8xf32>
    %75 = arith.truncf %74 : vector<8x8xf32> to vector<8x8xbf16>
    %76 = vector.extract_strided_slice %40 {offsets = [0, 8], sizes = [8, 8], strides = [1, 1]} : vector<8x32xf32> to vector<8x8xf32>
    %77 = arith.truncf %76 : vector<8x8xf32> to vector<8x8xbf16>
    %78 = vector.extract_strided_slice %41 {offsets = [0, 8], sizes = [8, 8], strides = [1, 1]} : vector<8x32xf32> to vector<8x8xf32>
    %79 = arith.truncf %78 : vector<8x8xf32> to vector<8x8xbf16>
    %cst_27 = arith.constant dense<0.000000e+00> : vector<8x8xf32>
    %80 = tpu.matmul %73, %77, %cst_27 {dimension_numbers = #tpu.dot_dimension_numbers<[1], [1], [0], [0], [0, 0, 1, 0], [], []>} : vector<8x8xbf16>, vector<8x8xbf16>, vector<8x8xf32> -> vector<8x8xf32>
    %cst_28 = arith.constant dense<0.000000e+00> : vector<8x8xf32>
    %81 = tpu.matmul %75, %79, %cst_28 {dimension_numbers = #tpu.dot_dimension_numbers<[1], [1], [0], [0], [0, 0, 1, 0], [], []>} : vector<8x8xbf16>, vector<8x8xbf16>, vector<8x8xf32> -> vector<8x8xf32>
    %82 = arith.addf %80, %81 : vector<8x8xf32>
    %cst_29 = arith.constant dense<0xFF800000> : vector<8xf32>
    %83 = vector.multi_reduction <maximumf>, %82, %cst_29 [1] : vector<8x8xf32> to vector<8xf32>
    %84 = vector.shape_cast %83 : vector<8xf32> to vector<8x1xf32>
    %85 = vector.broadcast %84 : vector<8x1xf32> to vector<8x8xf32>
    %86 = arith.subf %82, %85 : vector<8x8xf32>
    %87 = math.exp %86 : vector<8x8xf32>
    %cst_30 = arith.constant dense<0.000000e+00> : vector<8xf32>
    %88 = vector.multi_reduction <add>, %87, %cst_30 [1] : vector<8x8xf32> to vector<8xf32>
    %89 = vector.shape_cast %88 : vector<8xf32> to vector<8x1xf32>
    %90 = tpu.reciprocal %89 {approx = true} : vector<8x1xf32> -> vector<8x1xf32>
    %91 = vector.broadcast %90 : vector<8x1xf32> to vector<8x8xf32>
    %92 = arith.mulf %87, %91 : vector<8x8xf32>
    %93 = arith.truncf %92 : vector<8x8xf32> to vector<8x8xbf16>
    %94 = vector.extract_strided_slice %42 {offsets = [0, 8], sizes = [8, 8], strides = [1, 1]} : vector<8x32xf32> to vector<8x8xf32>
    %95 = arith.truncf %94 : vector<8x8xf32> to vector<8x8xbf16>
    %cst_31 = arith.constant dense<0.000000e+00> : vector<8x8xf32>
    %96 = tpu.matmul %93, %95, %cst_31 {dimension_numbers = #tpu.dot_dimension_numbers<[1], [0], [0], [1], [0, 0, 1, 1], [], []>} : vector<8x8xbf16>, vector<8x8xbf16>, vector<8x8xf32> -> vector<8x8xf32>
    %97 = vector.extract_strided_slice %43 {offsets = [0, 8], sizes = [8, 8], strides = [1, 1]} : vector<8x32xf32> to vector<8x8xf32>
    %98 = arith.truncf %97 : vector<8x8xf32> to vector<8x8xbf16>
    %cst_32 = arith.constant dense<0.000000e+00> : vector<8x8xf32>
    %99 = tpu.matmul %93, %98, %cst_32 {dimension_numbers = #tpu.dot_dimension_numbers<[1], [0], [0], [1], [0, 0, 1, 1], [], []>} : vector<8x8xbf16>, vector<8x8xbf16>, vector<8x8xf32> -> vector<8x8xf32>
    %100 = vector.extract_strided_slice %36 {offsets = [0, 16], sizes = [8, 8], strides = [1, 1]} : vector<8x32xf32> to vector<8x8xf32>
    %101 = arith.truncf %100 : vector<8x8xf32> to vector<8x8xbf16>
    %102 = vector.extract_strided_slice %39 {offsets = [0, 16], sizes = [8, 8], strides = [1, 1]} : vector<8x32xf32> to vector<8x8xf32>
    %103 = arith.truncf %102 : vector<8x8xf32> to vector<8x8xbf16>
    %104 = vector.extract_strided_slice %40 {offsets = [0, 16], sizes = [8, 8], strides = [1, 1]} : vector<8x32xf32> to vector<8x8xf32>
    %105 = arith.truncf %104 : vector<8x8xf32> to vector<8x8xbf16>
    %106 = vector.extract_strided_slice %41 {offsets = [0, 16], sizes = [8, 8], strides = [1, 1]} : vector<8x32xf32> to vector<8x8xf32>
    %107 = arith.truncf %106 : vector<8x8xf32> to vector<8x8xbf16>
    %cst_33 = arith.constant dense<0.000000e+00> : vector<8x8xf32>
    %108 = tpu.matmul %101, %105, %cst_33 {dimension_numbers = #tpu.dot_dimension_numbers<[1], [1], [0], [0], [0, 0, 1, 0], [], []>} : vector<8x8xbf16>, vector<8x8xbf16>, vector<8x8xf32> -> vector<8x8xf32>
    %cst_34 = arith.constant dense<0.000000e+00> : vector<8x8xf32>
    %109 = tpu.matmul %103, %107, %cst_34 {dimension_numbers = #tpu.dot_dimension_numbers<[1], [1], [0], [0], [0, 0, 1, 0], [], []>} : vector<8x8xbf16>, vector<8x8xbf16>, vector<8x8xf32> -> vector<8x8xf32>
    %110 = arith.addf %108, %109 : vector<8x8xf32>
    %cst_35 = arith.constant dense<0xFF800000> : vector<8xf32>
    %111 = vector.multi_reduction <maximumf>, %110, %cst_35 [1] : vector<8x8xf32> to vector<8xf32>
    %112 = vector.shape_cast %111 : vector<8xf32> to vector<8x1xf32>
    %113 = vector.broadcast %112 : vector<8x1xf32> to vector<8x8xf32>
    %114 = arith.subf %110, %113 : vector<8x8xf32>
    %115 = math.exp %114 : vector<8x8xf32>
    %cst_36 = arith.constant dense<0.000000e+00> : vector<8xf32>
    %116 = vector.multi_reduction <add>, %115, %cst_36 [1] : vector<8x8xf32> to vector<8xf32>
    %117 = vector.shape_cast %116 : vector<8xf32> to vector<8x1xf32>
    %118 = tpu.reciprocal %117 {approx = true} : vector<8x1xf32> -> vector<8x1xf32>
    %119 = vector.broadcast %118 : vector<8x1xf32> to vector<8x8xf32>
    %120 = arith.mulf %115, %119 : vector<8x8xf32>
    %121 = arith.truncf %120 : vector<8x8xf32> to vector<8x8xbf16>
    %122 = vector.extract_strided_slice %42 {offsets = [0, 16], sizes = [8, 8], strides = [1, 1]} : vector<8x32xf32> to vector<8x8xf32>
    %123 = arith.truncf %122 : vector<8x8xf32> to vector<8x8xbf16>
    %cst_37 = arith.constant dense<0.000000e+00> : vector<8x8xf32>
    %124 = tpu.matmul %121, %123, %cst_37 {dimension_numbers = #tpu.dot_dimension_numbers<[1], [0], [0], [1], [0, 0, 1, 1], [], []>} : vector<8x8xbf16>, vector<8x8xbf16>, vector<8x8xf32> -> vector<8x8xf32>
    %125 = vector.extract_strided_slice %43 {offsets = [0, 16], sizes = [8, 8], strides = [1, 1]} : vector<8x32xf32> to vector<8x8xf32>
    %126 = arith.truncf %125 : vector<8x8xf32> to vector<8x8xbf16>
    %cst_38 = arith.constant dense<0.000000e+00> : vector<8x8xf32>
    %127 = tpu.matmul %121, %126, %cst_38 {dimension_numbers = #tpu.dot_dimension_numbers<[1], [0], [0], [1], [0, 0, 1, 1], [], []>} : vector<8x8xbf16>, vector<8x8xbf16>, vector<8x8xf32> -> vector<8x8xf32>
    %128 = vector.extract_strided_slice %36 {offsets = [0, 24], sizes = [8, 8], strides = [1, 1]} : vector<8x32xf32> to vector<8x8xf32>
    %129 = arith.truncf %128 : vector<8x8xf32> to vector<8x8xbf16>
    %130 = vector.extract_strided_slice %39 {offsets = [0, 24], sizes = [8, 8], strides = [1, 1]} : vector<8x32xf32> to vector<8x8xf32>
    %131 = arith.truncf %130 : vector<8x8xf32> to vector<8x8xbf16>
    %132 = vector.extract_strided_slice %40 {offsets = [0, 24], sizes = [8, 8], strides = [1, 1]} : vector<8x32xf32> to vector<8x8xf32>
    %133 = arith.truncf %132 : vector<8x8xf32> to vector<8x8xbf16>
    %134 = vector.extract_strided_slice %41 {offsets = [0, 24], sizes = [8, 8], strides = [1, 1]} : vector<8x32xf32> to vector<8x8xf32>
    %135 = arith.truncf %134 : vector<8x8xf32> to vector<8x8xbf16>
    %cst_39 = arith.constant dense<0.000000e+00> : vector<8x8xf32>
    %136 = tpu.matmul %129, %133, %cst_39 {dimension_numbers = #tpu.dot_dimension_numbers<[1], [1], [0], [0], [0, 0, 1, 0], [], []>} : vector<8x8xbf16>, vector<8x8xbf16>, vector<8x8xf32> -> vector<8x8xf32>
    %cst_40 = arith.constant dense<0.000000e+00> : vector<8x8xf32>
    %137 = tpu.matmul %131, %135, %cst_40 {dimension_numbers = #tpu.dot_dimension_numbers<[1], [1], [0], [0], [0, 0, 1, 0], [], []>} : vector<8x8xbf16>, vector<8x8xbf16>, vector<8x8xf32> -> vector<8x8xf32>
    %138 = arith.addf %136, %137 : vector<8x8xf32>
    %cst_41 = arith.constant dense<0xFF800000> : vector<8xf32>
    %139 = vector.multi_reduction <maximumf>, %138, %cst_41 [1] : vector<8x8xf32> to vector<8xf32>
    %140 = vector.shape_cast %139 : vector<8xf32> to vector<8x1xf32>
    %141 = vector.broadcast %140 : vector<8x1xf32> to vector<8x8xf32>
    %142 = arith.subf %138, %141 : vector<8x8xf32>
    %143 = math.exp %142 : vector<8x8xf32>
    %cst_42 = arith.constant dense<0.000000e+00> : vector<8xf32>
    %144 = vector.multi_reduction <add>, %143, %cst_42 [1] : vector<8x8xf32> to vector<8xf32>
    %145 = vector.shape_cast %144 : vector<8xf32> to vector<8x1xf32>
    %146 = tpu.reciprocal %145 {approx = true} : vector<8x1xf32> -> vector<8x1xf32>
    %147 = vector.broadcast %146 : vector<8x1xf32> to vector<8x8xf32>
    %148 = arith.mulf %143, %147 : vector<8x8xf32>
    %149 = arith.truncf %148 : vector<8x8xf32> to vector<8x8xbf16>
    %150 = vector.extract_strided_slice %42 {offsets = [0, 24], sizes = [8, 8], strides = [1, 1]} : vector<8x32xf32> to vector<8x8xf32>
    %151 = arith.truncf %150 : vector<8x8xf32> to vector<8x8xbf16>
    %cst_43 = arith.constant dense<0.000000e+00> : vector<8x8xf32>
    %152 = tpu.matmul %149, %151, %cst_43 {dimension_numbers = #tpu.dot_dimension_numbers<[1], [0], [0], [1], [0, 0, 1, 1], [], []>} : vector<8x8xbf16>, vector<8x8xbf16>, vector<8x8xf32> -> vector<8x8xf32>
    %153 = vector.extract_strided_slice %43 {offsets = [0, 24], sizes = [8, 8], strides = [1, 1]} : vector<8x32xf32> to vector<8x8xf32>
    %154 = arith.truncf %153 : vector<8x8xf32> to vector<8x8xbf16>
    %cst_44 = arith.constant dense<0.000000e+00> : vector<8x8xf32>
    %155 = tpu.matmul %149, %154, %cst_44 {dimension_numbers = #tpu.dot_dimension_numbers<[1], [0], [0], [1], [0, 0, 1, 1], [], []>} : vector<8x8xbf16>, vector<8x8xbf16>, vector<8x8xf32> -> vector<8x8xf32>
    %156 = tpu.concatenate %68, %96, %124, %152 in 1 : vector<8x8xf32>, vector<8x8xf32>, vector<8x8xf32>, vector<8x8xf32> -> vector<8x32xf32>
    %157 = tpu.concatenate %71, %99, %127, %155 in 1 : vector<8x8xf32>, vector<8x8xf32>, vector<8x8xf32>, vector<8x8xf32> -> vector<8x32xf32>
    %c0_45 = arith.constant 0 : index
    %c0_46 = arith.constant 0 : index
    %158 = vector.load %arg9[%c0_45, %c0_46] : memref<32x32xf32, #tpu.memory_space<vmem>>, vector<32x32xf32>
    %c0_47 = arith.constant 0 : index
    %c0_48 = arith.constant 0 : index
    %159 = vector.load %arg10[%c0_47, %c0_48] : memref<32x32xf32, #tpu.memory_space<vmem>>, vector<32x32xf32>
    %160 = arith.truncf %156 : vector<8x32xf32> to vector<8x32xbf16>
    %161 = arith.truncf %157 : vector<8x32xf32> to vector<8x32xbf16>
    %162 = arith.addf %156, %157 : vector<8x32xf32>
    %163 = arith.truncf %162 : vector<8x32xf32> to vector<8x32xbf16>
    %164 = arith.truncf %158 : vector<32x32xf32> to vector<32x32xbf16>
    %165 = arith.truncf %159 : vector<32x32xf32> to vector<32x32xbf16>
    %166 = arith.addf %158, %159 : vector<32x32xf32>
    %167 = arith.truncf %166 : vector<32x32xf32> to vector<32x32xbf16>
    %cst_49 = arith.constant dense<0.000000e+00> : vector<8x32xf32>
    %168 = tpu.matmul %160, %164, %cst_49 {dimension_numbers = #tpu.dot_dimension_numbers<[1], [0], [0], [1], [0, 0, 1, 1], [], []>} : vector<8x32xbf16>, vector<32x32xbf16>, vector<8x32xf32> -> vector<8x32xf32>
    %cst_50 = arith.constant dense<0.000000e+00> : vector<8x32xf32>
    %169 = tpu.matmul %161, %165, %cst_50 {dimension_numbers = #tpu.dot_dimension_numbers<[1], [0], [0], [1], [0, 0, 1, 1], [], []>} : vector<8x32xbf16>, vector<32x32xbf16>, vector<8x32xf32> -> vector<8x32xf32>
    %cst_51 = arith.constant dense<0.000000e+00> : vector<8x32xf32>
    %170 = tpu.matmul %163, %167, %cst_51 {dimension_numbers = #tpu.dot_dimension_numbers<[1], [0], [0], [1], [0, 0, 1, 1], [], []>} : vector<8x32xbf16>, vector<32x32xbf16>, vector<8x32xf32> -> vector<8x32xf32>
    %171 = arith.subf %168, %169 : vector<8x32xf32>
    %172 = arith.subf %170, %168 : vector<8x32xf32>
    %173 = arith.subf %172, %169 : vector<8x32xf32>
    %c0_52 = arith.constant 0 : index
    %c0_53 = arith.constant 0 : index
    %174 = vector.load %arg11[%c0_52, %c0_53] : memref<1x32xf32, #tpu.memory_space<vmem>>, vector<1x32xf32>
    %175 = vector.broadcast %174 : vector<1x32xf32> to vector<8x32xf32>
    %176 = arith.addf %171, %175 : vector<8x32xf32>
    %c0_54 = arith.constant 0 : index
    %c0_55 = arith.constant 0 : index
    %177 = vector.load %arg12[%c0_54, %c0_55] : memref<1x32xf32, #tpu.memory_space<vmem>>, vector<1x32xf32>
    %178 = vector.broadcast %177 : vector<1x32xf32> to vector<8x32xf32>
    %179 = arith.addf %173, %178 : vector<8x32xf32>
    %180 = arith.addf %8, %176 : vector<8x32xf32>
    %c0_56 = arith.constant 0 : index
    %c0_57 = arith.constant 0 : index
    %181 = vector.load %arg13[%c0_56, %c0_57] : memref<1x32xf32, #tpu.memory_space<vmem>>, vector<1x32xf32>
    %c0_58 = arith.constant 0 : index
    %c0_59 = arith.constant 0 : index
    %182 = vector.load %arg14[%c0_58, %c0_59] : memref<1x32xf32, #tpu.memory_space<vmem>>, vector<1x32xf32>
    %cst_60 = arith.constant dense<0.000000e+00> : vector<8xf32>
    %183 = vector.multi_reduction <add>, %180, %cst_60 [1] : vector<8x32xf32> to vector<8xf32>
    %184 = vector.shape_cast %183 : vector<8xf32> to vector<8x1xf32>
    %cst_61 = arith.constant 3.200000e+01 : f32
    %185 = vector.broadcast %cst_61 : f32 to vector<8x1xf32>
    %186 = arith.divf %184, %185 : vector<8x1xf32>
    %187 = vector.broadcast %186 : vector<8x1xf32> to vector<8x32xf32>
    %188 = arith.subf %180, %187 : vector<8x32xf32>
    %189 = arith.mulf %188, %188 : vector<8x32xf32>
    %cst_62 = arith.constant dense<0.000000e+00> : vector<8xf32>
    %190 = vector.multi_reduction <add>, %189, %cst_62 [1] : vector<8x32xf32> to vector<8xf32>
    %191 = vector.shape_cast %190 : vector<8xf32> to vector<8x1xf32>
    %cst_63 = arith.constant 3.200000e+01 : f32
    %192 = vector.broadcast %cst_63 : f32 to vector<8x1xf32>
    %193 = arith.divf %191, %192 : vector<8x1xf32>
    %cst_64 = arith.constant 9.99999974E-6 : f32
    %194 = vector.broadcast %cst_64 : f32 to vector<8x1xf32>
    %195 = arith.addf %193, %194 : vector<8x1xf32>
    %196 = math.rsqrt %195 : vector<8x1xf32>
    %197 = vector.broadcast %196 : vector<8x1xf32> to vector<8x32xf32>
    %198 = arith.mulf %188, %197 : vector<8x32xf32>
    %199 = vector.broadcast %181 : vector<1x32xf32> to vector<8x32xf32>
    %200 = arith.mulf %198, %199 : vector<8x32xf32>
    %201 = vector.broadcast %182 : vector<1x32xf32> to vector<8x32xf32>
    %202 = arith.addf %200, %201 : vector<8x32xf32>
    %203 = arith.addf %11, %179 : vector<8x32xf32>
    %c0_65 = arith.constant 0 : index
    %c0_66 = arith.constant 0 : index
    %204 = vector.load %arg15[%c0_65, %c0_66] : memref<1x32xf32, #tpu.memory_space<vmem>>, vector<1x32xf32>
    %c0_67 = arith.constant 0 : index
    %c0_68 = arith.constant 0 : index
    %205 = vector.load %arg16[%c0_67, %c0_68] : memref<1x32xf32, #tpu.memory_space<vmem>>, vector<1x32xf32>
    %cst_69 = arith.constant dense<0.000000e+00> : vector<8xf32>
    %206 = vector.multi_reduction <add>, %203, %cst_69 [1] : vector<8x32xf32> to vector<8xf32>
    %207 = vector.shape_cast %206 : vector<8xf32> to vector<8x1xf32>
    %cst_70 = arith.constant 3.200000e+01 : f32
    %208 = vector.broadcast %cst_70 : f32 to vector<8x1xf32>
    %209 = arith.divf %207, %208 : vector<8x1xf32>
    %210 = vector.broadcast %209 : vector<8x1xf32> to vector<8x32xf32>
    %211 = arith.subf %203, %210 : vector<8x32xf32>
    %212 = arith.mulf %211, %211 : vector<8x32xf32>
    %cst_71 = arith.constant dense<0.000000e+00> : vector<8xf32>
    %213 = vector.multi_reduction <add>, %212, %cst_71 [1] : vector<8x32xf32> to vector<8xf32>
    %214 = vector.shape_cast %213 : vector<8xf32> to vector<8x1xf32>
    %cst_72 = arith.constant 3.200000e+01 : f32
    %215 = vector.broadcast %cst_72 : f32 to vector<8x1xf32>
    %216 = arith.divf %214, %215 : vector<8x1xf32>
    %cst_73 = arith.constant 9.99999974E-6 : f32
    %217 = vector.broadcast %cst_73 : f32 to vector<8x1xf32>
    %218 = arith.addf %216, %217 : vector<8x1xf32>
    %219 = math.rsqrt %218 : vector<8x1xf32>
    %220 = vector.broadcast %219 : vector<8x1xf32> to vector<8x32xf32>
    %221 = arith.mulf %211, %220 : vector<8x32xf32>
    %222 = vector.broadcast %204 : vector<1x32xf32> to vector<8x32xf32>
    %223 = arith.mulf %221, %222 : vector<8x32xf32>
    %224 = vector.broadcast %205 : vector<1x32xf32> to vector<8x32xf32>
    %225 = arith.addf %223, %224 : vector<8x32xf32>
    %c0_74 = arith.constant 0 : index
    %c0_75 = arith.constant 0 : index
    %226 = vector.load %arg17[%c0_74, %c0_75] : memref<32x64xf32, #tpu.memory_space<vmem>>, vector<32x64xf32>
    %c0_76 = arith.constant 0 : index
    %c0_77 = arith.constant 0 : index
    %227 = vector.load %arg18[%c0_76, %c0_77] : memref<32x64xf32, #tpu.memory_space<vmem>>, vector<32x64xf32>
    %228 = arith.truncf %202 : vector<8x32xf32> to vector<8x32xbf16>
    %229 = arith.truncf %225 : vector<8x32xf32> to vector<8x32xbf16>
    %230 = arith.addf %202, %225 : vector<8x32xf32>
    %231 = arith.truncf %230 : vector<8x32xf32> to vector<8x32xbf16>
    %232 = arith.truncf %226 : vector<32x64xf32> to vector<32x64xbf16>
    %233 = arith.truncf %227 : vector<32x64xf32> to vector<32x64xbf16>
    %234 = arith.addf %226, %227 : vector<32x64xf32>
    %235 = arith.truncf %234 : vector<32x64xf32> to vector<32x64xbf16>
    %cst_78 = arith.constant dense<0.000000e+00> : vector<8x64xf32>
    %236 = tpu.matmul %228, %232, %cst_78 {dimension_numbers = #tpu.dot_dimension_numbers<[1], [0], [0], [1], [0, 0, 1, 1], [], []>} : vector<8x32xbf16>, vector<32x64xbf16>, vector<8x64xf32> -> vector<8x64xf32>
    %cst_79 = arith.constant dense<0.000000e+00> : vector<8x64xf32>
    %237 = tpu.matmul %229, %233, %cst_79 {dimension_numbers = #tpu.dot_dimension_numbers<[1], [0], [0], [1], [0, 0, 1, 1], [], []>} : vector<8x32xbf16>, vector<32x64xbf16>, vector<8x64xf32> -> vector<8x64xf32>
    %cst_80 = arith.constant dense<0.000000e+00> : vector<8x64xf32>
    %238 = tpu.matmul %231, %235, %cst_80 {dimension_numbers = #tpu.dot_dimension_numbers<[1], [0], [0], [1], [0, 0, 1, 1], [], []>} : vector<8x32xbf16>, vector<32x64xbf16>, vector<8x64xf32> -> vector<8x64xf32>
    %239 = arith.subf %236, %237 : vector<8x64xf32>
    %240 = arith.subf %238, %236 : vector<8x64xf32>
    %241 = arith.subf %240, %237 : vector<8x64xf32>
    %c0_81 = arith.constant 0 : index
    %c0_82 = arith.constant 0 : index
    %242 = vector.load %arg19[%c0_81, %c0_82] : memref<1x64xf32, #tpu.memory_space<vmem>>, vector<1x64xf32>
    %243 = vector.broadcast %242 : vector<1x64xf32> to vector<8x64xf32>
    %244 = arith.addf %239, %243 : vector<8x64xf32>
    %cst_83 = arith.constant 5.000000e-01 : f32
    %245 = vector.broadcast %cst_83 : f32 to vector<8x64xf32>
    %246 = arith.mulf %245, %244 : vector<8x64xf32>
    %cst_84 = arith.constant 0.707106769 : f32
    %247 = vector.broadcast %cst_84 : f32 to vector<8x64xf32>
    %248 = arith.mulf %244, %247 : vector<8x64xf32>
    %249 = math.absf %248 : vector<8x64xf32>
    %cst_85 = arith.constant 0.327591091 : f32
    %250 = vector.broadcast %cst_85 : f32 to vector<8x64xf32>
    %251 = arith.mulf %250, %249 : vector<8x64xf32>
    %cst_86 = arith.constant 1.000000e+00 : f32
    %252 = vector.broadcast %cst_86 : f32 to vector<8x64xf32>
    %253 = arith.addf %252, %251 : vector<8x64xf32>
    %cst_87 = arith.constant 1.000000e+00 : f32
    %254 = vector.broadcast %cst_87 : f32 to vector<8x64xf32>
    %255 = arith.divf %254, %253 : vector<8x64xf32>
    %cst_88 = arith.constant 1.06140542 : f32
    %256 = vector.broadcast %cst_88 : f32 to vector<8x64xf32>
    %257 = arith.mulf %256, %255 : vector<8x64xf32>
    %cst_89 = arith.constant -1.45315206 : f32
    %258 = vector.broadcast %cst_89 : f32 to vector<8x64xf32>
    %259 = arith.addf %257, %258 : vector<8x64xf32>
    %260 = arith.mulf %259, %255 : vector<8x64xf32>
    %cst_90 = arith.constant 1.42141378 : f32
    %261 = vector.broadcast %cst_90 : f32 to vector<8x64xf32>
    %262 = arith.addf %260, %261 : vector<8x64xf32>
    %263 = arith.mulf %262, %255 : vector<8x64xf32>
    %cst_91 = arith.constant -0.284496725 : f32
    %264 = vector.broadcast %cst_91 : f32 to vector<8x64xf32>
    %265 = arith.addf %263, %264 : vector<8x64xf32>
    %266 = arith.mulf %265, %255 : vector<8x64xf32>
    %cst_92 = arith.constant 0.254829586 : f32
    %267 = vector.broadcast %cst_92 : f32 to vector<8x64xf32>
    %268 = arith.addf %266, %267 : vector<8x64xf32>
    %269 = arith.mulf %268, %255 : vector<8x64xf32>
    %cst_93 = arith.constant 0.000000e+00 : f32
    %270 = vector.broadcast %cst_93 : f32 to vector<8x64xf32>
    %271 = arith.subf %270, %249 : vector<8x64xf32>
    %272 = arith.mulf %271, %249 : vector<8x64xf32>
    %273 = math.exp %272 : vector<8x64xf32>
    %274 = arith.mulf %269, %273 : vector<8x64xf32>
    %cst_94 = arith.constant 1.000000e+00 : f32
    %275 = vector.broadcast %cst_94 : f32 to vector<8x64xf32>
    %276 = arith.subf %275, %274 : vector<8x64xf32>
    %cst_95 = arith.constant 0.000000e+00 : f32
    %277 = vector.broadcast %cst_95 : f32 to vector<8x64xf32>
    %278 = arith.cmpf oge, %248, %277 : vector<8x64xf32>
    %cst_96 = arith.constant 0.000000e+00 : f32
    %279 = vector.broadcast %cst_96 : f32 to vector<8x64xf32>
    %280 = arith.subf %279, %276 : vector<8x64xf32>
    %281 = arith.select %278, %276, %280 : vector<8x64xi1>, vector<8x64xf32>
    %cst_97 = arith.constant 1.000000e+00 : f32
    %282 = vector.broadcast %cst_97 : f32 to vector<8x64xf32>
    %283 = arith.addf %282, %281 : vector<8x64xf32>
    %284 = arith.mulf %246, %283 : vector<8x64xf32>
    %c0_98 = arith.constant 0 : index
    %c0_99 = arith.constant 0 : index
    %285 = vector.load %arg20[%c0_98, %c0_99] : memref<1x64xf32, #tpu.memory_space<vmem>>, vector<1x64xf32>
    %286 = vector.broadcast %285 : vector<1x64xf32> to vector<8x64xf32>
    %287 = arith.addf %241, %286 : vector<8x64xf32>
    %c0_100 = arith.constant 0 : index
    %c0_101 = arith.constant 0 : index
    %288 = vector.load %arg21[%c0_100, %c0_101] : memref<64x32xf32, #tpu.memory_space<vmem>>, vector<64x32xf32>
    %c0_102 = arith.constant 0 : index
    %c0_103 = arith.constant 0 : index
    %289 = vector.load %arg22[%c0_102, %c0_103] : memref<64x32xf32, #tpu.memory_space<vmem>>, vector<64x32xf32>
    %290 = arith.truncf %284 : vector<8x64xf32> to vector<8x64xbf16>
    %291 = arith.truncf %287 : vector<8x64xf32> to vector<8x64xbf16>
    %292 = arith.addf %284, %287 : vector<8x64xf32>
    %293 = arith.truncf %292 : vector<8x64xf32> to vector<8x64xbf16>
    %294 = arith.truncf %288 : vector<64x32xf32> to vector<64x32xbf16>
    %295 = arith.truncf %289 : vector<64x32xf32> to vector<64x32xbf16>
    %296 = arith.addf %288, %289 : vector<64x32xf32>
    %297 = arith.truncf %296 : vector<64x32xf32> to vector<64x32xbf16>
    %cst_104 = arith.constant dense<0.000000e+00> : vector<8x32xf32>
    %298 = tpu.matmul %290, %294, %cst_104 {dimension_numbers = #tpu.dot_dimension_numbers<[1], [0], [0], [1], [0, 0, 1, 1], [], []>} : vector<8x64xbf16>, vector<64x32xbf16>, vector<8x32xf32> -> vector<8x32xf32>
    %cst_105 = arith.constant dense<0.000000e+00> : vector<8x32xf32>
    %299 = tpu.matmul %291, %295, %cst_105 {dimension_numbers = #tpu.dot_dimension_numbers<[1], [0], [0], [1], [0, 0, 1, 1], [], []>} : vector<8x64xbf16>, vector<64x32xbf16>, vector<8x32xf32> -> vector<8x32xf32>
    %cst_106 = arith.constant dense<0.000000e+00> : vector<8x32xf32>
    %300 = tpu.matmul %293, %297, %cst_106 {dimension_numbers = #tpu.dot_dimension_numbers<[1], [0], [0], [1], [0, 0, 1, 1], [], []>} : vector<8x64xbf16>, vector<64x32xbf16>, vector<8x32xf32> -> vector<8x32xf32>
    %301 = arith.subf %298, %299 : vector<8x32xf32>
    %302 = arith.subf %300, %298 : vector<8x32xf32>
    %303 = arith.subf %302, %299 : vector<8x32xf32>
    %c0_107 = arith.constant 0 : index
    %c0_108 = arith.constant 0 : index
    %304 = vector.load %arg23[%c0_107, %c0_108] : memref<1x32xf32, #tpu.memory_space<vmem>>, vector<1x32xf32>
    %305 = vector.broadcast %304 : vector<1x32xf32> to vector<8x32xf32>
    %306 = arith.addf %301, %305 : vector<8x32xf32>
    %c0_109 = arith.constant 0 : index
    %c0_110 = arith.constant 0 : index
    %307 = vector.load %arg24[%c0_109, %c0_110] : memref<1x32xf32, #tpu.memory_space<vmem>>, vector<1x32xf32>
    %308 = vector.broadcast %307 : vector<1x32xf32> to vector<8x32xf32>
    %309 = arith.addf %303, %308 : vector<8x32xf32>
    %310 = arith.addf %202, %306 : vector<8x32xf32>
    %c0_111 = arith.constant 0 : index
    %c0_112 = arith.constant 0 : index
    %311 = vector.load %arg25[%c0_111, %c0_112] : memref<1x32xf32, #tpu.memory_space<vmem>>, vector<1x32xf32>
    %c0_113 = arith.constant 0 : index
    %c0_114 = arith.constant 0 : index
    %312 = vector.load %arg26[%c0_113, %c0_114] : memref<1x32xf32, #tpu.memory_space<vmem>>, vector<1x32xf32>
    %cst_115 = arith.constant dense<0.000000e+00> : vector<8xf32>
    %313 = vector.multi_reduction <add>, %310, %cst_115 [1] : vector<8x32xf32> to vector<8xf32>
    %314 = vector.shape_cast %313 : vector<8xf32> to vector<8x1xf32>
    %cst_116 = arith.constant 3.200000e+01 : f32
    %315 = vector.broadcast %cst_116 : f32 to vector<8x1xf32>
    %316 = arith.divf %314, %315 : vector<8x1xf32>
    %317 = vector.broadcast %316 : vector<8x1xf32> to vector<8x32xf32>
    %318 = arith.subf %310, %317 : vector<8x32xf32>
    %319 = arith.mulf %318, %318 : vector<8x32xf32>
    %cst_117 = arith.constant dense<0.000000e+00> : vector<8xf32>
    %320 = vector.multi_reduction <add>, %319, %cst_117 [1] : vector<8x32xf32> to vector<8xf32>
    %321 = vector.shape_cast %320 : vector<8xf32> to vector<8x1xf32>
    %cst_118 = arith.constant 3.200000e+01 : f32
    %322 = vector.broadcast %cst_118 : f32 to vector<8x1xf32>
    %323 = arith.divf %321, %322 : vector<8x1xf32>
    %cst_119 = arith.constant 9.99999974E-6 : f32
    %324 = vector.broadcast %cst_119 : f32 to vector<8x1xf32>
    %325 = arith.addf %323, %324 : vector<8x1xf32>
    %326 = math.rsqrt %325 : vector<8x1xf32>
    %327 = vector.broadcast %326 : vector<8x1xf32> to vector<8x32xf32>
    %328 = arith.mulf %318, %327 : vector<8x32xf32>
    %329 = vector.broadcast %311 : vector<1x32xf32> to vector<8x32xf32>
    %330 = arith.mulf %328, %329 : vector<8x32xf32>
    %331 = vector.broadcast %312 : vector<1x32xf32> to vector<8x32xf32>
    %332 = arith.addf %330, %331 : vector<8x32xf32>
    %333 = arith.addf %225, %309 : vector<8x32xf32>
    %c0_120 = arith.constant 0 : index
    %c0_121 = arith.constant 0 : index
    %334 = vector.load %arg27[%c0_120, %c0_121] : memref<1x32xf32, #tpu.memory_space<vmem>>, vector<1x32xf32>
    %c0_122 = arith.constant 0 : index
    %c0_123 = arith.constant 0 : index
    %335 = vector.load %arg28[%c0_122, %c0_123] : memref<1x32xf32, #tpu.memory_space<vmem>>, vector<1x32xf32>
    %cst_124 = arith.constant dense<0.000000e+00> : vector<8xf32>
    %336 = vector.multi_reduction <add>, %333, %cst_124 [1] : vector<8x32xf32> to vector<8xf32>
    %337 = vector.shape_cast %336 : vector<8xf32> to vector<8x1xf32>
    %cst_125 = arith.constant 3.200000e+01 : f32
    %338 = vector.broadcast %cst_125 : f32 to vector<8x1xf32>
    %339 = arith.divf %337, %338 : vector<8x1xf32>
    %340 = vector.broadcast %339 : vector<8x1xf32> to vector<8x32xf32>
    %341 = arith.subf %333, %340 : vector<8x32xf32>
    %342 = arith.mulf %341, %341 : vector<8x32xf32>
    %cst_126 = arith.constant dense<0.000000e+00> : vector<8xf32>
    %343 = vector.multi_reduction <add>, %342, %cst_126 [1] : vector<8x32xf32> to vector<8xf32>
    %344 = vector.shape_cast %343 : vector<8xf32> to vector<8x1xf32>
    %cst_127 = arith.constant 3.200000e+01 : f32
    %345 = vector.broadcast %cst_127 : f32 to vector<8x1xf32>
    %346 = arith.divf %344, %345 : vector<8x1xf32>
    %cst_128 = arith.constant 9.99999974E-6 : f32
    %347 = vector.broadcast %cst_128 : f32 to vector<8x1xf32>
    %348 = arith.addf %346, %347 : vector<8x1xf32>
    %349 = math.rsqrt %348 : vector<8x1xf32>
    %350 = vector.broadcast %349 : vector<8x1xf32> to vector<8x32xf32>
    %351 = arith.mulf %341, %350 : vector<8x32xf32>
    %352 = vector.broadcast %334 : vector<1x32xf32> to vector<8x32xf32>
    %353 = arith.mulf %351, %352 : vector<8x32xf32>
    %354 = vector.broadcast %335 : vector<1x32xf32> to vector<8x32xf32>
    %355 = arith.addf %353, %354 : vector<8x32xf32>
    %c0_129 = arith.constant 0 : index
    %c0_130 = arith.constant 0 : index
    %c0_131 = arith.constant 0 : index
    %356 = vector.load %arg33[%c0_129, %c0_130, %c0_131] : memref<1x8x32xf32, #tpu.memory_space<vmem>>, vector<1x8x32xf32>
    %357 = vector.shape_cast %356 : vector<1x8x32xf32> to vector<8x32xf32>
    %358 = vector.shape_cast %332 : vector<8x32xf32> to vector<1x8x32xf32>
    tpu.vector_store %arg33[%c0_129, %c0_130, %c0_131], %358 {strides = array<i32>} : memref<1x8x32xf32, #tpu.memory_space<vmem>>, vector<1x8x32xf32>,
    %c0_132 = arith.constant 0 : index
    %c0_133 = arith.constant 0 : index
    %c0_134 = arith.constant 0 : index
    %359 = vector.load %arg34[%c0_132, %c0_133, %c0_134] : memref<1x8x32xf32, #tpu.memory_space<vmem>>, vector<1x8x32xf32>
    %360 = vector.shape_cast %359 : vector<1x8x32xf32> to vector<8x32xf32>
    %361 = vector.shape_cast %355 : vector<8x32xf32> to vector<1x8x32xf32>
    tpu.vector_store %arg34[%c0_132, %c0_133, %c0_134], %361 {strides = array<i32>} : memref<1x8x32xf32, #tpu.memory_space<vmem>>, vector<1x8x32xf32>,
    %362 = vector.extract_strided_slice %332 {offsets = [7, 0], sizes = [1, 32], strides = [1, 1]} : vector<8x32xf32> to vector<1x32xf32>
    %363 = vector.extract_strided_slice %355 {offsets = [7, 0], sizes = [1, 32], strides = [1, 1]} : vector<8x32xf32> to vector<1x32xf32>
    %c0_135 = arith.constant 0 : index
    %c0_136 = arith.constant 0 : index
    %364 = vector.load %arg29[%c0_135, %c0_136] : memref<32x32xf32, #tpu.memory_space<vmem>>, vector<32x32xf32>
    %c0_137 = arith.constant 0 : index
    %c0_138 = arith.constant 0 : index
    %365 = vector.load %arg30[%c0_137, %c0_138] : memref<32x32xf32, #tpu.memory_space<vmem>>, vector<32x32xf32>
    %366 = arith.truncf %362 : vector<1x32xf32> to vector<1x32xbf16>
    %367 = arith.truncf %363 : vector<1x32xf32> to vector<1x32xbf16>
    %368 = arith.addf %362, %363 : vector<1x32xf32>
    %369 = arith.truncf %368 : vector<1x32xf32> to vector<1x32xbf16>
    %370 = arith.truncf %364 : vector<32x32xf32> to vector<32x32xbf16>
    %371 = arith.truncf %365 : vector<32x32xf32> to vector<32x32xbf16>
    %372 = arith.addf %364, %365 : vector<32x32xf32>
    %373 = arith.truncf %372 : vector<32x32xf32> to vector<32x32xbf16>
    %cst_139 = arith.constant dense<0.000000e+00> : vector<1x32xf32>
    %374 = tpu.matmul %366, %370, %cst_139 {dimension_numbers = #tpu.dot_dimension_numbers<[1], [0], [0], [1], [0, 0, 1, 1], [], []>} : vector<1x32xbf16>, vector<32x32xbf16>, vector<1x32xf32> -> vector<1x32xf32>
    %cst_140 = arith.constant dense<0.000000e+00> : vector<1x32xf32>
    %375 = tpu.matmul %367, %371, %cst_140 {dimension_numbers = #tpu.dot_dimension_numbers<[1], [0], [0], [1], [0, 0, 1, 1], [], []>} : vector<1x32xbf16>, vector<32x32xbf16>, vector<1x32xf32> -> vector<1x32xf32>
    %cst_141 = arith.constant dense<0.000000e+00> : vector<1x32xf32>
    %376 = tpu.matmul %369, %373, %cst_141 {dimension_numbers = #tpu.dot_dimension_numbers<[1], [0], [0], [1], [0, 0, 1, 1], [], []>} : vector<1x32xbf16>, vector<32x32xbf16>, vector<1x32xf32> -> vector<1x32xf32>
    %377 = arith.subf %374, %375 : vector<1x32xf32>
    %378 = arith.subf %376, %374 : vector<1x32xf32>
    %379 = arith.subf %378, %375 : vector<1x32xf32>
    %c0_142 = arith.constant 0 : index
    %c0_143 = arith.constant 0 : index
    %380 = vector.load %arg31[%c0_142, %c0_143] : memref<1x32xf32, #tpu.memory_space<vmem>>, vector<1x32xf32>
    %381 = arith.addf %377, %380 : vector<1x32xf32>
    %c0_144 = arith.constant 0 : index
    %c0_145 = arith.constant 0 : index
    %c0_146 = arith.constant 0 : index
    %382 = vector.load %arg35[%c0_144, %c0_145, %c0_146] : memref<1x1x32xf32, #tpu.memory_space<vmem>>, vector<1x1x32xf32>
    %383 = vector.shape_cast %382 : vector<1x1x32xf32> to vector<1x32xf32>
    %384 = vector.shape_cast %381 : vector<1x32xf32> to vector<1x1x32xf32>
    tpu.vector_store %arg35[%c0_144, %c0_145, %c0_146], %384 {strides = array<i32>} : memref<1x1x32xf32, #tpu.memory_space<vmem>>, vector<1x1x32xf32>,
    %c0_147 = arith.constant 0 : index
    %c0_148 = arith.constant 0 : index
    %385 = vector.load %arg32[%c0_147, %c0_148] : memref<1x32xf32, #tpu.memory_space<vmem>>, vector<1x32xf32>
    %386 = arith.addf %379, %385 : vector<1x32xf32>
    %c0_149 = arith.constant 0 : index
    %c0_150 = arith.constant 0 : index
    %c0_151 = arith.constant 0 : index
    %387 = vector.load %arg36[%c0_149, %c0_150, %c0_151] : memref<1x1x32xf32, #tpu.memory_space<vmem>>, vector<1x1x32xf32>
    %388 = vector.shape_cast %387 : vector<1x1x32xf32> to vector<1x32xf32>
    %389 = vector.shape_cast %386 : vector<1x32xf32> to vector<1x1x32xf32>
    tpu.vector_store %arg36[%c0_149, %c0_150, %c0_151], %389 {strides = array<i32>} : memref<1x1x32xf32, #tpu.memory_space<vmem>>, vector<1x1x32xf32>,
    return
  }
  func.func @transform_0(%arg0: i32) -> (i32, i32, i32) {
    %c0_i32 = arith.constant 0 : i32
    %c0_i32_0 = arith.constant 0 : i32
    %c0_i32_1 = arith.constant 0 : i32
    return %arg0, %c0_i32, %c0_i32_0 : i32, i32, i32
  }
  func.func @transform_1(%arg0: i32) -> (i32, i32, i32) {
    %c0_i32 = arith.constant 0 : i32
    %c0_i32_0 = arith.constant 0 : i32
    %c0_i32_1 = arith.constant 0 : i32
    return %arg0, %c0_i32, %c0_i32_0 : i32, i32, i32
  }
  func.func @transform_2(%arg0: i32) -> (i32, i32) {
    %c0_i32 = arith.constant 0 : i32
    %c0_i32_0 = arith.constant 0 : i32
    %c0_i32_1 = arith.constant 0 : i32
    return %c0_i32, %c0_i32_0 : i32, i32
  }
  func.func @transform_3(%arg0: i32) -> (i32, i32) {
    %c0_i32 = arith.constant 0 : i32
    %c0_i32_0 = arith.constant 0 : i32
    %c0_i32_1 = arith.constant 0 : i32
    return %c0_i32, %c0_i32_0 : i32, i32
  }
  func.func @transform_4(%arg0: i32) -> (i32, i32) {
    %c0_i32 = arith.constant 0 : i32
    %c0_i32_0 = arith.constant 0 : i32
    %c0_i32_1 = arith.constant 0 : i32
    return %c0_i32, %c0_i32_0 : i32, i32
  }
  func.func @transform_5(%arg0: i32) -> (i32, i32) {
    %c0_i32 = arith.constant 0 : i32
    %c0_i32_0 = arith.constant 0 : i32
    %c0_i32_1 = arith.constant 0 : i32
    return %c0_i32, %c0_i32_0 : i32, i32
  }
  func.func @transform_6(%arg0: i32) -> (i32, i32) {
    %c0_i32 = arith.constant 0 : i32
    %c0_i32_0 = arith.constant 0 : i32
    %c0_i32_1 = arith.constant 0 : i32
    return %c0_i32, %c0_i32_0 : i32, i32
  }
  func.func @transform_7(%arg0: i32) -> (i32, i32) {
    %c0_i32 = arith.constant 0 : i32
    %c0_i32_0 = arith.constant 0 : i32
    %c0_i32_1 = arith.constant 0 : i32
    return %c0_i32, %c0_i32_0 : i32, i32
  }
  func.func @transform_8(%arg0: i32) -> (i32, i32) {
    %c0_i32 = arith.constant 0 : i32
    %c0_i32_0 = arith.constant 0 : i32
    %c0_i32_1 = arith.constant 0 : i32
    return %c0_i32, %c0_i32_0 : i32, i32
  }
  func.func @transform_9(%arg0: i32) -> (i32, i32) {
    %c0_i32 = arith.constant 0 : i32
    %c0_i32_0 = arith.constant 0 : i32
    %c0_i32_1 = arith.constant 0 : i32
    return %c0_i32, %c0_i32_0 : i32, i32
  }
  func.func @transform_10(%arg0: i32) -> (i32, i32) {
    %c0_i32 = arith.constant 0 : i32
    %c0_i32_0 = arith.constant 0 : i32
    %c0_i32_1 = arith.constant 0 : i32
    return %c0_i32, %c0_i32_0 : i32, i32
  }
  func.func @transform_11(%arg0: i32) -> (i32, i32) {
    %c0_i32 = arith.constant 0 : i32
    %c0_i32_0 = arith.constant 0 : i32
    %c0_i32_1 = arith.constant 0 : i32
    return %c0_i32, %c0_i32_0 : i32, i32
  }
  func.func @transform_12(%arg0: i32) -> (i32, i32) {
    %c0_i32 = arith.constant 0 : i32
    %c0_i32_0 = arith.constant 0 : i32
    %c0_i32_1 = arith.constant 0 : i32
    return %c0_i32, %c0_i32_0 : i32, i32
  }
  func.func @transform_13(%arg0: i32) -> (i32, i32) {
    %c0_i32 = arith.constant 0 : i32
    %c0_i32_0 = arith.constant 0 : i32
    %c0_i32_1 = arith.constant 0 : i32
    return %c0_i32, %c0_i32_0 : i32, i32
  }
  func.func @transform_14(%arg0: i32) -> (i32, i32) {
    %c0_i32 = arith.constant 0 : i32
    %c0_i32_0 = arith.constant 0 : i32
    %c0_i32_1 = arith.constant 0 : i32
    return %c0_i32, %c0_i32_0 : i32, i32
  }
  func.func @transform_15(%arg0: i32) -> (i32, i32) {
    %c0_i32 = arith.constant 0 : i32
    %c0_i32_0 = arith.constant 0 : i32
    %c0_i32_1 = arith.constant 0 : i32
    return %c0_i32, %c0_i32_0 : i32, i32
  }
  func.func @transform_16(%arg0: i32) -> (i32, i32) {
    %c0_i32 = arith.constant 0 : i32
    %c0_i32_0 = arith.constant 0 : i32
    %c0_i32_1 = arith.constant 0 : i32
    return %c0_i32, %c0_i32_0 : i32, i32
  }
  func.func @transform_17(%arg0: i32) -> (i32, i32) {
    %c0_i32 = arith.constant 0 : i32
    %c0_i32_0 = arith.constant 0 : i32
    %c0_i32_1 = arith.constant 0 : i32
    return %c0_i32, %c0_i32_0 : i32, i32
  }
  func.func @transform_18(%arg0: i32) -> (i32, i32) {
    %c0_i32 = arith.constant 0 : i32
    %c0_i32_0 = arith.constant 0 : i32
    %c0_i32_1 = arith.constant 0 : i32
    return %c0_i32, %c0_i32_0 : i32, i32
  }
  func.func @transform_19(%arg0: i32) -> (i32, i32) {
    %c0_i32 = arith.constant 0 : i32
    %c0_i32_0 = arith.constant 0 : i32
    %c0_i32_1 = arith.constant 0 : i32
    return %c0_i32, %c0_i32_0 : i32, i32
  }
  func.func @transform_20(%arg0: i32) -> (i32, i32) {
    %c0_i32 = arith.constant 0 : i32
    %c0_i32_0 = arith.constant 0 : i32
    %c0_i32_1 = arith.constant 0 : i32
    return %c0_i32, %c0_i32_0 : i32, i32
  }
  func.func @transform_21(%arg0: i32) -> (i32, i32) {
    %c0_i32 = arith.constant 0 : i32
    %c0_i32_0 = arith.constant 0 : i32
    %c0_i32_1 = arith.constant 0 : i32
    return %c0_i32, %c0_i32_0 : i32, i32
  }
  func.func @transform_22(%arg0: i32) -> (i32, i32) {
    %c0_i32 = arith.constant 0 : i32
    %c0_i32_0 = arith.constant 0 : i32
    %c0_i32_1 = arith.constant 0 : i32
    return %c0_i32, %c0_i32_0 : i32, i32
  }
  func.func @transform_23(%arg0: i32) -> (i32, i32) {
    %c0_i32 = arith.constant 0 : i32
    %c0_i32_0 = arith.constant 0 : i32
    %c0_i32_1 = arith.constant 0 : i32
    return %c0_i32, %c0_i32_0 : i32, i32
  }
  func.func @transform_24(%arg0: i32) -> (i32, i32) {
    %c0_i32 = arith.constant 0 : i32
    %c0_i32_0 = arith.constant 0 : i32
    %c0_i32_1 = arith.constant 0 : i32
    return %c0_i32, %c0_i32_0 : i32, i32
  }
  func.func @transform_25(%arg0: i32) -> (i32, i32) {
    %c0_i32 = arith.constant 0 : i32
    %c0_i32_0 = arith.constant 0 : i32
    %c0_i32_1 = arith.constant 0 : i32
    return %c0_i32, %c0_i32_0 : i32, i32
  }
  func.func @transform_26(%arg0: i32) -> (i32, i32) {
    %c0_i32 = arith.constant 0 : i32
    %c0_i32_0 = arith.constant 0 : i32
    %c0_i32_1 = arith.constant 0 : i32
    return %c0_i32, %c0_i32_0 : i32, i32
  }
  func.func @transform_27(%arg0: i32) -> (i32, i32) {
    %c0_i32 = arith.constant 0 : i32
    %c0_i32_0 = arith.constant 0 : i32
    %c0_i32_1 = arith.constant 0 : i32
    return %c0_i32, %c0_i32_0 : i32, i32
  }
  func.func @transform_28(%arg0: i32) -> (i32, i32) {
    %c0_i32 = arith.constant 0 : i32
    %c0_i32_0 = arith.constant 0 : i32
    %c0_i32_1 = arith.constant 0 : i32
    return %c0_i32, %c0_i32_0 : i32, i32
  }
  func.func @transform_29(%arg0: i32) -> (i32, i32) {
    %c0_i32 = arith.constant 0 : i32
    %c0_i32_0 = arith.constant 0 : i32
    %c0_i32_1 = arith.constant 0 : i32
    return %c0_i32, %c0_i32_0 : i32, i32
  }
  func.func @transform_30(%arg0: i32) -> (i32, i32) {
    %c0_i32 = arith.constant 0 : i32
    %c0_i32_0 = arith.constant 0 : i32
    %c0_i32_1 = arith.constant 0 : i32
    return %c0_i32, %c0_i32_0 : i32, i32
  }
  func.func @transform_31(%arg0: i32) -> (i32, i32) {
    %c0_i32 = arith.constant 0 : i32
    %c0_i32_0 = arith.constant 0 : i32
    %c0_i32_1 = arith.constant 0 : i32
    return %c0_i32, %c0_i32_0 : i32, i32
  }
  func.func @transform_32(%arg0: i32) -> (i32, i32, i32) {
    %c0_i32 = arith.constant 0 : i32
    %c0_i32_0 = arith.constant 0 : i32
    %c0_i32_1 = arith.constant 0 : i32
    return %arg0, %c0_i32, %c0_i32_0 : i32, i32, i32
  }
  func.func @transform_33(%arg0: i32) -> (i32, i32, i32) {
    %c0_i32 = arith.constant 0 : i32
    %c0_i32_0 = arith.constant 0 : i32
    %c0_i32_1 = arith.constant 0 : i32
    return %arg0, %c0_i32, %c0_i32_0 : i32, i32, i32
  }
  func.func @transform_34(%arg0: i32) -> (i32, i32, i32) {
    %c0_i32 = arith.constant 0 : i32
    %c0_i32_0 = arith.constant 0 : i32
    %c0_i32_1 = arith.constant 0 : i32
    return %arg0, %c0_i32, %c0_i32_0 : i32, i32, i32
  }
  func.func @transform_35(%arg0: i32) -> (i32, i32, i32) {
    %c0_i32 = arith.constant 0 : i32
    %c0_i32_0 = arith.constant 0 : i32
    %c0_i32_1 = arith.constant 0 : i32
    return %arg0, %c0_i32, %c0_i32_0 : i32, i32, i32
  }
}

</mosaic_0001>

<bundles_post_ra>
// kernel: custom-call
= control target key start
LH: loop header
LB: loop body
LE: loop exit
PB: predicated region body
PF: predicated region fallthrough
CT: control target
= control target key end

     0   :  { %2 = vsyncpa [#allocation0], 0  ;;  %s61_s0 = inlined_call_operand.hbm [shape: c64[2,8,32], index: 0, kind: input, shape index: {}]   ;;  %s62_s1 = inlined_call_operand.vmem [shape: f32[2,8,32], index: 1, kind: output, shape index: {}]  }
   0x1   :  { %s3_s8 = sshll.u32 %s62_s1, 4  ;;  %s9_s11 = scalar_lea.hbm %s61_s0, 256  ;;  %s4_s8 = int_to_ptr.vmem [resolvable:$true] %s3_s8 }
   0x2   :  { %p10_p0 = scmp.ne.s32.totalorder %s61_s0, %s9_s11  ;;  %s11_s16 = scalar_lea.hbm %s61_s0, 512 }
   0x3   :  { %p12_p1 = scmp.lt.u32.totalorder %s11_s16, %s9_s11  ;;  %p13_p2 = scmp.lt.u32.totalorder %s9_s11, %s61_s0 }
   0x5   :  { %p14_p3 = por %p13_p2, %p12_p1 }
   0x7   :  { %p15_p4 = pnand %p14_p3, %p10_p0 }
   0x9   :  { %18 = shalt.err (!%p15_p4)  }
   0xa   :  { %s19_s1 = scalar_lea.vmem %s4_s8, 256  ;;  %p24_p6 = scmp.lt.s32.totalorder %s4_s8, %s4_s8 }
   0xb   :  { %p20_p5 = scmp.ne.s32.totalorder %s4_s8, %s19_s1  ;;  %p25_p7 = scmp.lt.s32.totalorder %s19_s1, %s19_s1 }
   0xd   :  { %p26_p8 = por %p25_p7, %p24_p6 }
   0xf   :  { %p27_p9 = pnand %p26_p8, %p20_p5 }
  0x11   :  { %30 = shalt.err (!%p27_p9)  }
  0x12   :  { %6 = dma.hbm_to_vmem [thread:$0]  %s61_s0, 256, %s4_s8, [#allocation0] }
  0x13   :  { %31 = dma.done.wait [#allocation0], 256  }
  0x14   :  { %32 = vsyncadd [#allocation0], 4294967040 }
  0x15   :  { %8 = vsyncpa [#allocation0], 1 }

// kernel: custom-call.1
= control target key start
LH: loop header
LB: loop body
LE: loop exit
PB: predicated region body
PF: predicated region fallthrough
CT: control target
= control target key end

     0   :  { %s59_s0 = inlined_call_operand.hbm [shape: c64[2,8,32], index: 0, kind: input, shape index: {}]   ;;  %s60_s1 = inlined_call_operand.vmem [shape: f32[2,8,32], index: 1, kind: output, shape index: {}]  }
   0x1   :  { %s2_s8 = scalar_lea.hbm %s59_s0, 256 }
   0x2   :  { %3 = vsyncpa [#allocation0], 0  ;;  %s4_s11 = sshll.u32 %s60_s1, 4  ;;  %s34_s14 = scalar_lea.hbm %s59_s0, 512  ;;  %s5_s11 = int_to_ptr.vmem [resolvable:$true] %s4_s11 }
   0x3   :  { %p11_p0 = scmp.ne.s32.totalorder %s2_s8, %s34_s14  ;;  %p13_p1 = scmp.lt.u32.totalorder %s2_s8, %s59_s0 }
   0x4   :  { %p14_p2 = scmp.lt.u32.totalorder %s34_s14, %s34_s14  ;;  %p16_p4 = scmp.lt.u32.totalorder %s34_s14, %s2_s8 }
   0x6   :  { %p15_p3 = por %p14_p2, %p13_p1 }
   0x8   :  { %p17_p5 = por %p16_p4, %p15_p3 }
   0xa   :  { %p18_p6 = pnand %p17_p5, %p11_p0 }
   0xc   :  { %21 = shalt.err (!%p18_p6)  }
   0xd   :  { %s22_s17 = scalar_lea.vmem %s5_s11, 256  ;;  %p27_p8 = scmp.lt.s32.totalorder %s5_s11, %s5_s11 }
   0xe   :  { %p23_p7 = scmp.ne.s32.totalorder %s5_s11, %s22_s17  ;;  %p28_p9 = scmp.lt.s32.totalorder %s22_s17, %s22_s17 }
  0x10   :  { %p29_p10 = por %p28_p9, %p27_p8 }
  0x12   :  { %p30_p11 = pnand %p29_p10, %p23_p7 }
  0x14   :  { %33 = shalt.err (!%p30_p11)  }
  0x15   :  { %7 = dma.hbm_to_vmem [thread:$0]  %s2_s8, 256, %s5_s11, [#allocation0] }
  0x16   :  { %35 = dma.done.wait [#allocation0], 256  }
  0x17   :  { %36 = vsyncadd [#allocation0], 4294967040 }
  0x18   :  { %9 = vsyncpa [#allocation0], 1 }

// kernel: custom-call.2
= control target key start
LH: loop header
LB: loop body
LE: loop exit
PB: predicated region body
PF: predicated region fallthrough
CT: control target
= control target key end

     0   :  { %s126_s0 = inlined_call_operand.vmem [shape: f32[2,2,16], index: 0, kind: input, shape index: {}]   ;;  %s127_s1 = inlined_call_operand.vmem [shape: f32[2,2,16], index: 1, kind: input, shape index: {}]   ;;  %s128_s2 = inlined_call_operand.hbm [shape: c64[2,2,16], index: 2, kind: output, shape index: {}]  }
   0x1   :  { %s87_s11 = scalar_lea.hbm %s128_s2, 64 }
   0x2   :  { %4 = vsyncpa [#allocation0], 0  ;;  %s5_s14 = sshll.u32 %s126_s0, 4  ;;  %s6_s14 = int_to_ptr.vmem [resolvable:$true] %s5_s14 }
   0x3   :  { %s18_s15 = scalar_lea.vmem %s6_s14, 64  ;;  %p23_p1 = scmp.lt.s32.totalorder %s6_s14, %s6_s14 }
   0x4   :  { %p19_p0 = scmp.ne.s32.totalorder %s6_s14, %s18_s15  ;;  %p24_p2 = scmp.lt.s32.totalorder %s18_s15, %s18_s15 }
   0x6   :  { %p25_p3 = por %p24_p2, %p23_p1 }
   0x8   :  { %p26_p4 = pnand %p25_p3, %p19_p0 }
   0xa   :  { %29 = shalt.err (!%p26_p4)  }
   0xb   :  { %p31_p5 = scmp.ne.s32.totalorder %s128_s2, %s87_s11  ;;  %s32_s0 = scalar_lea.hbm %s128_s2, 128 }
   0xc   :  { %p33_p6 = scmp.lt.u32.totalorder %s32_s0, %s87_s11  ;;  %p34_p7 = scmp.lt.u32.totalorder %s87_s11, %s128_s2 }
   0xe   :  { %p35_p8 = por %p34_p7, %p33_p6 }
  0x10   :  { %p36_p9 = pnand %p35_p8, %p31_p5 }
  0x12   :  { %39 = shalt.err (!%p36_p9)  }
  0x13   :  { %8 = dma.vmem_to_hbm [thread:$0]  %s6_s14, 64, %s128_s2, [#allocation0] }
  0x14   :  { %65 = dma.done.wait [#allocation0], 64  }
  0x15   :  { %66 = vsyncadd [#allocation0], 4294967232 }
  0x16   :  { %10 = vsyncpa [#allocation0], 1 }
  0x17   :  { %11 = vsyncpa [#allocation1], 0  ;;  %s12_s28 = sshll.u32 %s127_s1, 4  ;;  %s13_s28 = int_to_ptr.vmem [resolvable:$true] %s12_s28 }
  0x18   :  { %s40_s29 = scalar_lea.vmem %s13_s28, 64  ;;  %p45_p11 = scmp.lt.s32.totalorder %s13_s28, %s13_s28 }
  0x19   :  { %p41_p10 = scmp.ne.s32.totalorder %s13_s28, %s40_s29  ;;  %p46_p12 = scmp.lt.s32.totalorder %s40_s29, %s40_s29 }
  0x1b   :  { %p47_p13 = por %p46_p12, %p45_p11 }
  0x1d   :  { %p48_p0 = pnand %p47_p13, %p41_p10 }
  0x1f   :  { %51 = shalt.err (!%p48_p0)  }
  0x20   :  { %p53_p1 = scmp.ne.s32.totalorder %s87_s11, %s32_s0  ;;  %p56_p2 = scmp.lt.u32.totalorder %s32_s0, %s32_s0 }
  0x22   :  { %p57_p3 = por %p56_p2, %p34_p7 }
  0x24   :  { %p59_p4 = por %p57_p3, %p33_p6 }
  0x26   :  { %p60_p5 = pnand %p59_p4, %p53_p1 }
  0x28   :  { %63 = shalt.err (!%p60_p5)  }
  0x29   :  { %15 = dma.vmem_to_hbm [thread:$0]  %s13_s28, 64, %s87_s11, [#allocation1] }
  0x2a   :  { %67 = dma.done.wait [#allocation1], 64  }
  0x2b   :  { %68 = vsyncadd [#allocation1], 4294967232 }
  0x2c   :  { %17 = vsyncpa [#allocation1], 1 }

// kernel: qilm_forward_pallas.3
= control target key start
LH: loop header
LB: loop body
LE: loop exit
PB: predicated region body
PF: predicated region fallthrough
CT: control target
= control target key end

     0   :  { %s3831_s6 = smov 1   ;;  %s3832_s10 = smov 2   ;;  %s4533_s0 = inlined_call_operand.smem [shape: u32[36], index: -1, kind: input, shape index: {}] }
   0x1   :  { %s3892_s5 = sld [smem:[%s4533_s0]]   ;;  %s3833_s14 = smov 3  }
   0x2   :  { %s3897_s9 = sld [smem:[%s4533_s0 + %s3831_s6]]   ;;  %s3834_s18 = smov 4  }
   0x3   :  { %s3902_s13 = sld [smem:[%s4533_s0 + %s3832_s10]]   ;;  %s3835_s22 = smov 5  }
   0x4   :  { %s3907_s17 = sld [smem:[%s4533_s0 + %s3833_s14]]   ;;  %s3836_s26 = smov 6  }
   0x5   :  { %s3912_s21 = sld [smem:[%s4533_s0 + %s3834_s18]]   ;;  %s3837_s30 = smov 7  }
   0x6   :  { %s3917_s25 = sld [smem:[%s4533_s0 + %s3835_s22]]   ;;  %s3838_s4 = smov 8  }
   0x7   :  { %4546 = sst [smem:[#allocation8_spill]] %s3892_s5  ;;  %s3839_s10 = smov 9  }
   0x8   :  { %4547 = sst [smem:[#allocation9_spill]] %s3897_s9  ;;  %s3840_s15 = smov 10  }
   0x9   :  { %4548 = sst [smem:[#allocation10_spill]] %s3902_s13  ;;  %s3841_s20 = smov 11  }
   0xa   :  { %4549 = sst [smem:[#allocation11_spill]] %s3907_s17  ;;  %s3843_s1 = smov 13  }
   0xb   :  { %s3922_s29 = sld [smem:[%s4533_s0 + %s3836_s26]]   ;;  %s3842_s26 = smov 12  }
   0xc   :  { %s3927_s3 = sld [smem:[%s4533_s0 + %s3837_s30]]   ;;  %s3844_s7 = smov 14  }
   0xd   :  { %s3932_s8 = sld [smem:[%s4533_s0 + %s3838_s4]]   ;;  %s3846_s22 = smov 16  }
   0xe   :  { %s3937_s14 = sld [smem:[%s4533_s0 + %s3839_s10]]   ;;  %s3847_s28 = smov 17  }
   0xf   :  { %s3942_s19 = sld [smem:[%s4533_s0 + %s3840_s15]]   ;;  %s3845_s15 = smov 15  }
  0x10   :  { %s3947_s24 = sld [smem:[%s4533_s0 + %s3841_s20]]  }
  0x11   :  { %s3952_s30 = sld [smem:[%s4533_s0 + %s3842_s26]]  }
  0x12   :  { %4550 = sst [smem:[#allocation12_spill]] %s3927_s3 }
  0x13   :  { %4551 = sst [smem:[#allocation13_spill]] %s3932_s8 }
  0x14   :  { %4552 = sst [smem:[#allocation14_spill]] %s3937_s14 }
  0x15   :  { %4553 = sst [smem:[#allocation15_spill]] %s3942_s19 }
  0x16   :  { %s3957_s6 = sld [smem:[%s4533_s0 + %s3843_s1]]  }
  0x17   :  { %4554 = sst [smem:[#allocation16_spill]] %s3952_s30 }
  0x18   :  { %s3962_s12 = sld [smem:[%s4533_s0 + %s3844_s7]]   ;;  %s3848_s7 = smov 18  }
  0x19   :  { %s3967_s20 = sld [smem:[%s4533_s0 + %s3845_s15]]   ;;  %s3849_s15 = smov 19  }
  0x1a   :  { %s3972_s27 = sld [smem:[%s4533_s0 + %s3846_s22]]   ;;  %s3850_s22 = smov 20  }
  0x1b   :  { %s3977_s4 = sld [smem:[%s4533_s0 + %s3847_s28]]   ;;  %s3851_s28 = smov 21  }
  0x1c   :  { %4555 = sst [smem:[#allocation17_spill]] %s3957_s6 }
  0x1d   :  { %s3992_s6 = sld [smem:[%s4533_s0 + %s3850_s22]]   ;;  %s3854_s22 = smov 24  }
  0x1e   :  { %4556 = sst [smem:[#allocation18_spill]] %s3962_s12 }
  0x1f   :  { %4557 = sst [smem:[#allocation19_spill]] %s3967_s20 }
  0x20   :  { %s3982_s12 = sld [smem:[%s4533_s0 + %s3848_s7]]   ;;  %s3852_s7 = smov 22  }
  0x21   :  { %4558 = sst [smem:[#allocation20_spill]] %s3977_s4 }
  0x22   :  { %s3987_s20 = sld [smem:[%s4533_s0 + %s3849_s15]]   ;;  %s3853_s15 = smov 23  }
  0x23   :  { %4561 = sst [smem:[#allocation23_spill]] %s3992_s6 }
  0x24   :  { %s3997_s30 = sld [smem:[%s4533_s0 + %s3851_s28]]   ;;  %s3855_s28 = smov 25  }
  0x25   :  { %s4012_s6 = sld [smem:[%s4533_s0 + %s3854_s22]]   ;;  %s3858_s22 = smov 28  }
  0x26   :  { %4559 = sst [smem:[#allocation21_spill]] %s3982_s12 }
  0x27   :  { %s4002_s12 = sld [smem:[%s4533_s0 + %s3852_s7]]   ;;  %s3856_s7 = smov 26  }
  0x28   :  { %4560 = sst [smem:[#allocation22_spill]] %s3987_s20 }
  0x29   :  { %s4007_s20 = sld [smem:[%s4533_s0 + %s3853_s15]]   ;;  %s3857_s15 = smov 27  }
  0x2a   :  { %4562 = sst [smem:[#allocation24_spill]] %s3997_s30 }
  0x2b   :  { %4565 = sst [smem:[#allocation27_spill]] %s4012_s6 }
  0x2c   :  { %s4017_s30 = sld [smem:[%s4533_s0 + %s3855_s28]]   ;;  %s3859_s28 = smov 29  }
  0x2d   :  { %4563 = sst [smem:[#allocation25_spill]] %s4002_s12 }
  0x2e   :  { %s4022_s12 = sld [smem:[%s4533_s0 + %s3856_s7]]   ;;  %s3860_s7 = smov 30  }
  0x2f   :  { %4564 = sst [smem:[#allocation26_spill]] %s4007_s20 }
  0x30   :  { %s4027_s20 = sld [smem:[%s4533_s0 + %s3857_s15]]   ;;  %s3861_s15 = smov 31  }
  0x31   :  { %s4032_s6 = sld [smem:[%s4533_s0 + %s3858_s22]]   ;;  %s3862_s22 = smov 32  }
  0x32   :  { %4566 = sst [smem:[#allocation28_spill]] %s4017_s30 }
  0x33   :  { %s4037_s30 = sld [smem:[%s4533_s0 + %s3859_s28]]   ;;  %s3863_s28 = smov 33  }
  0x34   :  { %4567 = sst [smem:[#allocation29_spill]] %s4022_s12 }
  0x35   :  { %s4042_s12 = sld [smem:[%s4533_s0 + %s3860_s7]]   ;;  %s3864_s7 = smov 34  }
  0x36   :  { %4568 = sst [smem:[#allocation30_spill]] %s4027_s20 }
  0x37   :  { %4569 = sst [smem:[#allocation31_spill]] %s4032_s6 }
  0x38   :  { %s4047_s20 = sld [smem:[%s4533_s0 + %s3861_s15]]   ;;  %s3865_s15 = smov 35  }
  0x39   :  { %4570 = sst [smem:[#allocation32_spill]] %s4037_s30 }
  0x3a   :  { %s4052_s6 = sld [smem:[%s4533_s0 + %s3862_s22]]  }
  0x3b   :  { %4571 = sst [smem:[#allocation33_spill]] %s4042_s12 }
  0x3c   :  { %s4057_s30 = sld [smem:[%s4533_s0 + %s3863_s28]]  }
  0x3d   :  { %s4062_s12 = sld [smem:[%s4533_s0 + %s3864_s7]]  }
  0x3e   :  { %4572 = sst [smem:[#allocation34_spill]] %s4047_s20 }
  0x3f   :  { %s4067_s20 = sld [smem:[%s4533_s0 + %s3865_s15]]  }
  0x40   :  { %4573 = sst [smem:[#allocation35_spill]] %s4052_s6 }
  0x41   :  { %77 = vsyncpa [#allocation3], 0 }
  0x42   :  { %79 = vsyncpa [#allocation3 + $0x1], 0 }
  0x43   :  { %80 = vsyncpa [#allocation5], 0 }
  0x44   :  { %82 = vsyncpa [#allocation5 + $0x1], 0  ;;  %s4069_s22 = smov 0   ;;  %s4071_s23 = smov 0  }
  0x45   :  { %s4073_s26 = smov 0   ;;  %s4075_s28 = smov 0  }
  0x46 LB: > { %s4574_s6 = sld [smem:[#allocation35_spill]]  ;;  %s4575_s14 = sld [smem:[#allocation14_spill]]  ;;  %s3829_s28 = sphi %s4075_s28, %s4607_s28   ;;  %s3825_s26 = sphi %s4073_s26, %s4606_s26   ;;  %s3821_s23 = sphi %s4071_s23, %s4605_s23   ;;  %s3817_s22 = sphi %s4069_s22, %s4604_s22  }
  0x47   : > { %s4576_s8 = sld [smem:[#allocation13_spill]]  ;;  %s4577_s4 = sld [smem:[#allocation20_spill]] }
  0x48   : > { %s4090_s0 = sadd.s32 4294967295, %s3829_s28   ;;  %s3224_s1 = sadd.s32 4294967294, %s3829_s28  }
  0x49   : > { %s4094_s2 = sadd.s32 1, %s3829_s28   ;;  %s777_s7 = sadd.s32 1, %s3825_s26 }
  0x4a   : > { %s774_s10 = ssub.s32 %s3829_s28, %s4094_s2  ;;  %p787_p0 = scmp.ne.s32.totalorder %s3825_s26, %s3821_s23 }
  0x4b   : > { %p775_p1 = scmp.eq.s32.totalorder %s774_s10, 0  ;;  %p788_p2 = scmp.eq.s32.totalorder %s4090_s0, 1 }
  0x4c   : > { %p793_p3 = scmp.ne.s32.totalorder %s3821_s23, %s3817_s22  ;;  %p794_p4 = scmp.eq.s32.totalorder %s3224_s1, 1 }
  0x4d   : > { %s4105_s11 = scalar_select %p775_p1, %s3825_s26, %s777_s7  }
  0x4e   : > { %p4107_p5 = por %p788_p2, %p787_p0  ;;  %p4111_p6 = por %p794_p4, %p793_p3 }
  0x4f   : > { %p3227_p7 = scmp.ge.s32.totalorder %s3829_s28, 1  ;;  %p994_p8 = scmp.lt.s32.totalorder %s3829_s28, 3 }
  0x51   : > { %p995_p9 = pnand %p3227_p7, %p994_p8 }
  0x52   : > { %v1121_v0 = vld [vmem:[%s3912_s21] sm:$0xff] (!%p995_p9)  ;;  %v1122_v1 = vld [vmem:[%s3912_s21 + $0x8] sm:$0xff] (!%p995_p9)  ;;  %p1096_p10 = scmp.lt.s32.totalorder (!%p995_p9), %s4090_s0, 1  ;;  %v3866_v3 = vmov (!%p995_p9), 0.0   ;;  %s4580_s13 = sld [smem:[#allocation10_spill]] (!%p995_p9)  ;;  %v1123_v6 = vld [vmem:[%s3912_s21 + $0x10] sm:$0xff] (!%p995_p9) }
  0x53   : > { %998 = sbr.rel (%p995_p9) target bundleno = 2970 (0xb9a), region = 148  ;;  %v1125_v2 = vld [vmem:[%s3917_s25] sm:$0xff] (!%p995_p9)  ;;  %3368 = vmatprep.subr.bf16.mxu0 (!%p995_p9), %v3866_v3  ;;  %3376 = vmatprep.subr.bf16.mxu1 (!%p995_p9), %v3866_v3  ;;  %v1133_v4 = vpack.c.bf16 (!%p995_p9), %v1122_v1, %v1121_v0  ;;  %v1126_v5 = vld [vmem:[%s3917_s25 + $0x8] sm:$0xff] (!%p995_p9)  ;;  %s4581_s17 = sld [smem:[#allocation11_spill]] (!%p995_p9)  ;;  %v1124_v7 = vld [vmem:[%s3912_s21 + $0x18] sm:$0xff] (!%p995_p9)  ;;  %vm3867_vm0 = vmmov (!%p995_p9), 0  }
  0x54   : > { %v1135_v8 = vpack.c.bf16 (!%p995_p9), %v1126_v5, %v1125_v2  ;;  %s4582_s5 = sld [smem:[#allocation8_spill]] (!%p995_p9)  ;;  %v1127_v9 = vld [vmem:[%s3917_s25 + $0x10] sm:$0xff] (!%p995_p9)  ;;  %s4583_s9 = sld [smem:[#allocation9_spill]] (!%p995_p9)  ;;  %v1128_v10 = vld [vmem:[%s3917_s25 + $0x18] sm:$0xff] (!%p995_p9)  ;;  %3372 = vmatprep.mubr.msk.bf16.mxu0 (!%p995_p9), %vm3867_vm0, %v3866_v3  ;;  %3380 = vmatprep.mubr.msk.bf16.mxu1 (!%p995_p9), %vm3867_vm0, %v3866_v3  ;;  %v1134_v11 = vpack.c.bf16 (!%p995_p9), %v1124_v7, %v1123_v6  ;;  %v1137_v15 = vadd.f32 (!%p995_p9), %v1125_v2, %v1121_v0  ;;  %vm1143_vm1 = vcmask (!%p995_p9), 261120  }
  0x55   : > { %3369 = vmatpush3.bf16.msra.mxu0 (!%p995_p9), %v1133_v4  ;;  %v1136_v12 = vpack.c.bf16 (!%p995_p9), %v1128_v10, %v1127_v9  ;;  %v1138_v16 = vadd.f32 (!%p995_p9), %v1126_v5, %v1122_v1  ;;  %v1139_v26 = vadd.f32 (!%p995_p9), %v1127_v9, %v1123_v6  ;;  %v1140_v27 = vadd.f32 (!%p995_p9), %v1128_v10, %v1124_v7  ;;  %s4584_s3 = sld [smem:[#allocation12_spill]] (!%p995_p9)  ;;  %v3235_v49 = vld [vmem:[%s3922_s29] ss:$0 sm:$0xff] (!%p995_p9)  ;;  %s4585_s19 = sld [smem:[#allocation15_spill]] (!%p995_p9) }
  0x56   : > { %3377 = vmatpush3.bf16.msra.mxu1 (!%p995_p9), %v1135_v8  ;;  %3370 = vmatprep.subr.bf16.mxu0 (!%p995_p9), %v3866_v3  ;;  %vm1301_vm2 = vcmask (!%p995_p9), 64512   ;;  %vm1414_vm3 = vcmask (!%p995_p9), 1043456   ;;  %vm2133_vm4 = vcmask (!%p995_p9), 130048   ;;  %vm2135_vm5 = vcmask (!%p995_p9), 195584  }
  0x57   : > { %3378 = vmatprep.subr.bf16.mxu1 (!%p995_p9), %v3866_v3  ;;  %v1141_v25 = vpack.c.bf16 (!%p995_p9), %v1138_v16, %v1137_v15  ;;  %v1142_v31 = vpack.c.bf16 (!%p995_p9), %v1140_v27, %v1139_v26  ;;  %vm2620_vm6 = vcmask (!%p995_p9), 523264  }
  0x58   : > { %v1113_v13 = vld [vmem:[%s4580_s13] sm:$0xff] (!%p995_p9)  ;;  %s3874_s13 = smov (!%p995_p9), 104  }
  0x59   : > { %v1114_v14 = vld [vmem:[%s4581_s17] sm:$0xff] (!%p995_p9)  ;;  %3371 = vmatpush3.bf16.msra.mxu0 (!%p995_p9), %v1134_v11 }
  0x5a   : > { %s4135_s18 = scalar_select %p1096_p10, %s4090_s0, 1  ;;  %3379 = vmatpush3.bf16.msra.mxu1 %v1136_v12  ;;  %3384 = vmatprep.subr.bf16.mxu0 %v3866_v3 }
  0x5b   : > { %3392 = vmatprep.subr.bf16.mxu1 %v3866_v3  ;;  %v3236_v45 = vld [vmem:[%s4584_s3] ss:$0 sm:$0xff]  ;;  %s3871_s3 = smov 80  }
  0x5c   : > { %s3230_s1 = sshll.u32 %s4135_s18, 3 }
  0x5d   : > { %s1099_s7 = scalar_lea.vmem %s4582_s5, %s3230_s1  ;;  %s1103_s10 = scalar_lea.vmem %s4583_s9, %s3230_s1 }
  0x5e   : > { %v1111_v17 = vld [vmem:[%s1099_s7] sm:$0xff]  ;;  %s3868_s1 = smov 88   ;;  %s3869_s7 = smov 96  }
  0x5f   : > { %v1112_v18 = vld [vmem:[%s1103_s10] sm:$0xff]  ;;  %v1115_v19 = vmul.f32 %v1113_v13, %v1111_v17  ;;  %v1118_v21 = vmul.f32 %v1114_v14, %v1111_v17  ;;  %s3870_s10 = smov 120   ;;  %s3872_s5 = smov 112  }
  0x60   : > { %v1116_v20 = vmul.f32 %v1114_v14, %v1112_v18  ;;  %v1119_v22 = vmul.f32 %v1113_v13, %v1112_v18  ;;  %s3873_s9 = smov 72  }
  0x62   : > { %v4145_v23 = vsub.f32 %v1115_v19, %v1116_v20  ;;  %v4147_v24 = vadd.f32 %v1119_v22, %v1118_v21 }
  0x64   : > { %v1129_v28 = vpack.c.bf16 %v4145_v23, %v4145_v23  ;;  %v1130_v29 = vpack.c.bf16 %v4147_v24, %v4147_v24  ;;  %v1131_v30 = vadd.f32 %v4147_v24, %v4145_v23 }
  0x66   : > { %3373 = vmatmul.mubr.msk.bf16.vlgmr.msra.gmra.mrb[0].mxu0 %vm1143_vm1, %v1129_v28  ;;  %3381 = vmatmul.mubr.msk.bf16.vlgmr.msra.gmra.mrb[0].mxu1 %vm1143_vm1, %v1130_v29  ;;  %v1132_v32 = vpack.c.bf16 %v1131_v30, %v1131_v30 }
  0x67   : > { %3385 = vmatpush3.bf16.msra.mxu0 %v1141_v25  ;;  %3388 = vmatprep.mubr.msk.bf16.mxu0 %vm3867_vm0, %v3866_v3 }
  0x68   : > { %3386 = vmatprep.subr.bf16.mxu0 %v3866_v3  ;;  %3394 = vmatprep.mubr.msk.bf16.mxu1 %vm3867_vm0, %v3866_v3 }
  0x6b   : > { %3387 = vmatpush3.bf16.msra.mxu0 %v1142_v31 }
  0x6c   : > { %3404 = vmatprep.subr.bf16.mxu0 %v3866_v3 }
  0x6e   : > { %3389 = vmatmul.mubr.msk.bf16.vlgmr.msra.gmra.mrb[4].mxu0 %vm1143_vm1, %v1132_v32 }
  0x6f   : > { %3406 = vmatprep.mubr.msk.bf16.mxu0 %vm3867_vm0, %v3866_v3 }
 0x139   : > { %v1181_v33 = vpop.f32.mrb[0].mxu0  ;;  %v1224_v34 = vpop.f32.mrb[0].mxu1 }
 0x13a   : > { %v1273_v35 = vsub.f32 %v1181_v33, %v1224_v34  ;;  %v3374_v36 = vpop.f32.mrb[1].mxu0  ;;  %v3382_v37 = vpop.f32.mrb[1].mxu1 }
 0x13b   : > { %v1184_v38 = vpop.f32.mrb[2].mxu0  ;;  %v1227_v39 = vpop.f32.mrb[2].mxu1 }
 0x13c   : > { %v3375_v40 = vpop.f32.mrb[3].mxu0  ;;  %v3383_v41 = vpop.f32.mrb[3].mxu1  ;;  %v1283_v51 = vadd.f32 %v3235_v49, %v1273_v35 }
 0x13e   : > { %v1292_v54 = vmul.f32 0.35355338, %v1283_v51  ;;  %v4173_v55 = vpack.c.bf16 %v1283_v51, %v1283_v51 }
 0x140   : > { %v1294_v57 = vpack.c.bf16 %v1292_v54, %v1292_v54 }
 0x141   : > { %v1267_v42 = vpop.f32.mrb[4].mxu0 }
 0x142   : > { %v1274_v43 = vsub.f32 %v1267_v42, %v1181_v33  ;;  %v3390_v44 = vpop.f32.mrb[5].mxu0 }
 0x143   : > { %v1270_v46 = vpop.f32.mrb[6].mxu0 }
 0x144   : > { %v1275_v47 = vsub.f32 %v1274_v43, %v1224_v34  ;;  %v3391_v48 = vpop.f32.mrb[7].mxu0 }
 0x146   : > { %v1291_v50 = vadd.f32 %v3236_v45, %v1275_v47 }
 0x148   : > { %v1293_v52 = vmul.f32 0.35355338, %v1291_v50  ;;  %v4169_v53 = vpack.c.bf16 %v1291_v50, %v1291_v50 }
 0x14a   : > { %1506 = vrot.lane.b32.xlu1 %v4169_v53, %s3868_s1  ;;  %1299 = vrot.lane.b32.xlu0 %v4169_v53, %s3869_s7  ;;  %v1295_v56 = vpack.c.bf16 %v1293_v52, %v1293_v52 }
 0x14e   : > { %1349 = vrot.lane.b32.xlu0 %v4173_v55, %s3869_s7  ;;  %1504 = vrot.lane.b32.xlu1 %v1295_v56, %s3870_s10  ;;  %s3880_s7 = smov 16  }
 0x152   : > { %1557 = vrot.lane.b32.xlu0 %v4173_v55, %s3868_s1  ;;  %1555 = vrot.lane.b32.xlu1 %v1294_v57, %s3870_s10  ;;  %s3879_s1 = smov 8   ;;  %s3881_s10 = smov 24  }
 0x156   : > { %1712 = vrot.lane.b32.xlu0 %v4169_v53, %s3871_s3  ;;  %1710 = vrot.lane.b32.xlu1 %v1295_v56, %s3872_s5 }
 0x15a   : > { %1762 = vrot.lane.b32.xlu0 %v4173_v55, %s3871_s3  ;;  %1760 = vrot.lane.b32.xlu1 %v1294_v57, %s3872_s5  ;;  %s3875_s5 = smov 64   ;;  %s3878_s3 = smov 40  }
 0x15e   : > { %1917 = vrot.lane.b32.xlu0 %v4169_v53, %s3873_s9  ;;  %1915 = vrot.lane.b32.xlu1 %v1295_v56, %s3874_s13 }
 0x162   : > { %1967 = vrot.lane.b32.xlu0 %v4173_v55, %s3873_s9  ;;  %1965 = vrot.lane.b32.xlu1 %v1294_v57, %s3874_s13  ;;  %s3876_s9 = smov 56   ;;  %s3877_s13 = smov 48  }
 0x1bc   : > { %v1300_v58 = vpop.permute.xlu0 %1299  ;;  %v1507_v62 = vpop.permute.xlu1 %1506 }
 0x1bd   : > { %v1306_v59 = vsel %vm1301_vm2, %v1300_v58, 0  ;;  %v1512_v63 = vsel %vm1301_vm2, %v1507_v62, 0 }
 0x1be   : > { %3393 = vmatpush3.bf16.xpose.msra.mxu1 %v1306_v59 }
 0x1bf   : > { %3398 = vmatprep.subr.bf16.mxu1 %v3866_v3 }
 0x1c0   : > { %v1350_v60 = vpop.permute.xlu0 %1349  ;;  %v1505_v1 = vpop.permute.xlu1 %1504 }
 0x1c1   : > { %v1355_v61 = vsel %vm1301_vm2, %v1350_v60, 0 }
 0x1c4   : > { %v1558_v0 = vpop.permute.xlu0 %1557  ;;  %v1556_v5 = vpop.permute.xlu1 %1555 }
 0x1c5   : > { %3395 = vmatmul.mubr.msk.bf16.vlgmr.msra.gmra.mrb[4].mxu1 %vm1301_vm2, %v1295_v56  ;;  %v1563_v2 = vsel %vm1301_vm2, %v1558_v0, 0 }
 0x1c6   : > { %3399 = vmatpush3.bf16.xpose.msra.mxu1 %v1355_v61  ;;  %3400 = vmatprep.mubr.msk.bf16.mxu1 %vm3867_vm0, %v3866_v3 }
 0x1c7   : > { %3416 = vmatprep.subr.bf16.mxu1 %v3866_v3 }
 0x1c8   : > { %v1713_v4 = vpop.permute.xlu0 %1712  ;;  %v1711_v8 = vpop.permute.xlu1 %1710 }
 0x1c9   : > { %v1718_v6 = vsel %vm1301_vm2, %v1713_v4, 0 }
 0x1cc   : > { %v1763_v7 = vpop.permute.xlu0 %1762  ;;  %v1761_v11 = vpop.permute.xlu1 %1760 }
 0x1cd   : > { %v1768_v9 = vsel %vm1301_vm2, %v1763_v7, 0 }
 0x1d0   : > { %v1918_v10 = vpop.permute.xlu0 %1917  ;;  %v1916_v14 = vpop.permute.xlu1 %1915 }
 0x1d1   : > { %3401 = vmatmul.mubr.msk.bf16.vlgmr.msra.gmra.mrb[4].mxu1 %vm1301_vm2, %v1294_v57  ;;  %v1923_v12 = vsel %vm1301_vm2, %v1918_v10, 0 }
 0x1d2   : > { %3417 = vmatpush3.bf16.xpose.msra.mxu1 %v1512_v63  ;;  %3418 = vmatprep.mubr.msk.bf16.mxu1 %vm3867_vm0, %v3866_v3 }
 0x1d3   : > { %3422 = vmatprep.subr.bf16.mxu1 %v3866_v3 }
 0x1d4   : > { %v1968_v13 = vpop.permute.xlu0 %1967  ;;  %v1966_v16 = vpop.permute.xlu1 %1965 }
 0x1d5   : > { %v1973_v15 = vsel %vm1301_vm2, %v1968_v13, 0 }
 0x1d9   : > { %3419 = vmatmul.mubr.msk.bf16.vlgmr.msra.gmra.mrb[8].mxu1 %vm1301_vm2, %v1505_v1 }
 0x1da   : > { %3423 = vmatpush3.bf16.xpose.msra.mxu1 %v1563_v2  ;;  %3424 = vmatprep.mubr.msk.bf16.mxu1 %vm3867_vm0, %v3866_v3 }
 0x1db   : > { %3440 = vmatprep.subr.bf16.mxu1 %v3866_v3 }
 0x1e5   : > { %3425 = vmatmul.mubr.msk.bf16.vlgmr.msra.gmra.mrb[8].mxu1 %vm1301_vm2, %v1556_v5 }
 0x1e6   : > { %3441 = vmatpush3.bf16.xpose.msra.mxu1 %v1718_v6  ;;  %3442 = vmatprep.mubr.msk.bf16.mxu1 %vm3867_vm0, %v3866_v3 }
 0x1e7   : > { %3446 = vmatprep.subr.bf16.mxu1 %v3866_v3 }
 0x1ed   : > { %3443 = vmatmul.mubr.msk.bf16.vlgmr.msra.gmra.mrb[12].mxu1 %vm1301_vm2, %v1711_v8 }
 0x1ee   : > { %3447 = vmatpush3.bf16.xpose.msra.mxu1 %v1768_v9  ;;  %3448 = vmatprep.mubr.msk.bf16.mxu1 %vm3867_vm0, %v3866_v3 }
 0x1ef   : > { %3464 = vmatprep.subr.bf16.mxu1 %v3866_v3 }
 0x1f9   : > { %3449 = vmatmul.mubr.msk.bf16.vlgmr.msra.gmra.mrb[12].mxu1 %vm1301_vm2, %v1761_v11 }
 0x1fa   : > { %3465 = vmatpush3.bf16.xpose.msra.mxu1 %v1923_v12  ;;  %3466 = vmatprep.mubr.msk.bf16.mxu1 %vm3867_vm0, %v3866_v3 }
 0x1fb   : > { %3470 = vmatprep.subr.bf16.mxu1 %v3866_v3 }
 0x201   : > { %3467 = vmatmul.mubr.msk.bf16.vlgmr.msra.gmra.mrb[16].mxu1 %vm1301_vm2, %v1916_v14 }
 0x202   : > { %3471 = vmatpush3.bf16.xpose.msra.mxu1 %v1973_v15  ;;  %3472 = vmatprep.mubr.msk.bf16.mxu1 %vm3867_vm0, %v3866_v3 }
 0x203   : > { %3488 = vmatprep.subr.bf16.mxu1 %v3866_v3 }
 0x20d   : > { %3473 = vmatmul.mubr.msk.bf16.vlgmr.msra.gmra.mrb[16].mxu1 %vm1301_vm2, %v1966_v16 }
 0x20e   : > { %3492 = vmatprep.mubr.msk.bf16.mxu1 %vm3867_vm0, %v3866_v3 }
 0x2a4   : > { %v1391_v17 = vpop.f32.mrb[4].mxu1 }
 0x2a5   : > { %v3402_v18 = vpop.f32.mrb[5].mxu1  ;;  %v1397_v19 = vsel %vm1301_vm2, %v1391_v17, -inf }
 0x2a6   : > { %1398 = vmax.xlane.f32.xlu0 %v1397_v19  ;;  %v1394_v20 = vpop.f32.mrb[6].mxu1 }
 0x2a7   : > { %v3403_v21 = vpop.f32.mrb[7].mxu1 }
 0x2b8   : > { %v1599_v22 = vpop.f32.mrb[8].mxu1 }
 0x2b9   : > { %v3426_v25 = vpop.f32.mrb[9].mxu1  ;;  %v1605_v26 = vsel %vm1301_vm2, %v1599_v22, -inf }
 0x2ba   : > { %1606 = vmax.xlane.f32.xlu1 %v1605_v26  ;;  %v1602_v27 = vpop.f32.mrb[10].mxu1 }
 0x2bb   : > { %v3427_v28 = vpop.f32.mrb[11].mxu1 }
 0x2cb   : > { %1409 = vrot.lane.b32.xlu1 %v4173_v55, %s3875_s5 }
 0x2cc   : > { %v1804_v29 = vpop.f32.mrb[12].mxu1 }
 0x2cd   : > { %v3450_v30 = vpop.f32.mrb[13].mxu1  ;;  %v1810_v31 = vsel %vm1301_vm2, %v1804_v29, -inf }
 0x2ce   : > { %1811 = vmax.xlane.f32.xlu0 %v1810_v31  ;;  %v1807_v32 = vpop.f32.mrb[14].mxu1 }
 0x2cf   : > { %v3451_v33 = vpop.f32.mrb[15].mxu1 }
 0x2e0   : > { %v2009_v34 = vpop.f32.mrb[16].mxu1 }
 0x2e1   : > { %v3474_v35 = vpop.f32.mrb[17].mxu1  ;;  %v2015_v36 = vsel %vm1301_vm2, %v2009_v34, -inf }
 0x2e2   : > { %2016 = vmax.xlane.f32.xlu0 %v2015_v36  ;;  %v2012_v37 = vpop.f32.mrb[18].mxu1 }
 0x2e3   : > { %v3475_v38 = vpop.f32.mrb[19].mxu1 }
 0x2f8   : > { %1458 = vrot.lane.b32.xlu0 %v4169_v53, %s3875_s5  ;;  %s4586_s5 = sld [smem:[#allocation16_spill]] }
 0x333   : > { %v1399_v39 = vpop.xlane.xlu0 %1398 }
 0x334   : > { %v1400_v40 = vsub.f32 %v1391_v17, %v1399_v39 }
 0x336   : > { %v1401_v41 = vmul.f32 1.442695, %v1400_v40 }
 0x338   : > { %3707 = vpow2.f32 %v1401_v41 }
 0x342   : > { %v3708_v42 = vpop.eup %3707 }
 0x343   : > { %v1403_v43 = vsel %vm1301_vm2, %v3708_v42, 0.0 }
 0x344   : > { %1404 = vadd.xlane.f32.xlu1 %v1403_v43  ;;  %v2153_v43 = vld [vmem:[%s4576_s8 + $0x8] sm:$0xff] }
 0x347   : > { %v1607_v44 = vpop.xlane.xlu1 %1606 }
 0x348   : > { %v1608_v45 = vsub.f32 %v1599_v22, %v1607_v44 }
 0x34a   : > { %v1609_v46 = vmul.f32 1.442695, %v1608_v45 }
 0x34b   : > { %v1410_v47 = vpop.permute.xlu1 %1409 }
 0x34c   : > { %3709 = vpow2.f32 %v1609_v46  ;;  %v1416_v48 = vsel %vm1414_vm3, %v1410_v47, 0 }
 0x34d   : > { %3405 = vmatpush3.bf16.msra.mxu0 %v1416_v48 }
 0x34e   : > { %3410 = vmatprep.subr.bf16.mxu0 %v3866_v3 }
 0x355   : > { %1617 = vrot.lane.b32.xlu1 %v4173_v55, %s3876_s9 }
 0x356   : > { %v3710_v49 = vpop.eup %3709 }
 0x357   : > { %v1611_v50 = vsel %vm1301_vm2, %v3710_v49, 0.0 }
 0x358   : > { %1612 = vadd.xlane.f32.xlu0 %v1611_v50 }
 0x35b   : > { %v1812_v51 = vpop.xlane.xlu0 %1811 }
 0x35c   : > { %v1813_v52 = vsub.f32 %v1804_v29, %v1812_v51 }
 0x35e   : > { %v1814_v54 = vmul.f32 1.442695, %v1813_v52 }
 0x360   : > { %3711 = vpow2.f32 %v1814_v54  ;;  %v2154_v54 = vld [vmem:[%s4576_s8 + $0x10] sm:$0xff] }
 0x36a   : > { %v3712_v56 = vpop.eup %3711 }
 0x36b   : > { %v1816_v57 = vsel %vm1301_vm2, %v3712_v56, 0.0 }
 0x36c   : > { %1817 = vadd.xlane.f32.xlu0 %v1816_v57 }
 0x36f   : > { %v2017_v58 = vpop.xlane.xlu0 %2016 }
 0x370   : > { %v2018_v59 = vsub.f32 %v2009_v34, %v2017_v58 }
 0x372   : > { %v2019_v60 = vmul.f32 1.442695, %v2018_v59 }
 0x373   : > { %v1459_v2 = vpop.permute.xlu0 %1458 }
 0x374   : > { %3713 = vpow2.f32 %v2019_v60  ;;  %v1461_v5 = vsel %vm1414_vm3, %v1459_v2, 0  ;;  %v2156_v60 = vld [vmem:[%s4575_s14] sm:$0xff] }
 0x37e   : > { %v4233_v61 = vpop.eup %3713 }
 0x37f   : > { %v2021_v62 = vsel %vm1301_vm2, %v4233_v61, 0.0 }
 0x380   : > { %2022 = vadd.xlane.f32.xlu1 %v2021_v62 }
 0x382   : > { %1665 = vrot.lane.b32.xlu0 %v4169_v53, %s3876_s9  ;;  %s4587_s9 = sld [smem:[#allocation17_spill]] }
 0x386   : > { %1822 = vrot.lane.b32.xlu0 %v4173_v55, %s3877_s13 }
 0x38a   : > { %1870 = vrot.lane.b32.xlu0 %v4169_v53, %s3877_s13  ;;  %s4588_s13 = sld [smem:[#allocation18_spill]] }
 0x38e   : > { %2027 = vrot.lane.b32.xlu0 %v4173_v55, %s3878_s3 }
 0x392   : > { %2075 = vrot.lane.b32.xlu0 %v4169_v53, %s3878_s3  ;;  %s4589_s3 = sld [smem:[#allocation19_spill]] }
 0x3d1   : > { %v1405_v63 = vpop.xlane.xlu1 %1404 }
 0x3d2   : > { %3715 = vrcp.f32 %v1405_v63 }
 0x3d5   : > { %v1618_v55 = vpop.permute.xlu1 %1617 }
 0x3d6   : > { %v1623_v53 = vsel %vm1414_vm3, %v1618_v55, 0 }
 0x3dc   : > { %v3716_v0 = vpop.eup %3715 }
 0x3dd   : > { %v1407_v1 = vmul.f32 %v3716_v0, %v3708_v42  ;;  %v2152_v42 = vld [vmem:[%s4576_s8] sm:$0xff] }
 0x3de   : > { %v2164_v44 = vpack.c.bf16 %v2153_v43, %v2152_v42  ;;  %v2168_v0 = vadd.f32 %v2156_v60, %v2152_v42 }
 0x3df   : > { %v1408_v4 = vpack.c.bf16 %v1407_v1, %v1407_v1 }
 0x3e0   : > { %3489 = vmatpush3.bf16.msra.mxu1 %v2164_v44 }
 0x3e1   : > { %3407 = vmatmul.mubr.msk.bf16.vlgmr.msra.gmra.mrb[8].mxu0 %vm1301_vm2, %v1408_v4  ;;  %3490 = vmatprep.subr.bf16.mxu1 %v3866_v3 }
 0x3e2   : > { %3411 = vmatpush3.bf16.msra.mxu0 %v1461_v5  ;;  %3412 = vmatprep.mubr.msk.bf16.mxu0 %vm3867_vm0, %v3866_v3  ;;  %v2158_v5 = vld [vmem:[%s4575_s14 + $0x10] sm:$0xff] }
 0x3e3   : > { %3428 = vmatprep.subr.bf16.mxu0 %v3866_v3 }
 0x3e5   : > { %v1613_v6 = vpop.xlane.xlu0 %1612 }
 0x3e6   : > { %3717 = vrcp.f32 %v1613_v6  ;;  %v2159_v6 = vld [vmem:[%s4575_s14 + $0x18] sm:$0xff] }
 0x3e7   : > { %v2167_v55 = vpack.c.bf16 %v2159_v6, %v2158_v5 }
 0x3e9   : > { %3413 = vmatmul.mubr.msk.bf16.vlgmr.msra.gmra.mrb[12].mxu0 %vm1301_vm2, %v1408_v4 }
 0x3ea   : > { %3429 = vmatpush3.bf16.msra.mxu0 %v1623_v53  ;;  %3430 = vmatprep.mubr.msk.bf16.mxu0 %vm3867_vm0, %v3866_v3  ;;  %v2170_v53 = vadd.f32 %v2158_v5, %v2154_v54  ;;  %v2383_v5 = vld [vmem:[%s3972_s27] sm:$0xff] }
 0x3eb   : > { %3434 = vmatprep.subr.bf16.mxu0 %v3866_v3 }
 0x3f0   : > { %v3718_v7 = vpop.eup %3717 }
 0x3f1   : > { %v1615_v8 = vmul.f32 %v3718_v7, %v3710_v49 }
 0x3f3   : > { %v1616_v9 = vpack.c.bf16 %v1615_v8, %v1615_v8 }
 0x3f5   : > { %3431 = vmatmul.mubr.msk.bf16.vlgmr.msra.gmra.mrb[16].mxu0 %vm1301_vm2, %v1616_v9 }
 0x3f6   : > { %3436 = vmatprep.mubr.msk.bf16.mxu0 %vm3867_vm0, %v3866_v3 }
 0x3f9   : > { %v1818_v10 = vpop.xlane.xlu0 %1817 }
 0x3fa   : > { %3719 = vrcp.f32 %v1818_v10 }
 0x3fd   : > { %v1666_v11 = vpop.permute.xlu0 %1665 }
 0x3fe   : > { %v1668_v12 = vsel %vm1414_vm3, %v1666_v11, 0 }
 0x3ff   : > { %3435 = vmatpush3.bf16.msra.mxu0 %v1668_v12 }
 0x400   : > { %3452 = vmatprep.subr.bf16.mxu0 %v3866_v3 }
 0x401   : > { %v1823_v13 = vpop.permute.xlu0 %1822 }
 0x402   : > { %v1828_v14 = vsel %vm1414_vm3, %v1823_v13, 0  ;;  %3437 = vmatmul.mubr.msk.bf16.vlgmr.msra.gmra.mrb[20].mxu0 %vm1301_vm2, %v1616_v9 }
 0x403   : > { %3453 = vmatpush3.bf16.msra.mxu0 %v1828_v14  ;;  %3454 = vmatprep.mubr.msk.bf16.mxu0 %vm3867_vm0, %v3866_v3 }
 0x404   : > { %v3720_v15 = vpop.eup %3719  ;;  %3458 = vmatprep.subr.bf16.mxu0 %v3866_v3 }
 0x405   : > { %v1820_v16 = vmul.f32 %v3720_v15, %v3712_v56  ;;  %v1871_v17 = vpop.permute.xlu0 %1870  ;;  %v2155_v56 = vld [vmem:[%s4576_s8 + $0x18] sm:$0xff] }
 0x406   : > { %v1873_v19 = vsel %vm1414_vm3, %v1871_v17, 0  ;;  %v2165_v57 = vpack.c.bf16 %v2155_v56, %v2154_v54  ;;  %v2171_v7 = vadd.f32 %v2159_v6, %v2155_v56  ;;  %v2384_v6 = vld [vmem:[%s3972_s27 + $0x8] sm:$0xff] }
 0x407   : > { %v1821_v18 = vpack.c.bf16 %v1820_v16, %v1820_v16 }
 0x408   : > { %3491 = vmatpush3.bf16.msra.mxu1 %v2165_v57  ;;  %v2173_v8 = vpack.c.bf16 %v2171_v7, %v2170_v53  ;;  %v2385_v53 = vld [vmem:[%s3972_s27 + $0x10] sm:$0xff]  ;;  %v2386_v7 = vld [vmem:[%s3972_s27 + $0x18] sm:$0xff] }
 0x409   : > { %v2028_v21 = vpop.permute.xlu0 %2027  ;;  %3504 = vmatprep.subr.bf16.mxu1 %v3866_v3 }
 0x40a   : > { %3455 = vmatmul.mubr.msk.bf16.vlgmr.msra.gmra.mrb[24].mxu0 %vm1301_vm2, %v1821_v18  ;;  %v2033_v22 = vsel %vm1414_vm3, %v2028_v21, 0 }
 0x40b   : > { %3459 = vmatpush3.bf16.msra.mxu0 %v1873_v19  ;;  %3460 = vmatprep.mubr.msk.bf16.mxu0 %vm3867_vm0, %v3866_v3 }
 0x40c   : > { %3476 = vmatprep.subr.bf16.mxu0 %v3866_v3 }
 0x40d   : > { %v2023_v20 = vpop.xlane.xlu1 %2022  ;;  %v2076_v27 = vpop.permute.xlu0 %2075 }
 0x40e   : > { %3721 = vrcp.f32 %v2023_v20  ;;  %v2078_v29 = vsel %vm1414_vm3, %v2076_v27, 0 }
 0x412   : > { %3461 = vmatmul.mubr.msk.bf16.vlgmr.msra.gmra.mrb[28].mxu0 %vm1301_vm2, %v1821_v18 }
 0x413   : > { %3477 = vmatpush3.bf16.msra.mxu0 %v2033_v22  ;;  %3478 = vmatprep.mubr.msk.bf16.mxu0 %vm3867_vm0, %v3866_v3 }
 0x414   : > { %3482 = vmatprep.subr.bf16.mxu0 %v3866_v3 }
 0x418   : > { %v3722_v25 = vpop.eup %3721 }
 0x419   : > { %v2025_v26 = vmul.f32 %v3722_v25, %v4233_v61  ;;  %v2157_v61 = vld [vmem:[%s4575_s14 + $0x8] sm:$0xff] }
 0x41a   : > { %v2166_v63 = vpack.c.bf16 %v2157_v61, %v2156_v60  ;;  %v2169_v1 = vadd.f32 %v2157_v61, %v2153_v43 }
 0x41b   : > { %v2026_v28 = vpack.c.bf16 %v2025_v26, %v2025_v26 }
 0x41c   : > { %v2172_v4 = vpack.c.bf16 %v2169_v1, %v2168_v0 }
 0x41d   : > { %3479 = vmatmul.mubr.msk.bf16.vlgmr.msra.gmra.mrb[32].mxu0 %vm1301_vm2, %v2026_v28 }
 0x41e   : > { %3483 = vmatpush3.bf16.msra.mxu0 %v2078_v29  ;;  %3484 = vmatprep.mubr.msk.bf16.mxu0 %vm3867_vm0, %v3866_v3 }
 0x41f   : > { %3496 = vmatprep.subr.bf16.mxu0 %v3866_v3 }
 0x425   : > { %3485 = vmatmul.mubr.msk.bf16.vlgmr.msra.gmra.mrb[36].mxu0 %vm1301_vm2, %v2026_v28 }
 0x426   : > { %3500 = vmatprep.mubr.msk.bf16.mxu0 %vm3867_vm0, %v3866_v3  ;;  %3497 = vmatpush3.bf16.msra.mxu0 %v2166_v63 }
 0x427   : > { %3498 = vmatprep.subr.bf16.mxu0 %v3866_v3 }
 0x42a   : > { %3499 = vmatpush3.bf16.msra.mxu0 %v2167_v55  ;;  %v2395_v55 = vpack.c.bf16 %v2384_v6, %v2383_v5 }
 0x42b   : > { %3512 = vmatprep.subr.bf16.mxu0 %v3866_v3 }
 0x4b4   : > { %v4281_v30 = vpop.f32.mrb[8].mxu0 }
 0x4b5   : > { %v3408_v31 = vpop.f32.mrb[9].mxu0 }
 0x4b6   : > { %v1455_v32 = vpop.f32.mrb[10].mxu0 }
 0x4b7   : > { %v3409_v33 = vpop.f32.mrb[11].mxu0 }
 0x4bc   : > { %v4283_v34 = vpop.f32.mrb[12].mxu0 }
 0x4bd   : > { %v3414_v35 = vpop.f32.mrb[13].mxu0 }
 0x4be   : > { %v1500_v36 = vpop.f32.mrb[14].mxu0 }
 0x4bf   : > { %v3415_v37 = vpop.f32.mrb[15].mxu0 }
 0x4c8   : > { %v1659_v38 = vpop.f32.mrb[16].mxu0 }
 0x4c9   : > { %2121 = vrot.lane.b32.xlu0 %v1659_v38, %s3879_s1  ;;  %v3432_v39 = vpop.f32.mrb[17].mxu0 }
 0x4ca   : > { %v1662_v40 = vpop.f32.mrb[18].mxu0 }
 0x4cb   : > { %v3433_v41 = vpop.f32.mrb[19].mxu0  ;;  %v3256_v40 = vld [vmem:[%s4585_s19] ss:$0 sm:$0xff] }
 0x4d5   : > { %v1704_v45 = vpop.f32.mrb[20].mxu0 }
 0x4d6   : > { %2138 = vrot.lane.b32.xlu1 %v1704_v45, %s3879_s1  ;;  %v3438_v46 = vpop.f32.mrb[21].mxu0  ;;  %s4590_s1 = sld [smem:[#allocation24_spill]] }
 0x4d7   : > { %v1707_v47 = vpop.f32.mrb[22].mxu0 }
 0x4d8   : > { %v3439_v48 = vpop.f32.mrb[23].mxu0 }
 0x4dd   : > { %v1864_v49 = vpop.f32.mrb[24].mxu0 }
 0x4de   : > { %2125 = vrot.lane.b32.xlu0 %v1864_v49, %s3880_s7  ;;  %v3456_v50 = vpop.f32.mrb[25].mxu0 }
 0x4df   : > { %v1867_v51 = vpop.f32.mrb[26].mxu0  ;;  %v3257_v50 = vld [vmem:[%s3947_s24] ss:$0 sm:$0xff] }
 0x4e0   : > { %v3457_v52 = vpop.f32.mrb[27].mxu0 }
 0x4e5   : > { %v1909_v58 = vpop.f32.mrb[28].mxu0 }
 0x4e6   : > { %v3462_v59 = vpop.f32.mrb[29].mxu0 }
 0x4e7   : > { %v1912_v62 = vpop.f32.mrb[30].mxu0 }
 0x4e8   : > { %v3463_v2 = vpop.f32.mrb[31].mxu0 }
 0x4f0   : > { %v2069_v9 = vpop.f32.mrb[32].mxu0 }
 0x4f1   : > { %2129 = vrot.lane.b32.xlu0 %v2069_v9, %s3881_s10  ;;  %v3480_v10 = vpop.f32.mrb[33].mxu0  ;;  %v2396_v9 = vpack.c.bf16 %v2386_v7, %v2385_v53 }
 0x4f2   : > { %v2072_v11 = vpop.f32.mrb[34].mxu0  ;;  %v2388_v10 = vld [vmem:[%s4577_s4 + $0x8] sm:$0xff] }
 0x4f3   : > { %v3481_v12 = vpop.f32.mrb[35].mxu0 }
 0x4f5   : > { %2142 = vrot.lane.b32.xlu0 %v1909_v58, %s3880_s7  ;;  %s4591_s7 = sld [smem:[#allocation23_spill]] }
 0x4f8   : > { %v2114_v13 = vpop.f32.mrb[36].mxu0 }
 0x4f9   : > { %2146 = vrot.lane.b32.xlu0 %v2114_v13, %s3881_s10  ;;  %v3486_v14 = vpop.f32.mrb[37].mxu0  ;;  %v2400_v13 = vadd.f32 %v2388_v10, %v2384_v6  ;;  %s4592_s10 = sld [smem:[#allocation21_spill]] }
 0x4fa   : > { %v2117_v15 = vpop.f32.mrb[38].mxu0  ;;  %v2389_v14 = vld [vmem:[%s4577_s4 + $0x10] sm:$0xff] }
 0x4fb   : > { %v3487_v16 = vpop.f32.mrb[39].mxu0  ;;  %v2390_v15 = vld [vmem:[%s4577_s4 + $0x18] sm:$0xff] }
 0x4fc   : > { %v2398_v16 = vpack.c.bf16 %v2390_v15, %v2389_v14 }
 0x53b   : > { %v2122_v17 = vpop.permute.xlu0 %2121 }
 0x53c   : > { %v2132_v19 = vsel %vm1301_vm2, %v4281_v30, %v2122_v17 }
 0x548   : > { %v2139_v26 = vpop.permute.xlu1 %2138 }
 0x549   : > { %v2149_v28 = vsel %vm1301_vm2, %v4283_v34, %v2139_v26 }
 0x550   : > { %v2126_v18 = vpop.permute.xlu0 %2125 }
 0x551   : > { %v2134_v20 = vsel %vm2133_vm4, %v2132_v19, %v2126_v18  ;;  %v2401_v18 = vadd.f32 %v2389_v14, %v2385_v53  ;;  %v2402_v19 = vadd.f32 %v2390_v15, %v2386_v7 }
 0x563   : > { %v2130_v21 = vpop.permute.xlu0 %2129 }
 0x564   : > { %v2136_v22 = vsel %vm2135_vm5, %v2134_v20, %v2130_v21  ;;  %v2404_v20 = vpack.c.bf16 %v2402_v19, %v2401_v18 }
 0x565   : > { %v2160_v25 = vpack.c.bf16 %v2136_v22, %v2136_v22 }
 0x567   : > { %3493 = vmatmul.mubr.msk.bf16.vlgmr.msra.gmra.mrb[20].mxu1 %vm1143_vm1, %v2160_v25  ;;  %v2143_v27 = vpop.permute.xlu0 %2142 }
 0x568   : > { %3505 = vmatpush3.bf16.msra.mxu1 %v2172_v4  ;;  %3508 = vmatprep.mubr.msk.bf16.mxu1 %vm3867_vm0, %v3866_v3  ;;  %v2150_v29 = vsel %vm2133_vm4, %v2149_v28, %v2143_v27 }
 0x569   : > { %3506 = vmatprep.subr.bf16.mxu1 %v3866_v3 }
 0x56b   : > { %v2147_v31 = vpop.permute.xlu0 %2146 }
 0x56c   : > { %v2151_v30 = vsel %vm2135_vm5, %v2150_v29, %v2147_v31  ;;  %3507 = vmatpush3.bf16.msra.mxu1 %v2173_v8  ;;  %v2387_v8 = vld [vmem:[%s4577_s4] sm:$0xff]  ;;  %s4601_s4 = sld [smem:[#allocation30_spill]] }
 0x56d   : > { %v2161_v32 = vpack.c.bf16 %v2151_v30, %v2151_v30  ;;  %v2162_v33 = vadd.f32 %v2151_v30, %v2136_v22  ;;  %3520 = vmatprep.subr.bf16.mxu1 %v3866_v3  ;;  %v2397_v11 = vpack.c.bf16 %v2388_v10, %v2387_v8  ;;  %v2399_v12 = vadd.f32 %v2387_v8, %v2383_v5  ;;  %v3258_v31 = vld [vmem:[%s4586_s5] ss:$0 sm:$0xff]  ;;  %s4593_s5 = sld [smem:[#allocation22_spill]] }
 0x56f   : > { %v2163_v35 = vpack.c.bf16 %v2162_v33, %v2162_v33  ;;  %3501 = vmatmul.mubr.msk.bf16.vlgmr.msra.gmra.mrb[40].mxu0 %vm1143_vm1, %v2161_v32  ;;  %v2403_v17 = vpack.c.bf16 %v2400_v13, %v2399_v12  ;;  %v3259_v32 = vld [vmem:[%s4587_s9] ss:$0 sm:$0xff]  ;;  %s4594_s9 = sld [smem:[#allocation25_spill]] }
 0x570   : > { %3516 = vmatprep.mubr.msk.bf16.mxu0 %vm3867_vm0, %v3866_v3  ;;  %3513 = vmatpush3.bf16.msra.mxu0 %v2395_v55 }
 0x571   : > { %3509 = vmatmul.mubr.msk.bf16.vlgmr.msra.gmra.mrb[24].mxu1 %vm1143_vm1, %v2163_v35  ;;  %3514 = vmatprep.subr.bf16.mxu0 %v3866_v3 }
 0x572   : > { %3524 = vmatprep.mubr.msk.bf16.mxu1 %vm3867_vm0, %v3866_v3  ;;  %3521 = vmatpush3.bf16.msra.mxu1 %v2397_v11 }
 0x573   : > { %3522 = vmatprep.subr.bf16.mxu1 %v3866_v3 }
 0x574   : > { %3515 = vmatpush3.bf16.msra.mxu0 %v2396_v9 }
 0x575   : > { %3528 = vmatprep.subr.bf16.mxu0 %v3866_v3 }
 0x576   : > { %3523 = vmatpush3.bf16.msra.mxu1 %v2398_v16 }
 0x577   : > { %3536 = vmatprep.subr.bf16.mxu1 %v3866_v3 }
 0x63a   : > { %v2211_v34 = vpop.f32.mrb[20].mxu1 }
 0x63b   : > { %v3494_v36 = vpop.f32.mrb[21].mxu1 }
 0x63c   : > { %v2214_v37 = vpop.f32.mrb[22].mxu1 }
 0x63d   : > { %v3495_v38 = vpop.f32.mrb[23].mxu1 }
 0x63e   : > { %v3261_v38 = vld [vmem:[%s4589_s3] ss:$0 sm:$0xff]  ;;  %s4596_s3 = sld [smem:[#allocation31_spill]] }
 0x642   : > { %v2254_v39 = vpop.f32.mrb[40].mxu0 }
 0x643   : > { %v2303_v41 = vsub.f32 %v2211_v34, %v2254_v39  ;;  %v3502_v42 = vpop.f32.mrb[41].mxu0 }
 0x644   : > { %v2257_v43 = vpop.f32.mrb[42].mxu0  ;;  %v2297_v44 = vpop.f32.mrb[24].mxu1 }
 0x645   : > { %v2313_v45 = vadd.f32 %v3256_v40, %v2303_v41  ;;  %v2304_v46 = vsub.f32 %v2297_v44, %v2211_v34  ;;  %v3503_v47 = vpop.f32.mrb[43].mxu0  ;;  %v3510_v48 = vpop.f32.mrb[25].mxu1  ;;  %v3260_v34 = vld [vmem:[%s4588_s13] ss:$0 sm:$0xff]  ;;  %s4595_s13 = sld [smem:[#allocation26_spill]] }
 0x646   : > { %v2300_v49 = vpop.f32.mrb[26].mxu1  ;;  %v2590_v48 = vld [vmem:[%s4590_s1 + $0x10] sm:$0xff] }
 0x647   : > { %v2305_v51 = vsub.f32 %v2304_v46, %v2254_v39  ;;  %v3511_v52 = vpop.f32.mrb[27].mxu1  ;;  %v2322_v54 = vadd.f32 %v2313_v45, %v4145_v23  ;;  %v2588_v45 = vld [vmem:[%s4590_s1] sm:$0xff]  ;;  %v2589_v46 = vld [vmem:[%s4590_s1 + $0x8] sm:$0xff]  ;;  %v2591_v49 = vld [vmem:[%s4590_s1 + $0x18] sm:$0xff] }
 0x648   : > { %v2604_v47 = vpack.c.bf16 %v2589_v46, %v2588_v45  ;;  %v2593_v52 = vld [vmem:[%s4590_s1 + $0x28] sm:$0xff] }
 0x649   : > { %v2325_v56 = vsel %vm1143_vm1, %v2322_v54, 0.0  ;;  %v2321_v57 = vadd.f32 %v3257_v50, %v2305_v51  ;;  %v2605_v50 = vpack.c.bf16 %v2591_v49, %v2590_v48  ;;  %v2592_v51 = vld [vmem:[%s4590_s1 + $0x20] sm:$0xff] }
 0x64a   : > { %2326 = vadd.xlane.f32.xlu0 %v2325_v56  ;;  %v2594_v56 = vld [vmem:[%s4590_s1 + $0x30] sm:$0xff] }
 0x64b   : > { %v2353_v58 = vadd.f32 %v2321_v57, %v4147_v24  ;;  %v2595_v57 = vld [vmem:[%s4590_s1 + $0x38] sm:$0xff] }
 0x64d   : > { %v2356_v59 = vsel %vm1143_vm1, %v2353_v58, 0.0 }
 0x64e   : > { %2357 = vadd.xlane.f32.xlu1 %v2356_v59  ;;  %v2580_v59 = vld [vmem:[%s4591_s7] sm:$0xff] }
 0x64f   : > { %v4382_v6 = vadd.f32 %v2588_v45, %v2580_v59 }
 0x6d7   : > { %v2327_v60 = vpop.xlane.xlu0 %2326 }
 0x6d8   : > { %v2329_v61 = vmul.f32 0.03125, %v2327_v60  ;;  %v2581_v60 = vld [vmem:[%s4591_s7 + $0x8] sm:$0xff] }
 0x6d9   : > { %v4384_v55 = vadd.f32 %v2589_v46, %v2581_v60 }
 0x6da   : > { %v2330_v62 = vsub.f32 %v2322_v54, %v2329_v61  ;;  %v2606_v54 = vpack.c.bf16 %v2593_v52, %v2592_v51  ;;  %v2600_v61 = vpack.c.bf16 %v2581_v60, %v2580_v59 }
 0x6db   : > { %v2358_v63 = vpop.xlane.xlu1 %2357  ;;  %v2616_v53 = vpack.c.bf16 %v4384_v55, %v4382_v6 }
 0x6dc   : > { %v2359_v0 = vmul.f32 0.03125, %v2358_v63  ;;  %v2331_v23 = vmul.f32 %v2330_v62, %v2330_v62  ;;  %v2583_v63 = vld [vmem:[%s4591_s7 + $0x18] sm:$0xff] }
 0x6dd   : > { %v4391_v8 = vadd.f32 %v2591_v49, %v2583_v63 }
 0x6de   : > { %v2360_v1 = vsub.f32 %v2353_v58, %v2359_v0  ;;  %v2332_v2 = vsel %vm1143_vm1, %v2331_v23, 0.0  ;;  %v2607_v58 = vpack.c.bf16 %v2595_v57, %v2594_v56  ;;  %v2584_v23 = vld [vmem:[%s4591_s7 + $0x20] sm:$0xff] }
 0x6df   : > { %2333 = vadd.xlane.f32.xlu0 %v2332_v2  ;;  %v4395_v10 = vadd.f32 %v2592_v51, %v2584_v23 }
 0x6e0   : > { %v2361_v4 = vmul.f32 %v2360_v1, %v2360_v1 }
 0x6e2   : > { %v2362_v24 = vsel %vm1143_vm1, %v2361_v4, 0.0  ;;  %v2586_v4 = vld [vmem:[%s4591_s7 + $0x30] sm:$0xff] }
 0x6e3   : > { %2363 = vadd.xlane.f32.xlu0 %v2362_v24  ;;  %v2587_v24 = vld [vmem:[%s4591_s7 + $0x38] sm:$0xff]  ;;  %v4401_v13 = vadd.f32 %v2594_v56, %v2586_v4 }
 0x6e4   : > { %v2603_v5 = vpack.c.bf16 %v2587_v24, %v2586_v4  ;;  %v4403_v14 = vadd.f32 %v2595_v57, %v2587_v24 }
 0x6e6   : > { %v2619_v15 = vpack.c.bf16 %v4403_v14, %v4401_v13 }
 0x76c   : > { %v2334_v21 = vpop.xlane.xlu0 %2333 }
 0x76d   : > { %v2335_v22 = vmul.f32 0.03125, %v2334_v21  ;;  %v3265_v21 = vld [vmem:[%s4592_s10] ss:$0 sm:$0xff]  ;;  %s4597_s10 = sld [smem:[#allocation32_spill]] }
 0x76f   : > { %v2336_v25 = vadd.f32 1e-05, %v2335_v22 }
 0x770   : > { %v2364_v26 = vpop.xlane.xlu0 %2363 }
 0x771   : > { %3723 = vrsqrt.f32 %v2336_v25  ;;  %v2365_v27 = vmul.f32 0.03125, %v2364_v26 }
 0x773   : > { %v2366_v28 = vadd.f32 1e-05, %v2365_v27 }
 0x775   : > { %3725 = vrsqrt.f32 %v2366_v28 }
 0x77b   : > { %v3724_v29 = vpop.eup %3723 }
 0x77c   : > { %v2338_v30 = vmul.f32 %v3724_v29, %v2330_v62  ;;  %v2582_v62 = vld [vmem:[%s4591_s7 + $0x10] sm:$0xff] }
 0x77d   : > { %v2601_v0 = vpack.c.bf16 %v2583_v63, %v2582_v62  ;;  %v4389_v7 = vadd.f32 %v2590_v48, %v2582_v62 }
 0x77e   : > { %v2345_v33 = vmul.f32 %v3258_v31, %v2338_v30 }
 0x77f   : > { %v3726_v35 = vpop.eup %3725  ;;  %v2617_v9 = vpack.c.bf16 %v4391_v8, %v4389_v7  ;;  %v3270_v8 = vld [vmem:[%s4594_s9] ss:$0 sm:$0xff]  ;;  %s4599_s9 = sld [smem:[#allocation28_spill]] }
 0x780   : > { %v2368_v36 = vmul.f32 %v3726_v35, %v2360_v1  ;;  %v4337_v37 = vadd.f32 %v3259_v32, %v2345_v33  ;;  %v2585_v1 = vld [vmem:[%s4591_s7 + $0x28] sm:$0xff]  ;;  %v3266_v33 = vld [vmem:[%s4593_s5] ss:$0 sm:$0xff]  ;;  %s4598_s5 = sld [smem:[#allocation27_spill]] }
 0x781   : > { %v2602_v2 = vpack.c.bf16 %v2585_v1, %v2584_v23  ;;  %v4397_v11 = vadd.f32 %v2593_v52, %v2585_v1 }
 0x782   : > { %v2375_v39 = vmul.f32 %v3260_v34, %v2368_v36  ;;  %v2391_v40 = vpack.c.bf16 %v4337_v37, %v4337_v37 }
 0x783   : > { %v2618_v12 = vpack.c.bf16 %v4397_v11, %v4395_v10 }
 0x784   : > { %3517 = vmatmul.mubr.msk.bf16.vlgmr.msra.gmra.mrb[44].mxu0 %vm1143_vm1, %v2391_v40  ;;  %v4343_v41 = vadd.f32 %v3261_v38, %v2375_v39 }
 0x785   : > { %3529 = vmatpush3.bf16.msra.mxu0 %v2403_v17  ;;  %3532 = vmatprep.mubr.msk.bf16.mxu0 %vm3867_vm0, %v3866_v3 }
 0x786   : > { %v2392_v42 = vpack.c.bf16 %v4343_v41, %v4343_v41  ;;  %3530 = vmatprep.subr.bf16.mxu0 %v3866_v3  ;;  %v2393_v43 = vadd.f32 %v4343_v41, %v4337_v37 }
 0x788   : > { %3525 = vmatmul.mubr.msk.bf16.vlgmr.msra.gmra.mrb[28].mxu1 %vm1143_vm1, %v2392_v42  ;;  %v2394_v44 = vpack.c.bf16 %v2393_v43, %v2393_v43 }
 0x789   : > { %3531 = vmatpush3.bf16.msra.mxu0 %v2404_v20  ;;  %3544 = vmatprep.mubr.msk.bf16.mxu1 %vm3867_vm0, %v3866_v3 }
 0x78a   : > { %3548 = vmatprep.subr.bf16.mxu0 %v3866_v3  ;;  %3537 = vmatpush3.bf16.msra.mxu1 %v2600_v61 }
 0x78b   : > { %3538 = vmatprep.subr.bf16.mxu1 %v3866_v3 }
 0x78c   : > { %3533 = vmatmul.mubr.msk.bf16.vlgmr.msra.gmra.mrb[48].mxu0 %vm1143_vm1, %v2394_v44 }
 0x78d   : > { %3556 = vmatprep.mubr.msk.bf16.mxu0 %vm3867_vm0, %v3866_v3  ;;  %3549 = vmatpush3.bf16.msra.mxu0 %v2604_v47 }
 0x78e   : > { %3550 = vmatprep.subr.bf16.mxu0 %v3866_v3  ;;  %3539 = vmatpush3.bf16.msra.mxu1 %v2601_v0 }
 0x78f   : > { %3540 = vmatprep.subr.bf16.mxu1 %v3866_v3 }
 0x791   : > { %3551 = vmatpush3.bf16.msra.mxu0 %v2605_v50 }
 0x792   : > { %3552 = vmatprep.subr.bf16.mxu0 %v3866_v3  ;;  %3541 = vmatpush3.bf16.msra.mxu1 %v2602_v2 }
 0x793   : > { %3542 = vmatprep.subr.bf16.mxu1 %v3866_v3 }
 0x795   : > { %3553 = vmatpush3.bf16.msra.mxu0 %v2606_v54 }
 0x796   : > { %3554 = vmatprep.subr.bf16.mxu0 %v3866_v3  ;;  %3543 = vmatpush3.bf16.msra.mxu1 %v2603_v5 }
 0x797   : > { %3560 = vmatprep.subr.bf16.mxu1 %v3866_v3 }
 0x799   : > { %3555 = vmatpush3.bf16.msra.mxu0 %v2607_v58 }
 0x79a   : > { %3572 = vmatprep.subr.bf16.mxu0 %v3866_v3 }
 0x857   : > { %v2442_v16 = vpop.f32.mrb[44].mxu0 }
 0x858   : > { %v3518_v17 = vpop.f32.mrb[45].mxu0 }
 0x859   : > { %v2445_v18 = vpop.f32.mrb[46].mxu0 }
 0x85a   : > { %v3519_v19 = vpop.f32.mrb[47].mxu0 }
 0x85b   : > { %v2485_v20 = vpop.f32.mrb[28].mxu1 }
 0x85c   : > { %v2534_v22 = vsub.f32 %v2442_v16, %v2485_v20  ;;  %v3526_v25 = vpop.f32.mrb[29].mxu1 }
 0x85d   : > { %v2488_v26 = vpop.f32.mrb[30].mxu1 }
 0x85e   : > { %v2544_v27 = vadd.f32 %v3265_v21, %v2534_v22  ;;  %v3527_v28 = vpop.f32.mrb[31].mxu1 }
 0x85f   : > { %v2528_v29 = vpop.f32.mrb[48].mxu0 }
 0x860   : > { %v2546_v31 = vmul.f32 0.70710677, %v2544_v27  ;;  %v2535_v30 = vsub.f32 %v2528_v29, %v2442_v16  ;;  %v3534_v32 = vpop.f32.mrb[49].mxu0  ;;  %v2545_v0 = vmul.f32 0.5, %v2544_v27 }
 0x861   : > { %v2531_v35 = vpop.f32.mrb[50].mxu0 }
 0x862   : > { %v2547_v34 = vand.u32 2147483647, %v2546_v31  ;;  %v2536_v36 = vsub.f32 %v2535_v30, %v2485_v20  ;;  %v3535_v38 = vpop.f32.mrb[51].mxu0  ;;  %vm2567_vm7 = vcmp.ge.f32.partialorder %v2546_v31, 0.0  ;;  %v3271_v20 = vld [vmem:[%s4595_s13] ss:$0 sm:$0xff] }
 0x863   : > { %v2832_v38 = vld [vmem:[%s4596_s3 + $0x8] sm:$0xff]  ;;  %s4448_s13 = sand.u32 1, %s3821_s23  }
 0x864   : > { %v2548_v39 = vmul.f32 0.3275911, %v2547_v34  ;;  %v2579_v40 = vadd.f32 %v3266_v33, %v2536_v36  ;;  %v2561_v44 = vsub.f32 0.0, %v2547_v34  ;;  %v2831_v36 = vld [vmem:[%s4596_s3] sm:$0xff]  ;;  %s3228_s1 = sshll.u32 %s4448_s13, 3 }
 0x865   : > { %s4453_s7 = scalar_lea.vmem [#allocation2], %s3228_s1 }
 0x866   : > { %v2549_v42 = vadd.f32 1.0, %v2548_v39  ;;  %v2597_v43 = vpack.c.bf16 %v2579_v40, %v2579_v40  ;;  %v2562_v46 = vmul.f32 %v2561_v44, %v2547_v34  ;;  %v2843_v39 = vpack.c.bf16 %v2832_v38, %v2831_v36  ;;  %v2835_v44 = vld [vmem:[%s4597_s10] sm:$0xff] }
 0x868   : > { %3727 = vrcp.f32 %v2549_v42  ;;  %3557 = vmatmul.mubr.msk.bf16.vlgmr.msra.gmra.mrb[52].mxu0 %vm2620_vm6, %v2597_v43  ;;  %v2563_v49 = vmul.f32 1.442695, %v2562_v46  ;;  %v2834_v42 = vld [vmem:[%s4596_s3 + $0x18] sm:$0xff] }
 0x869   : > { %3576 = vmatprep.mubr.msk.bf16.mxu0 %vm3867_vm0, %v3866_v3  ;;  %3573 = vmatpush3.bf16.msra.mxu0 %v2843_v39 }
 0x86a   : > { %3729 = vpow2.f32 %v2563_v49  ;;  %3574 = vmatprep.subr.bf16.mxu0 %v3866_v3  ;;  %v2837_v49 = vld [vmem:[%s4597_s10 + $0x10] sm:$0xff] }
 0x872   : > { %v3728_v45 = vpop.eup %3727 }
 0x873   : > { %v2552_v47 = vmul.f32 1.0614054, %v3728_v45 }
 0x874   : > { %v3730_v59 = vpop.eup %3729 }
 0x875   : > { %v2553_v48 = vadd.f32 -1.4531521, %v2552_v47  ;;  %v2847_v47 = vadd.f32 %v2835_v44, %v2831_v36 }
 0x877   : > { %v2554_v50 = vmul.f32 %v3728_v45, %v2553_v48 }
 0x879   : > { %v2555_v51 = vadd.f32 1.4214138, %v2554_v50  ;;  %v2838_v50 = vld [vmem:[%s4597_s10 + $0x18] sm:$0xff] }
 0x87b   : > { %v2556_v52 = vmul.f32 %v3728_v45, %v2555_v51 }
 0x87d   : > { %v2557_v54 = vadd.f32 -0.28449672, %v2556_v52  ;;  %v2846_v52 = vpack.c.bf16 %v2838_v50, %v2837_v49 }
 0x87f   : > { %v2558_v56 = vmul.f32 %v3728_v45, %v2557_v54 }
 0x881   : > { %v2559_v57 = vadd.f32 0.2548296, %v2558_v56  ;;  %v2850_v56 = vadd.f32 %v2838_v50, %v2834_v42 }
 0x883   : > { %v2560_v58 = vmul.f32 %v3728_v45, %v2559_v57  ;;  %v2836_v45 = vld [vmem:[%s4597_s10 + $0x8] sm:$0xff]  ;;  %s3882_s10 = smov [#allocation2]  }
 0x884   : > { %v2845_v46 = vpack.c.bf16 %v2836_v45, %v2835_v44  ;;  %v2848_v48 = vadd.f32 %v2836_v45, %v2832_v38  ;;  %s3739_s14 = sshll.u32 %s3882_s10, 4  ;;  %s3740_s14 = int_to_ptr.vmem [resolvable:$false] %s3739_s14 }
 0x885   : > { %v2565_v60 = vmul.f32 %v3730_v59, %v2560_v58  ;;  %s3741_s17 = scalar_lea.vmem %s3740_s14, 256 }
 0x886   : > { %v2851_v51 = vpack.c.bf16 %v2848_v48, %v2847_v47 }
 0x887   : > { %v2566_v61 = vsub.f32 1.0, %v2565_v60 }
 0x889   : > { %v2568_v62 = vsub.f32 0.0, %v2566_v61 }
 0x88b   : > { %v2569_v63 = vsel %vm2567_vm7, %v2566_v61, %v2568_v62  ;;  %v3272_v62 = vld [vmem:[%s4598_s5] ss:$0 sm:$0xff]  ;;  %s4463_s5 = scalar_lea.vmem [#allocation4], %s3228_s1  ;;  %s3005_s1 = scalar_lea.sflag [#allocation3], %s4448_s13 }
 0x88c   : > { %v2570_v23 = vadd.f32 1.0, %v2569_v63 }
 0x88e   : > { %v2571_v1 = vmul.f32 %v2570_v23, %v2545_v0  ;;  %v3273_v0 = vld [vmem:[%s4599_s9] ss:$0 sm:$0xff] }
 0x890   : > { %v2596_v2 = vpack.c.bf16 %v2571_v1, %v2571_v1  ;;  %v2598_v4 = vadd.f32 %v2579_v40, %v2571_v1  ;;  %v2833_v40 = vld [vmem:[%s4596_s3 + $0x10] sm:$0xff]  ;;  %s4600_s3 = sld [smem:[#allocation29_spill]] }
 0x891   : > { %v2844_v43 = vpack.c.bf16 %v2834_v42, %v2833_v40  ;;  %v2849_v54 = vadd.f32 %v2837_v49, %v2833_v40 }
 0x892   : > { %3545 = vmatmul.mubr.msk.bf16.vlgmr.msra.gmra.mrb[32].mxu1 %vm2620_vm6, %v2596_v2  ;;  %v2599_v24 = vpack.c.bf16 %v2598_v4, %v2598_v4 }
 0x893   : > { %3561 = vmatpush3.bf16.msra.mxu1 %v2616_v53  ;;  %3568 = vmatprep.mubr.msk.bf16.mxu1 %vm3867_vm0, %v3866_v3  ;;  %v2852_v57 = vpack.c.bf16 %v2850_v56, %v2849_v54 }
 0x894   : > { %3562 = vmatprep.subr.bf16.mxu1 %v3866_v3  ;;  %3575 = vmatpush3.bf16.msra.mxu0 %v2844_v43 }
 0x895   : > { %3580 = vmatprep.subr.bf16.mxu0 %v3866_v3 }
 0x897   : > { %3563 = vmatpush3.bf16.msra.mxu1 %v2617_v9 }
 0x898   : > { %3564 = vmatprep.subr.bf16.mxu1 %v3866_v3 }
 0x89b   : > { %3565 = vmatpush3.bf16.msra.mxu1 %v2618_v12 }
 0x89c   : > { %3566 = vmatprep.subr.bf16.mxu1 %v3866_v3 }
 0x89f   : > { %3567 = vmatpush3.bf16.msra.mxu1 %v2619_v15 }
 0x8a0   : > { %3588 = vmatprep.subr.bf16.mxu1 %v3866_v3 }
 0x8a2   : > { %3569 = vmatmul.mubr.msk.bf16.vlgmr.msra.gmra.mrb[36].mxu1 %vm2620_vm6, %v2599_v24 }
 0x8a3   : > { %3592 = vmatprep.mubr.msk.bf16.mxu1 %vm3867_vm0, %v3866_v3  ;;  %3589 = vmatpush3.bf16.msra.mxu1 %v2851_v51 }
 0x8a4   : > { %3590 = vmatprep.subr.bf16.mxu1 %v3866_v3 }
 0x8a7   : > { %3591 = vmatpush3.bf16.msra.mxu1 %v2852_v57 }
 0x93b   : > { %v2701_v5 = vpop.f32.mrb[52].mxu0 }
 0x93c   : > { %v3558_v6 = vpop.f32.mrb[53].mxu0 }
 0x93d   : > { %v2704_v55 = vpop.f32.mrb[54].mxu0 }
 0x93e   : > { %v3559_v53 = vpop.f32.mrb[55].mxu0 }
 0x965   : > { %v2658_v7 = vpop.f32.mrb[32].mxu1 }
 0x966   : > { %v2750_v9 = vsub.f32 %v2658_v7, %v2701_v5  ;;  %v3546_v10 = vpop.f32.mrb[33].mxu1 }
 0x967   : > { %v2661_v11 = vpop.f32.mrb[34].mxu1 }
 0x968   : > { %v2760_v12 = vadd.f32 %v3270_v8, %v2750_v9  ;;  %v3547_v13 = vpop.f32.mrb[35].mxu1  ;;  %v3275_v9 = vld [vmem:[%s4601_s4] ss:$0 sm:$0xff]  ;;  %s3281_s4 = sshll.u32 %s4090_s0, 7 }
 0x969   : > { %s4474_s9 = scalar_lea.hbm %s4574_s6, %s3281_s4 }
 0x96a   : > { %v2769_v14 = vadd.f32 %v2760_v12, %v4337_v37 }
 0x96c   : > { %v2772_v15 = vsel %vm1143_vm1, %v2769_v14, 0.0 }
 0x96d   : > { %2773 = vadd.xlane.f32.xlu0 %v2772_v15 }
 0x975   : > { %v2744_v16 = vpop.f32.mrb[36].mxu1 }
 0x976   : > { %v2751_v17 = vsub.f32 %v2744_v16, %v2658_v7  ;;  %v3570_v18 = vpop.f32.mrb[37].mxu1  ;;  %v3274_v7 = vld [vmem:[%s4600_s3] ss:$0 sm:$0xff]  ;;  %s3029_s3 = sshll.u32 %s4453_s7, 4  ;;  %s3030_s3 = int_to_ptr.vmem [resolvable:$true] %s3029_s3 }
 0x977   : > { %v2747_v19 = vpop.f32.mrb[38].mxu1  ;;  %s3735_s8 = scalar_lea.vmem %s3030_s3, 128  ;;  %p3742_p0 = scmp.lt.s32.totalorder %s3030_s3, %s3740_s14 }
 0x978   : > { %v2752_v21 = vsub.f32 %v2751_v17, %v2701_v5  ;;  %v3571_v22 = vpop.f32.mrb[39].mxu1  ;;  %p3736_p11 = scmp.ne.s32.totalorder %s3030_s3, %s3735_s8  ;;  %p3743_p1 = scmp.lt.s32.totalorder %s3741_s17, %s3735_s8 }
 0x97a   : > { %v2768_v25 = vadd.f32 %v3271_v20, %v2752_v21  ;;  %p3737_p12 = pnand %p3736_p11, %p4107_p5  ;;  %p3744_p2 = por %p3743_p1, %p3742_p0 }
 0x97c   : > { %v2799_v26 = vadd.f32 %v2768_v25, %v4343_v41  ;;  %p3738_p13 = pneg %p3737_p12 }
 0x97e   : > { %v2802_v27 = vsel %vm1143_vm1, %v2799_v26, 0.0  ;;  %p3745_p3 = pnand %p3744_p2, %p3738_p13 }
 0x97f   : > { %2803 = vadd.xlane.f32.xlu1 %v2802_v27 }
 0x9fa   : > { %v2774_v28 = vpop.xlane.xlu0 %2773 }
 0x9fb   : > { %v2775_v37 = vmul.f32 0.03125, %v2774_v28 }
 0x9fd   : > { %v2776_v29 = vsub.f32 %v2769_v14, %v2775_v37 }
 0x9ff   : > { %v2777_v31 = vmul.f32 %v2776_v29, %v2776_v29 }
 0xa01   : > { %v2778_v30 = vsel %vm1143_vm1, %v2777_v31, 0.0 }
 0xa02   : > { %2779 = vadd.xlane.f32.xlu0 %v2778_v30 }
 0xa0c   : > { %v2804_v32 = vpop.xlane.xlu1 %2803 }
 0xa0d   : > { %v2805_v33 = vmul.f32 0.03125, %v2804_v32 }
 0xa0f   : > { %v2806_v35 = vsub.f32 %v2799_v26, %v2805_v33 }
 0xa11   : > { %v2807_v34 = vmul.f32 %v2806_v35, %v2806_v35 }
 0xa13   : > { %v2808_v41 = vsel %vm1143_vm1, %v2807_v34, 0.0 }
 0xa14   : > { %2809 = vadd.xlane.f32.xlu1 %v2808_v41 }
 0xa8f   : > { %v2780_v58 = vpop.xlane.xlu0 %2779 }
 0xa90   : > { %v2781_v59 = vmul.f32 0.03125, %v2780_v58 }
 0xa92   : > { %v2782_v60 = vadd.f32 1e-05, %v2781_v59 }
 0xa94   : > { %3731 = vrsqrt.f32 %v2782_v60 }
 0xa9e   : > { %v3732_v61 = vpop.eup %3731 }
 0xa9f   : > { %v2784_v63 = vmul.f32 %v3732_v61, %v2776_v29 }
 0xaa1   : > { %v2791_v23 = vmul.f32 %v3272_v62, %v2784_v63  ;;  %v2810_v1 = vpop.xlane.xlu1 %2809 }
 0xaa2   : > { %v2811_v2 = vmul.f32 0.03125, %v2810_v1 }
 0xaa3   : > { %v2798_v4 = vadd.f32 %v3273_v0, %v2791_v23 }
 0xaa4   : > { %v2812_v24 = vadd.f32 1e-05, %v2811_v2 }
 0xaa5   : > { %v2839_v5 = vpack.c.bf16 %v2798_v4, %v2798_v4  ;;  %2829 = vst.msk [vmem:[%s4453_s7] sm:$0xff] %vm1143_vm1, %v2798_v4 }
 0xaa6   : > { %3733 = vrsqrt.f32 %v2812_v24 }
 0xaa7   : > { %v2854_v6 = vshrl.u32 %v2839_v5, 16 }
 0xaa9   : > { %v2856_v55 = vrot.slane %v2854_v6, 3 }
 0xaab   : > { %3577 = vmatmul.mubr.msk.bf16.vlgmr.msra.gmra.mrb[56].mxu0 %vm1143_vm1, %v2856_v55 }
 0xaac   : > { %3581 = vmatpush3.bf16.msra.mxu0 %v2845_v46  ;;  %3584 = vmatprep.mubr.msk.bf16.mxu0 %vm3867_vm0, %v3866_v3 }
 0xaad   : > { %3582 = vmatprep.subr.bf16.mxu0 %v3866_v3 }
 0xab0   : > { %v3734_v53 = vpop.eup %3733  ;;  %3583 = vmatpush3.bf16.msra.mxu0 %v2846_v52 }
 0xab1   : > { %v2814_v8 = vmul.f32 %v3734_v53, %v2806_v35 }
 0xab3   : > { %v2821_v10 = vmul.f32 %v3274_v7, %v2814_v8 }
 0xab5   : > { %v2828_v11 = vadd.f32 %v3275_v9, %v2821_v10 }
 0xab7   : > { %v2840_v12 = vpack.c.bf16 %v2828_v11, %v2828_v11  ;;  %v2841_v13 = vadd.f32 %v2828_v11, %v2798_v4  ;;  %2830 = vst.msk [vmem:[%s4463_s5] sm:$0xff] %vm1143_vm1, %v2828_v11 }
 0xab9   : > { %v2901_v3 = vshrl.u32 %v2840_v12, 16  ;;  %v2842_v14 = vpack.c.bf16 %v2841_v13, %v2841_v13 }
 0xabb   : > { %v2903_v15 = vrot.slane %v2901_v3, 3  ;;  %v2948_v16 = vshrl.u32 %v2842_v14, 16 }
 0xabd   : > { %3585 = vmatmul.mubr.msk.bf16.vlgmr.msra.gmra.mrb[60].mxu0 %vm1143_vm1, %v2903_v15  ;;  %v2950_v17 = vrot.slane %v2948_v16, 3 }
 0xabf   : > { %3593 = vmatmul.mubr.msk.bf16.vlgmr.msra.gmra.mrb[40].mxu1 %vm1143_vm1, %v2950_v17 }
 0xac0   : > { %3748 = shalt.err (!%p3745_p3)
}
 0xac1   : > { %s3749_s7 = scalar_lea.hbm %s4474_s9, 128  ;;  %s3753_s10 = scalar_lea.hbm %s4574_s6, 256 }
 0xac2   : > { %p3750_p4 = scmp.ne.s32.totalorder %s4474_s9, %s3749_s7  ;;  %p3754_p9 = scmp.lt.u32.totalorder %s4474_s9, %s4574_s6 }
 0xac3   : > { %p3755_p10 = scmp.lt.u32.totalorder %s3753_s10, %s3749_s7  ;;  %p3757_p12 = scmp.lt.u32.totalorder %s3749_s7, %s4474_s9 }
 0xac4   : > { %p3751_p7 = pnand %p3750_p4, %p4107_p5 }
 0xac5   : > { %p3756_p11 = por %p3755_p10, %p3754_p9 }
 0xac6   : > { %p3752_p8 = pneg %p3751_p7 }
 0xac7   : > { %p3758_p0 = por %p3757_p12, %p3756_p11 }
 0xac9   : > { %p3759_p13 = pnand %p3758_p0, %p3752_p8 }
 0xacb   : > { %3762 = shalt.err (!%p3759_p13)
}
 0xacc   : > { %3612 = dma.vmem_to_hbm [thread:$0]  (%p4107_p5), %s3030_s3, 128, %s4474_s9, %s3005_s1  }
 0xacd   : > { %s4493_s17 = scalar_lea.hbm %s4057_s30, %s3281_s4  ;;  %s3042_s8 = sshll.u32 %s4463_s5, 4  ;;  %s3043_s8 = int_to_ptr.vmem [resolvable:$true] %s3042_s8 }
 0xace   : > { %s3010_s14 = scalar_lea.sflag [#allocation5], %s4448_s13  ;;  %s3763_s10 = scalar_lea.vmem %s3043_s8, 128 }
 0xacf   : > { %p3764_p1 = scmp.ne.s32.totalorder %s3043_s8, %s3763_s10  ;;  %s3883_s7 = smov [#allocation4]  }
 0xad0   : > { %s3767_s6 = sshll.u32 %s3883_s7, 4  ;;  %s3768_s6 = int_to_ptr.vmem [resolvable:$false] %s3767_s6 }
 0xad1   : > { %p3765_p2 = pnand %p3764_p1, %p4107_p5  ;;  %s3769_s19 = scalar_lea.vmem %s3768_s6, 256 }
 0xad2   : > { %p3770_p4 = scmp.lt.s32.totalorder %s3043_s8, %s3768_s6  ;;  %p3771_p7 = scmp.lt.s32.totalorder %s3769_s19, %s3763_s10 }
 0xad3   : > { %p3766_p3 = pneg %p3765_p2 }
 0xad4   : > { %p3772_p8 = por %p3771_p7, %p3770_p4 }
 0xad6   : > { %p3773_p9 = pnand %p3772_p8, %p3766_p3 }
 0xad8   : > { %3776 = shalt.err (!%p3773_p9)
}
 0xad9   : > { %s3777_s0 = scalar_lea.hbm %s4493_s17, 128  ;;  %s3781_s13 = scalar_lea.hbm %s4057_s30, 256 }
 0xada   : > { %p3778_p10 = scmp.ne.s32.totalorder %s4493_s17, %s3777_s0  ;;  %p3782_p0 = scmp.lt.u32.totalorder %s4493_s17, %s4057_s30 }
 0xadb   : > { %p3783_p13 = scmp.lt.u32.totalorder %s3781_s13, %s3777_s0  ;;  %p3785_p2 = scmp.lt.u32.totalorder %s3777_s0, %s4493_s17 }
 0xadc   : > { %p3779_p11 = pnand %p3778_p10, %p4107_p5 }
 0xadd   : > { %p3784_p1 = por %p3783_p13, %p3782_p0 }
 0xade   : > { %p3780_p12 = pneg %p3779_p11 }
 0xadf   : > { %p3786_p4 = por %p3785_p2, %p3784_p1 }
 0xae1   : > { %p3787_p3 = pnand %p3786_p4, %p3780_p12 }
 0xae3   : > { %3790 = shalt.err (!%p3787_p3)
}
 0xae4   : > { %s4602_s19 = sld [smem:[#allocation33_spill]]  ;;  %s4603_s6 = sld [smem:[#allocation34_spill]]  ;;  %vm2999_vm8 = vcmask 253952  }
 0xae5   : > { %3613 = dma.vmem_to_hbm [thread:$0]  (%p4107_p5), %s3043_s8, 128, %s4493_s17, %s3010_s14  }
 0xae6   : > { %s1106_s5 = scalar_lea.vmem %s4062_s12, %s4135_s18  ;;  %s1109_s15 = scalar_lea.vmem %s4067_s20, %s4135_s18 }
 0xaea   : > { %v2997_v25 = vld [vmem:[%s4602_s19] sm:$0x1] }
 0xaeb   : > { %v3001_v33 = vld [vmem:[%s4603_s6] sm:$0x1] }
 0xb7e   : > { %v2894_v18 = vpop.f32.mrb[56].mxu0 }
 0xb7f   : > { %v3578_v19 = vpop.f32.mrb[57].mxu0 }
 0xb80   : > { %v2897_v20 = vpop.f32.mrb[58].mxu0 }
 0xb81   : > { %v3579_v21 = vpop.f32.mrb[59].mxu0 }
 0xb90   : > { %v2941_v22 = vpop.f32.mrb[60].mxu0 }
 0xb91   : > { %v2994_v26 = vsub.f32 %v2894_v18, %v2941_v22  ;;  %v3586_v27 = vpop.f32.mrb[61].mxu0 }
 0xb92   : > { %v2944_v28 = vpop.f32.mrb[62].mxu0  ;;  %v2988_v37 = vpop.f32.mrb[40].mxu1 }
 0xb93   : > { %v2998_v29 = vadd.f32 %v2997_v25, %v2994_v26  ;;  %v2995_v31 = vsub.f32 %v2988_v37, %v2894_v18  ;;  %v3587_v30 = vpop.f32.mrb[63].mxu0  ;;  %v3594_v32 = vpop.f32.mrb[41].mxu1 }
 0xb94   : > { %v2991_v35 = vpop.f32.mrb[42].mxu1 }
 0xb95   : > { %3000 = vst.msk [vmem:[%s1106_s5] sm:$0x1] %vm2999_vm8, %v2998_v29  ;;  %v2996_v34 = vsub.f32 %v2995_v31, %v2941_v22  ;;  %v3595_v41 = vpop.f32.mrb[43].mxu1 }
 0xb97   : > { %v3002_v36 = vadd.f32 %v3001_v33, %v2996_v34 }
 0xb99   : > { %3003 = vst.msk [vmem:[%s1109_s15] sm:$0x1] %vm2999_vm8, %v3002_v36 }
 0xb9a PF: > { %p3623_p5 = scmp.ge.s32.totalorder %s3829_s28, 2  ;;  %s3060_s4 = sand.u32 1, %s3817_s22  }
 0xb9b   : > { %s3061_s3 = scalar_lea.sflag [#allocation3], %s3060_s4 }
 0xb9c   : > { %p3617_p7 = pnand %p3623_p5, %p4111_p6 }
 0xb9e   : > { %3808 = dma.done.wait (!%p3617_p7), %s3061_s3, 128  }
 0xb9f   : > { %3810 = vsyncadd (!%p3617_p7), %s3061_s3, 4294967168  ;;  %s3070_s9 = scalar_lea.sflag [#allocation5], %s3060_s4 }
 0xba0   : > { %3812 = dma.done.wait (!%p3617_p7), %s3070_s9, 128  }
 0xba1   : > { %3814 = vsyncadd (!%p3617_p7), %s3070_s9, 4294967168  ;;  %p85_p8 = scmp.ge.s32.totalorder %s4094_s2, 4   ;;  %s4604_s22 = smov %s3821_s23 }
 0xba2   : > { %s4605_s23 = smov %s3825_s26  ;;  %s4606_s26 = smov %s4105_s11 }
 0xba3   : > { %s4607_s28 = smov %s4094_s2  ;;  %87 = sbr.rel (!%p85_p8) target bundleno = 70 (0x46), region = 262 }
 0xbaa   :  { %3087 = vsyncpa [#allocation3], 1 }
 0xbab   :  { %3089 = vsyncpa [#allocation3 + $0x1], 1 }
 0xbac   :  { %3090 = vsyncpa [#allocation5], 1 }
 0xbad   :  { %3092 = vsyncpa [#allocation5 + $0x1], 1 }

// kernel: qilm_forward_pallas.2
= control target key start
LH: loop header
LB: loop body
LE: loop exit
PB: predicated region body
PF: predicated region fallthrough
CT: control target
= control target key end

     0   :  { %s3210_s6 = smov 1   ;;  %s3211_s10 = smov 2   ;;  %s3741_s0 = inlined_call_operand.smem [shape: u32[30], index: -1, kind: input, shape index: {}] }
   0x1   :  { %s3263_s5 = sld [smem:[%s3741_s0]]   ;;  %s3212_s14 = smov 3  }
   0x2   :  { %s3268_s9 = sld [smem:[%s3741_s0 + %s3210_s6]]   ;;  %s3213_s18 = smov 4  }
   0x3   :  { %s3273_s13 = sld [smem:[%s3741_s0 + %s3211_s10]]   ;;  %s3214_s22 = smov 5  }
   0x4   :  { %s3278_s17 = sld [smem:[%s3741_s0 + %s3212_s14]]   ;;  %s3215_s26 = smov 6  }
   0x5   :  { %s3283_s21 = sld [smem:[%s3741_s0 + %s3213_s18]]   ;;  %s3216_s30 = smov 7  }
   0x6   :  { %s3288_s25 = sld [smem:[%s3741_s0 + %s3214_s22]]   ;;  %s3217_s4 = smov 8  }
   0x7   :  { %s3293_s29 = sld [smem:[%s3741_s0 + %s3215_s26]]   ;;  %s3218_s10 = smov 9  }
   0x8   :  { %s3298_s3 = sld [smem:[%s3741_s0 + %s3216_s30]]   ;;  %s3219_s15 = smov 10  }
   0x9   :  { %s3303_s8 = sld [smem:[%s3741_s0 + %s3217_s4]]   ;;  %s3220_s20 = smov 11  }
   0xa   :  { %s3308_s14 = sld [smem:[%s3741_s0 + %s3218_s10]]   ;;  %s3221_s26 = smov 12  }
   0xb   :  { %s3313_s19 = sld [smem:[%s3741_s0 + %s3219_s15]]   ;;  %s3222_s1 = smov 13  }
   0xc   :  { %s3318_s24 = sld [smem:[%s3741_s0 + %s3220_s20]]   ;;  %s3223_s7 = smov 14  }
   0xd   :  { %s3323_s30 = sld [smem:[%s3741_s0 + %s3221_s26]]   ;;  %s3224_s15 = smov 15  }
   0xe   :  { %s3328_s6 = sld [smem:[%s3741_s0 + %s3222_s1]]   ;;  %s3225_s22 = smov 16  }
   0xf   :  { %s3333_s12 = sld [smem:[%s3741_s0 + %s3223_s7]]   ;;  %s3226_s28 = smov 17  }
  0x10   :  { %s3338_s20 = sld [smem:[%s3741_s0 + %s3224_s15]]   ;;  %s3227_s7 = smov 18  }
  0x11   :  { %s3343_s27 = sld [smem:[%s3741_s0 + %s3225_s22]]   ;;  %s3228_s15 = smov 19  }
  0x12   :  { %s3348_s4 = sld [smem:[%s3741_s0 + %s3226_s28]]   ;;  %s3229_s22 = smov 20  }
  0x13   :  { %3744 = sst [smem:[#allocation2_spill]] %s3323_s30  ;;  %s3230_s28 = smov 21  }
  0x14   :  { %3745 = sst [smem:[#allocation3_spill]] %s3328_s6 }
  0x15   :  { %3746 = sst [smem:[#allocation4_spill]] %s3333_s12 }
  0x16   :  { %3747 = sst [smem:[#allocation5_spill]] %s3338_s20 }
  0x17   :  { %s3353_s12 = sld [smem:[%s3741_s0 + %s3227_s7]]   ;;  %s3231_s7 = smov 22  }
  0x18   :  { %s3358_s20 = sld [smem:[%s3741_s0 + %s3228_s15]]   ;;  %s3232_s15 = smov 23  }
  0x19   :  { %s3363_s6 = sld [smem:[%s3741_s0 + %s3229_s22]]   ;;  %s3233_s22 = smov 24  }
  0x1a   :  { %s3368_s30 = sld [smem:[%s3741_s0 + %s3230_s28]]   ;;  %s3234_s28 = smov 25  }
  0x1d   :  { %3748 = sst [smem:[#allocation6_spill]] %s3353_s12 }
  0x1e   :  { %3749 = sst [smem:[#allocation7_spill]] %s3358_s20 }
  0x1f   :  { %3750 = sst [smem:[#allocation8_spill]] %s3363_s6 }
  0x20   :  { %3751 = sst [smem:[#allocation9_spill]] %s3368_s30 }
  0x21   :  { %s3373_s12 = sld [smem:[%s3741_s0 + %s3231_s7]]   ;;  %s3235_s7 = smov 26  }
  0x22   :  { %s3378_s20 = sld [smem:[%s3741_s0 + %s3232_s15]]   ;;  %s3236_s15 = smov 27  }
  0x23   :  { %s3383_s6 = sld [smem:[%s3741_s0 + %s3233_s22]]   ;;  %s3237_s22 = smov 28  }
  0x24   :  { %s3388_s30 = sld [smem:[%s3741_s0 + %s3234_s28]]   ;;  %s3238_s28 = smov 29  }
  0x27   :  { %3752 = sst [smem:[#allocation10_spill]] %s3373_s12 }
  0x28   :  { %3753 = sst [smem:[#allocation11_spill]] %s3378_s20 }
  0x29   :  { %3754 = sst [smem:[#allocation12_spill]] %s3383_s6 }
  0x2a   :  { %3755 = sst [smem:[#allocation13_spill]] %s3388_s30 }
  0x2b   :  { %s3393_s12 = sld [smem:[%s3741_s0 + %s3235_s7]]   ;;  %s3410_s7 = smov 0  }
  0x2c   :  { %s3398_s20 = sld [smem:[%s3741_s0 + %s3236_s15]]  }
  0x2d   :  { %s3403_s6 = sld [smem:[%s3741_s0 + %s3237_s22]]  }
  0x2e   :  { %s3408_s30 = sld [smem:[%s3741_s0 + %s3238_s28]]  }
  0x2f LB: > { %s2772_s10 = sadd.s32 4294967295, %s3208_s7   ;;  %p2776_p0 = scmp.ge.s32.totalorder %s3208_s7, 1  ;;  %s3208_s7 = sphi %s3410_s7, %s70_s7  }
  0x30   : > { %p828_p1 = scmp.lt.s32.totalorder %s3208_s7, 3 }
  0x32   : > { %p829_p2 = pnand %p2776_p0, %p828_p1 }
  0x33   : > { %v937_v0 = vld [vmem:[%s3283_s21] sm:$0xff] (!%p829_p2)  ;;  %v938_v1 = vld [vmem:[%s3283_s21 + $0x8] sm:$0xff] (!%p829_p2)  ;;  %p3421_p3 = scmp.lt.s32.totalorder (!%p829_p2), %s2772_s10, 1  ;;  %v3239_v3 = vmov (!%p829_p2), 0.0   ;;  %v939_v6 = vld [vmem:[%s3283_s21 + $0x10] sm:$0xff] (!%p829_p2)  ;;  %vm3240_vm0 = vmmov (!%p829_p2), 0  }
  0x34   : > { %832 = sbr.rel (%p829_p2) target bundleno = 2712 (0xa98), region = 132  ;;  %v941_v2 = vld [vmem:[%s3288_s25] sm:$0xff] (!%p829_p2)  ;;  %2901 = vmatprep.subr.bf16.mxu0 (!%p829_p2), %v3239_v3  ;;  %2909 = vmatprep.subr.bf16.mxu1 (!%p829_p2), %v3239_v3  ;;  %v949_v4 = vpack.c.bf16 (!%p829_p2), %v938_v1, %v937_v0  ;;  %v942_v5 = vld [vmem:[%s3288_s25 + $0x8] sm:$0xff] (!%p829_p2)  ;;  %v940_v7 = vld [vmem:[%s3283_s21 + $0x18] sm:$0xff] (!%p829_p2)  ;;  %vm959_vm1 = vcmask (!%p829_p2), 261120   ;;  %s3241_s18 = smov (!%p829_p2), 88  }
  0x35   : > { %v951_v8 = vpack.c.bf16 (!%p829_p2), %v942_v5, %v941_v2  ;;  %v943_v9 = vld [vmem:[%s3288_s25 + $0x10] sm:$0xff] (!%p829_p2)  ;;  %v944_v10 = vld [vmem:[%s3288_s25 + $0x18] sm:$0xff] (!%p829_p2)  ;;  %2905 = vmatprep.mubr.msk.bf16.mxu0 (!%p829_p2), %vm3240_vm0, %v3239_v3  ;;  %2913 = vmatprep.mubr.msk.bf16.mxu1 (!%p829_p2), %vm3240_vm0, %v3239_v3  ;;  %v950_v11 = vpack.c.bf16 (!%p829_p2), %v940_v7, %v939_v6  ;;  %v929_v13 = vld [vmem:[%s3273_s13] sm:$0xff] (!%p829_p2)  ;;  %v953_v15 = vadd.f32 (!%p829_p2), %v941_v2, %v937_v0  ;;  %s3242_s22 = smov (!%p829_p2), 96   ;;  %s3243_s23 = smov (!%p829_p2), 120   ;;  %vm1117_vm2 = vcmask (!%p829_p2), 64512  }
  0x36   : > { %2902 = vmatpush3.bf16.msra.mxu0 (!%p829_p2), %v949_v4  ;;  %v952_v12 = vpack.c.bf16 (!%p829_p2), %v944_v10, %v943_v9  ;;  %v930_v14 = vld [vmem:[%s3278_s17] sm:$0xff] (!%p829_p2)  ;;  %v954_v16 = vadd.f32 (!%p829_p2), %v942_v5, %v938_v1  ;;  %v955_v26 = vadd.f32 (!%p829_p2), %v943_v9, %v939_v6  ;;  %v956_v27 = vadd.f32 (!%p829_p2), %v944_v10, %v940_v7  ;;  %s3244_s26 = smov (!%p829_p2), 80   ;;  %s3245_s28 = smov (!%p829_p2), 112  }
  0x37   : > { %2910 = vmatpush3.bf16.msra.mxu1 (!%p829_p2), %v951_v8  ;;  %2903 = vmatprep.subr.bf16.mxu0 (!%p829_p2), %v3239_v3  ;;  %v2785_v45 = vld [vmem:[%s3298_s3] ss:$0 sm:$0xff] (!%p829_p2)  ;;  %s3246_s1 = smov (!%p829_p2), 72   ;;  %s3247_s2 = smov (!%p829_p2), 104   ;;  %vm1230_vm3 = vcmask (!%p829_p2), 1043456   ;;  %vm1949_vm4 = vcmask (!%p829_p2), 130048  }
  0x38   : > { %2911 = vmatprep.subr.bf16.mxu1 (!%p829_p2), %v3239_v3  ;;  %v957_v25 = vpack.c.bf16 (!%p829_p2), %v954_v16, %v953_v15  ;;  %v958_v31 = vpack.c.bf16 (!%p829_p2), %v956_v27, %v955_v26  ;;  %v2784_v49 = vld [vmem:[%s3293_s29] ss:$0 sm:$0xff] (!%p829_p2)  ;;  %s3249_s0 = smov (!%p829_p2), 56   ;;  %vm1951_vm5 = vcmask (!%p829_p2), 195584   ;;  %vm2436_vm6 = vcmask (!%p829_p2), 523264  }
  0x3a   : > { %2904 = vmatpush3.bf16.msra.mxu0 (!%p829_p2), %v950_v11 }
  0x3b   : > { %s3770_s10 = smov (!%p3421_p3, %s2772_s10), 1  ;;  %2912 = vmatpush3.bf16.msra.mxu1 %v952_v12  ;;  %2917 = vmatprep.subr.bf16.mxu0 %v3239_v3 }
  0x3c   : > { %s3439_s11 = sshll.u32 %s3770_s10, 3  ;;  %2925 = vmatprep.subr.bf16.mxu1 %v3239_v3  ;;  %s3248_s10 = smov 64  }
  0x3d   : > { %s913_s15 = scalar_lea.vmem %s3263_s5, %s3439_s11  ;;  %s917_s16 = scalar_lea.vmem %s3268_s9, %s3439_s11 }
  0x3e   : > { %v927_v17 = vld [vmem:[%s913_s15] sm:$0xff]  ;;  %s3250_s15 = smov 48  }
  0x3f   : > { %v928_v18 = vld [vmem:[%s917_s16] sm:$0xff]  ;;  %v931_v19 = vmul.f32 %v929_v13, %v927_v17  ;;  %v934_v21 = vmul.f32 %v930_v14, %v927_v17  ;;  %s3251_s16 = smov 40  }
  0x40   : > { %v932_v20 = vmul.f32 %v930_v14, %v928_v18  ;;  %v935_v22 = vmul.f32 %v929_v13, %v928_v18 }
  0x42   : > { %v3449_v23 = vsub.f32 %v931_v19, %v932_v20  ;;  %v3451_v24 = vadd.f32 %v935_v22, %v934_v21 }
  0x44   : > { %v945_v28 = vpack.c.bf16 %v3449_v23, %v3449_v23  ;;  %v946_v29 = vpack.c.bf16 %v3451_v24, %v3451_v24  ;;  %v947_v30 = vadd.f32 %v3451_v24, %v3449_v23 }
  0x46   : > { %2906 = vmatmul.mubr.msk.bf16.vlgmr.msra.gmra.mrb[0].mxu0 %vm959_vm1, %v945_v28  ;;  %2914 = vmatmul.mubr.msk.bf16.vlgmr.msra.gmra.mrb[0].mxu1 %vm959_vm1, %v946_v29  ;;  %v948_v32 = vpack.c.bf16 %v947_v30, %v947_v30 }
  0x47   : > { %2918 = vmatpush3.bf16.msra.mxu0 %v957_v25  ;;  %2921 = vmatprep.mubr.msk.bf16.mxu0 %vm3240_vm0, %v3239_v3 }
  0x48   : > { %2919 = vmatprep.subr.bf16.mxu0 %v3239_v3  ;;  %2927 = vmatprep.mubr.msk.bf16.mxu1 %vm3240_vm0, %v3239_v3 }
  0x4b   : > { %2920 = vmatpush3.bf16.msra.mxu0 %v958_v31 }
  0x4c   : > { %2937 = vmatprep.subr.bf16.mxu0 %v3239_v3 }
  0x4e   : > { %2922 = vmatmul.mubr.msk.bf16.vlgmr.msra.gmra.mrb[4].mxu0 %vm959_vm1, %v948_v32 }
  0x4f   : > { %2939 = vmatprep.mubr.msk.bf16.mxu0 %vm3240_vm0, %v3239_v3 }
 0x119   : > { %v997_v33 = vpop.f32.mrb[0].mxu0  ;;  %v1040_v34 = vpop.f32.mrb[0].mxu1 }
 0x11a   : > { %v1089_v35 = vsub.f32 %v997_v33, %v1040_v34  ;;  %v2907_v36 = vpop.f32.mrb[1].mxu0  ;;  %v2915_v37 = vpop.f32.mrb[1].mxu1 }
 0x11b   : > { %v1000_v38 = vpop.f32.mrb[2].mxu0  ;;  %v1043_v39 = vpop.f32.mrb[2].mxu1 }
 0x11c   : > { %v2908_v40 = vpop.f32.mrb[3].mxu0  ;;  %v2916_v41 = vpop.f32.mrb[3].mxu1  ;;  %v1099_v51 = vadd.f32 %v2784_v49, %v1089_v35 }
 0x11e   : > { %v1108_v54 = vmul.f32 0.35355338, %v1099_v51  ;;  %v3477_v55 = vpack.c.bf16 %v1099_v51, %v1099_v51 }
 0x120   : > { %v1110_v57 = vpack.c.bf16 %v1108_v54, %v1108_v54 }
 0x121   : > { %v1083_v42 = vpop.f32.mrb[4].mxu0 }
 0x122   : > { %v1090_v43 = vsub.f32 %v1083_v42, %v997_v33  ;;  %v2923_v44 = vpop.f32.mrb[5].mxu0 }
 0x123   : > { %v1086_v46 = vpop.f32.mrb[6].mxu0 }
 0x124   : > { %v1091_v47 = vsub.f32 %v1090_v43, %v1040_v34  ;;  %v2924_v48 = vpop.f32.mrb[7].mxu0 }
 0x126   : > { %v1107_v50 = vadd.f32 %v2785_v45, %v1091_v47 }
 0x128   : > { %v1109_v52 = vmul.f32 0.35355338, %v1107_v50  ;;  %v3473_v53 = vpack.c.bf16 %v1107_v50, %v1107_v50 }
 0x12a   : > { %1322 = vrot.lane.b32.xlu1 %v3473_v53, %s3241_s18  ;;  %1115 = vrot.lane.b32.xlu0 %v3473_v53, %s3242_s22  ;;  %v1111_v56 = vpack.c.bf16 %v1109_v52, %v1109_v52 }
 0x12e   : > { %1165 = vrot.lane.b32.xlu0 %v3477_v55, %s3242_s22  ;;  %1320 = vrot.lane.b32.xlu1 %v1111_v56, %s3243_s23  ;;  %s3253_s22 = smov 16  }
 0x132   : > { %1373 = vrot.lane.b32.xlu0 %v3477_v55, %s3241_s18  ;;  %1371 = vrot.lane.b32.xlu1 %v1110_v57, %s3243_s23  ;;  %s3252_s18 = smov 8   ;;  %s3254_s23 = smov 24  }
 0x136   : > { %1528 = vrot.lane.b32.xlu0 %v3473_v53, %s3244_s26  ;;  %1526 = vrot.lane.b32.xlu1 %v1111_v56, %s3245_s28 }
 0x13a   : > { %1578 = vrot.lane.b32.xlu0 %v3477_v55, %s3244_s26  ;;  %1576 = vrot.lane.b32.xlu1 %v1110_v57, %s3245_s28  ;;  %s3757_s26 = sld [smem:[#allocation2_spill]]  ;;  %s3758_s28 = sld [smem:[#allocation3_spill]] }
 0x13e   : > { %1733 = vrot.lane.b32.xlu0 %v3473_v53, %s3246_s1  ;;  %1731 = vrot.lane.b32.xlu1 %v1111_v56, %s3247_s2 }
 0x142   : > { %1783 = vrot.lane.b32.xlu0 %v3477_v55, %s3246_s1  ;;  %1781 = vrot.lane.b32.xlu1 %v1110_v57, %s3247_s2  ;;  %s3759_s1 = sld [smem:[#allocation4_spill]]  ;;  %s3760_s2 = sld [smem:[#allocation5_spill]] }
 0x19c   : > { %v1116_v58 = vpop.permute.xlu0 %1115  ;;  %v1323_v62 = vpop.permute.xlu1 %1322 }
 0x19d   : > { %v1122_v59 = vsel %vm1117_vm2, %v1116_v58, 0  ;;  %v1328_v63 = vsel %vm1117_vm2, %v1323_v62, 0 }
 0x19e   : > { %2926 = vmatpush3.bf16.xpose.msra.mxu1 %v1122_v59 }
 0x19f   : > { %2931 = vmatprep.subr.bf16.mxu1 %v3239_v3 }
 0x1a0   : > { %v1166_v60 = vpop.permute.xlu0 %1165  ;;  %v1321_v1 = vpop.permute.xlu1 %1320 }
 0x1a1   : > { %v1171_v61 = vsel %vm1117_vm2, %v1166_v60, 0 }
 0x1a4   : > { %v1374_v0 = vpop.permute.xlu0 %1373  ;;  %v1372_v5 = vpop.permute.xlu1 %1371 }
 0x1a5   : > { %2928 = vmatmul.mubr.msk.bf16.vlgmr.msra.gmra.mrb[4].mxu1 %vm1117_vm2, %v1111_v56  ;;  %v1379_v2 = vsel %vm1117_vm2, %v1374_v0, 0 }
 0x1a6   : > { %2932 = vmatpush3.bf16.xpose.msra.mxu1 %v1171_v61  ;;  %2933 = vmatprep.mubr.msk.bf16.mxu1 %vm3240_vm0, %v3239_v3 }
 0x1a7   : > { %2949 = vmatprep.subr.bf16.mxu1 %v3239_v3 }
 0x1a8   : > { %v1529_v4 = vpop.permute.xlu0 %1528  ;;  %v1527_v8 = vpop.permute.xlu1 %1526 }
 0x1a9   : > { %v1534_v6 = vsel %vm1117_vm2, %v1529_v4, 0 }
 0x1ac   : > { %v1579_v7 = vpop.permute.xlu0 %1578  ;;  %v1577_v11 = vpop.permute.xlu1 %1576 }
 0x1ad   : > { %v1584_v9 = vsel %vm1117_vm2, %v1579_v7, 0 }
 0x1b0   : > { %v1734_v10 = vpop.permute.xlu0 %1733  ;;  %v1732_v14 = vpop.permute.xlu1 %1731 }
 0x1b1   : > { %2934 = vmatmul.mubr.msk.bf16.vlgmr.msra.gmra.mrb[4].mxu1 %vm1117_vm2, %v1110_v57  ;;  %v1739_v12 = vsel %vm1117_vm2, %v1734_v10, 0 }
 0x1b2   : > { %2950 = vmatpush3.bf16.xpose.msra.mxu1 %v1328_v63  ;;  %2951 = vmatprep.mubr.msk.bf16.mxu1 %vm3240_vm0, %v3239_v3 }
 0x1b3   : > { %2955 = vmatprep.subr.bf16.mxu1 %v3239_v3 }
 0x1b4   : > { %v1784_v13 = vpop.permute.xlu0 %1783  ;;  %v1782_v16 = vpop.permute.xlu1 %1781 }
 0x1b5   : > { %v1789_v15 = vsel %vm1117_vm2, %v1784_v13, 0 }
 0x1b9   : > { %2952 = vmatmul.mubr.msk.bf16.vlgmr.msra.gmra.mrb[8].mxu1 %vm1117_vm2, %v1321_v1 }
 0x1ba   : > { %2956 = vmatpush3.bf16.xpose.msra.mxu1 %v1379_v2  ;;  %2957 = vmatprep.mubr.msk.bf16.mxu1 %vm3240_vm0, %v3239_v3 }
 0x1bb   : > { %2973 = vmatprep.subr.bf16.mxu1 %v3239_v3 }
 0x1c5   : > { %2958 = vmatmul.mubr.msk.bf16.vlgmr.msra.gmra.mrb[8].mxu1 %vm1117_vm2, %v1372_v5 }
 0x1c6   : > { %2974 = vmatpush3.bf16.xpose.msra.mxu1 %v1534_v6  ;;  %2975 = vmatprep.mubr.msk.bf16.mxu1 %vm3240_vm0, %v3239_v3 }
 0x1c7   : > { %2979 = vmatprep.subr.bf16.mxu1 %v3239_v3 }
 0x1cd   : > { %2976 = vmatmul.mubr.msk.bf16.vlgmr.msra.gmra.mrb[12].mxu1 %vm1117_vm2, %v1527_v8 }
 0x1ce   : > { %2980 = vmatpush3.bf16.xpose.msra.mxu1 %v1584_v9  ;;  %2981 = vmatprep.mubr.msk.bf16.mxu1 %vm3240_vm0, %v3239_v3 }
 0x1cf   : > { %2997 = vmatprep.subr.bf16.mxu1 %v3239_v3 }
 0x1d9   : > { %2982 = vmatmul.mubr.msk.bf16.vlgmr.msra.gmra.mrb[12].mxu1 %vm1117_vm2, %v1577_v11 }
 0x1da   : > { %2998 = vmatpush3.bf16.xpose.msra.mxu1 %v1739_v12  ;;  %2999 = vmatprep.mubr.msk.bf16.mxu1 %vm3240_vm0, %v3239_v3 }
 0x1db   : > { %3003 = vmatprep.subr.bf16.mxu1 %v3239_v3 }
 0x1e1   : > { %3000 = vmatmul.mubr.msk.bf16.vlgmr.msra.gmra.mrb[16].mxu1 %vm1117_vm2, %v1732_v14 }
 0x1e2   : > { %3004 = vmatpush3.bf16.xpose.msra.mxu1 %v1789_v15  ;;  %3005 = vmatprep.mubr.msk.bf16.mxu1 %vm3240_vm0, %v3239_v3 }
 0x1e3   : > { %3021 = vmatprep.subr.bf16.mxu1 %v3239_v3 }
 0x1ed   : > { %3006 = vmatmul.mubr.msk.bf16.vlgmr.msra.gmra.mrb[16].mxu1 %vm1117_vm2, %v1782_v16 }
 0x1ee   : > { %3025 = vmatprep.mubr.msk.bf16.mxu1 %vm3240_vm0, %v3239_v3 }
 0x284   : > { %v1207_v17 = vpop.f32.mrb[4].mxu1 }
 0x285   : > { %v2935_v18 = vpop.f32.mrb[5].mxu1  ;;  %v1213_v19 = vsel %vm1117_vm2, %v1207_v17, -inf }
 0x286   : > { %1214 = vmax.xlane.f32.xlu0 %v1213_v19  ;;  %v1210_v20 = vpop.f32.mrb[6].mxu1 }
 0x287   : > { %v2936_v21 = vpop.f32.mrb[7].mxu1 }
 0x298   : > { %v1415_v22 = vpop.f32.mrb[8].mxu1 }
 0x299   : > { %v2959_v25 = vpop.f32.mrb[9].mxu1  ;;  %v1421_v26 = vsel %vm1117_vm2, %v1415_v22, -inf }
 0x29a   : > { %1422 = vmax.xlane.f32.xlu1 %v1421_v26  ;;  %v1418_v27 = vpop.f32.mrb[10].mxu1 }
 0x29b   : > { %v2960_v28 = vpop.f32.mrb[11].mxu1 }
 0x2ab   : > { %1225 = vrot.lane.b32.xlu1 %v3477_v55, %s3248_s10 }
 0x2ac   : > { %v1620_v29 = vpop.f32.mrb[12].mxu1 }
 0x2ad   : > { %v2983_v30 = vpop.f32.mrb[13].mxu1  ;;  %v1626_v31 = vsel %vm1117_vm2, %v1620_v29, -inf }
 0x2ae   : > { %1627 = vmax.xlane.f32.xlu0 %v1626_v31  ;;  %v1623_v32 = vpop.f32.mrb[14].mxu1 }
 0x2af   : > { %v2984_v33 = vpop.f32.mrb[15].mxu1 }
 0x2c0   : > { %v1825_v34 = vpop.f32.mrb[16].mxu1 }
 0x2c1   : > { %v3007_v35 = vpop.f32.mrb[17].mxu1  ;;  %v1831_v36 = vsel %vm1117_vm2, %v1825_v34, -inf }
 0x2c2   : > { %1832 = vmax.xlane.f32.xlu0 %v1831_v36  ;;  %v1828_v37 = vpop.f32.mrb[18].mxu1 }
 0x2c3   : > { %v3008_v38 = vpop.f32.mrb[19].mxu1 }
 0x2d8   : > { %1274 = vrot.lane.b32.xlu0 %v3473_v53, %s3248_s10  ;;  %s3761_s10 = sld [smem:[#allocation9_spill]] }
 0x313   : > { %v1215_v39 = vpop.xlane.xlu0 %1214 }
 0x314   : > { %v1216_v40 = vsub.f32 %v1207_v17, %v1215_v39 }
 0x316   : > { %v1217_v41 = vmul.f32 1.442695, %v1216_v40 }
 0x318   : > { %3174 = vpow2.f32 %v1217_v41 }
 0x322   : > { %v3175_v42 = vpop.eup %3174 }
 0x323   : > { %v1219_v43 = vsel %vm1117_vm2, %v3175_v42, 0.0 }
 0x324   : > { %1220 = vadd.xlane.f32.xlu1 %v1219_v43  ;;  %v1969_v43 = vld [vmem:[%s3303_s8 + $0x8] sm:$0xff] }
 0x327   : > { %v1423_v44 = vpop.xlane.xlu1 %1422 }
 0x328   : > { %v1424_v45 = vsub.f32 %v1415_v22, %v1423_v44 }
 0x32a   : > { %v1425_v46 = vmul.f32 1.442695, %v1424_v45 }
 0x32b   : > { %v1226_v47 = vpop.permute.xlu1 %1225 }
 0x32c   : > { %3176 = vpow2.f32 %v1425_v46  ;;  %v1232_v48 = vsel %vm1230_vm3, %v1226_v47, 0 }
 0x32d   : > { %2938 = vmatpush3.bf16.msra.mxu0 %v1232_v48 }
 0x32e   : > { %2943 = vmatprep.subr.bf16.mxu0 %v3239_v3 }
 0x335   : > { %1433 = vrot.lane.b32.xlu1 %v3477_v55, %s3249_s0 }
 0x336   : > { %v3177_v49 = vpop.eup %3176 }
 0x337   : > { %v1427_v50 = vsel %vm1117_vm2, %v3177_v49, 0.0 }
 0x338   : > { %1428 = vadd.xlane.f32.xlu0 %v1427_v50 }
 0x33b   : > { %v1628_v51 = vpop.xlane.xlu0 %1627 }
 0x33c   : > { %v1629_v52 = vsub.f32 %v1620_v29, %v1628_v51 }
 0x33e   : > { %v1630_v54 = vmul.f32 1.442695, %v1629_v52 }
 0x340   : > { %3178 = vpow2.f32 %v1630_v54  ;;  %v1970_v54 = vld [vmem:[%s3303_s8 + $0x10] sm:$0xff] }
 0x34a   : > { %v3179_v56 = vpop.eup %3178 }
 0x34b   : > { %v1632_v57 = vsel %vm1117_vm2, %v3179_v56, 0.0 }
 0x34c   : > { %1633 = vadd.xlane.f32.xlu0 %v1632_v57 }
 0x34f   : > { %v1833_v58 = vpop.xlane.xlu0 %1832 }
 0x350   : > { %v1834_v59 = vsub.f32 %v1825_v34, %v1833_v58 }
 0x352   : > { %v1835_v60 = vmul.f32 1.442695, %v1834_v59 }
 0x353   : > { %v1275_v2 = vpop.permute.xlu0 %1274 }
 0x354   : > { %3180 = vpow2.f32 %v1835_v60  ;;  %v1277_v5 = vsel %vm1230_vm3, %v1275_v2, 0  ;;  %v1972_v60 = vld [vmem:[%s3308_s14] sm:$0xff] }
 0x35e   : > { %v3537_v61 = vpop.eup %3180 }
 0x35f   : > { %v1837_v62 = vsel %vm1117_vm2, %v3537_v61, 0.0 }
 0x360   : > { %1838 = vadd.xlane.f32.xlu1 %v1837_v62 }
 0x362   : > { %1481 = vrot.lane.b32.xlu0 %v3473_v53, %s3249_s0  ;;  %s3762_s0 = sld [smem:[#allocation8_spill]] }
 0x366   : > { %1638 = vrot.lane.b32.xlu0 %v3477_v55, %s3250_s15 }
 0x36a   : > { %1686 = vrot.lane.b32.xlu0 %v3473_v53, %s3250_s15  ;;  %s3763_s15 = sld [smem:[#allocation6_spill]] }
 0x36e   : > { %1843 = vrot.lane.b32.xlu0 %v3477_v55, %s3251_s16 }
 0x372   : > { %1891 = vrot.lane.b32.xlu0 %v3473_v53, %s3251_s16  ;;  %s3764_s16 = sld [smem:[#allocation7_spill]] }
 0x3b1   : > { %v1221_v63 = vpop.xlane.xlu1 %1220 }
 0x3b2   : > { %3182 = vrcp.f32 %v1221_v63 }
 0x3b5   : > { %v1434_v55 = vpop.permute.xlu1 %1433 }
 0x3b6   : > { %v1439_v53 = vsel %vm1230_vm3, %v1434_v55, 0 }
 0x3bc   : > { %v3183_v0 = vpop.eup %3182 }
 0x3bd   : > { %v1223_v1 = vmul.f32 %v3183_v0, %v3175_v42  ;;  %v1968_v42 = vld [vmem:[%s3303_s8] sm:$0xff] }
 0x3be   : > { %v1980_v44 = vpack.c.bf16 %v1969_v43, %v1968_v42  ;;  %v1984_v0 = vadd.f32 %v1972_v60, %v1968_v42 }
 0x3bf   : > { %v1224_v4 = vpack.c.bf16 %v1223_v1, %v1223_v1 }
 0x3c0   : > { %3022 = vmatpush3.bf16.msra.mxu1 %v1980_v44 }
 0x3c1   : > { %2940 = vmatmul.mubr.msk.bf16.vlgmr.msra.gmra.mrb[8].mxu0 %vm1117_vm2, %v1224_v4  ;;  %3023 = vmatprep.subr.bf16.mxu1 %v3239_v3 }
 0x3c2   : > { %2944 = vmatpush3.bf16.msra.mxu0 %v1277_v5  ;;  %2945 = vmatprep.mubr.msk.bf16.mxu0 %vm3240_vm0, %v3239_v3  ;;  %v1974_v5 = vld [vmem:[%s3308_s14 + $0x10] sm:$0xff] }
 0x3c3   : > { %2961 = vmatprep.subr.bf16.mxu0 %v3239_v3 }
 0x3c5   : > { %v1429_v6 = vpop.xlane.xlu0 %1428 }
 0x3c6   : > { %3184 = vrcp.f32 %v1429_v6  ;;  %v1975_v6 = vld [vmem:[%s3308_s14 + $0x18] sm:$0xff] }
 0x3c7   : > { %v1983_v55 = vpack.c.bf16 %v1975_v6, %v1974_v5 }
 0x3c9   : > { %2946 = vmatmul.mubr.msk.bf16.vlgmr.msra.gmra.mrb[12].mxu0 %vm1117_vm2, %v1224_v4 }
 0x3ca   : > { %2962 = vmatpush3.bf16.msra.mxu0 %v1439_v53  ;;  %2963 = vmatprep.mubr.msk.bf16.mxu0 %vm3240_vm0, %v3239_v3  ;;  %v1986_v53 = vadd.f32 %v1974_v5, %v1970_v54  ;;  %v2199_v5 = vld [vmem:[%s3343_s27] sm:$0xff] }
 0x3cb   : > { %2967 = vmatprep.subr.bf16.mxu0 %v3239_v3 }
 0x3d0   : > { %v3185_v7 = vpop.eup %3184 }
 0x3d1   : > { %v1431_v8 = vmul.f32 %v3185_v7, %v3177_v49 }
 0x3d3   : > { %v1432_v9 = vpack.c.bf16 %v1431_v8, %v1431_v8 }
 0x3d5   : > { %2964 = vmatmul.mubr.msk.bf16.vlgmr.msra.gmra.mrb[16].mxu0 %vm1117_vm2, %v1432_v9 }
 0x3d6   : > { %2969 = vmatprep.mubr.msk.bf16.mxu0 %vm3240_vm0, %v3239_v3 }
 0x3d9   : > { %v1634_v10 = vpop.xlane.xlu0 %1633 }
 0x3da   : > { %3186 = vrcp.f32 %v1634_v10 }
 0x3dd   : > { %v1482_v11 = vpop.permute.xlu0 %1481 }
 0x3de   : > { %v1484_v12 = vsel %vm1230_vm3, %v1482_v11, 0 }
 0x3df   : > { %2968 = vmatpush3.bf16.msra.mxu0 %v1484_v12 }
 0x3e0   : > { %2985 = vmatprep.subr.bf16.mxu0 %v3239_v3 }
 0x3e1   : > { %v1639_v13 = vpop.permute.xlu0 %1638 }
 0x3e2   : > { %v1644_v14 = vsel %vm1230_vm3, %v1639_v13, 0  ;;  %2970 = vmatmul.mubr.msk.bf16.vlgmr.msra.gmra.mrb[20].mxu0 %vm1117_vm2, %v1432_v9 }
 0x3e3   : > { %2986 = vmatpush3.bf16.msra.mxu0 %v1644_v14  ;;  %2987 = vmatprep.mubr.msk.bf16.mxu0 %vm3240_vm0, %v3239_v3 }
 0x3e4   : > { %v3187_v15 = vpop.eup %3186  ;;  %2991 = vmatprep.subr.bf16.mxu0 %v3239_v3 }
 0x3e5   : > { %v1636_v16 = vmul.f32 %v3187_v15, %v3179_v56  ;;  %v1687_v17 = vpop.permute.xlu0 %1686  ;;  %v1971_v56 = vld [vmem:[%s3303_s8 + $0x18] sm:$0xff] }
 0x3e6   : > { %v1689_v19 = vsel %vm1230_vm3, %v1687_v17, 0  ;;  %v1981_v57 = vpack.c.bf16 %v1971_v56, %v1970_v54  ;;  %v1987_v7 = vadd.f32 %v1975_v6, %v1971_v56  ;;  %v2200_v6 = vld [vmem:[%s3343_s27 + $0x8] sm:$0xff] }
 0x3e7   : > { %v1637_v18 = vpack.c.bf16 %v1636_v16, %v1636_v16 }
 0x3e8   : > { %3024 = vmatpush3.bf16.msra.mxu1 %v1981_v57  ;;  %v1989_v8 = vpack.c.bf16 %v1987_v7, %v1986_v53  ;;  %v2201_v53 = vld [vmem:[%s3343_s27 + $0x10] sm:$0xff]  ;;  %v2202_v7 = vld [vmem:[%s3343_s27 + $0x18] sm:$0xff] }
 0x3e9   : > { %v1844_v21 = vpop.permute.xlu0 %1843  ;;  %3037 = vmatprep.subr.bf16.mxu1 %v3239_v3 }
 0x3ea   : > { %2988 = vmatmul.mubr.msk.bf16.vlgmr.msra.gmra.mrb[24].mxu0 %vm1117_vm2, %v1637_v18  ;;  %v1849_v22 = vsel %vm1230_vm3, %v1844_v21, 0 }
 0x3eb   : > { %2992 = vmatpush3.bf16.msra.mxu0 %v1689_v19  ;;  %2993 = vmatprep.mubr.msk.bf16.mxu0 %vm3240_vm0, %v3239_v3 }
 0x3ec   : > { %3009 = vmatprep.subr.bf16.mxu0 %v3239_v3 }
 0x3ed   : > { %v1839_v20 = vpop.xlane.xlu1 %1838  ;;  %v1892_v27 = vpop.permute.xlu0 %1891 }
 0x3ee   : > { %3188 = vrcp.f32 %v1839_v20  ;;  %v1894_v29 = vsel %vm1230_vm3, %v1892_v27, 0 }
 0x3f2   : > { %2994 = vmatmul.mubr.msk.bf16.vlgmr.msra.gmra.mrb[28].mxu0 %vm1117_vm2, %v1637_v18 }
 0x3f3   : > { %3010 = vmatpush3.bf16.msra.mxu0 %v1849_v22  ;;  %3011 = vmatprep.mubr.msk.bf16.mxu0 %vm3240_vm0, %v3239_v3 }
 0x3f4   : > { %3015 = vmatprep.subr.bf16.mxu0 %v3239_v3 }
 0x3f8   : > { %v3189_v25 = vpop.eup %3188 }
 0x3f9   : > { %v1841_v26 = vmul.f32 %v3189_v25, %v3537_v61  ;;  %v1973_v61 = vld [vmem:[%s3308_s14 + $0x8] sm:$0xff] }
 0x3fa   : > { %v1982_v63 = vpack.c.bf16 %v1973_v61, %v1972_v60  ;;  %v1985_v1 = vadd.f32 %v1973_v61, %v1969_v43 }
 0x3fb   : > { %v1842_v28 = vpack.c.bf16 %v1841_v26, %v1841_v26 }
 0x3fc   : > { %v1988_v4 = vpack.c.bf16 %v1985_v1, %v1984_v0 }
 0x3fd   : > { %3012 = vmatmul.mubr.msk.bf16.vlgmr.msra.gmra.mrb[32].mxu0 %vm1117_vm2, %v1842_v28 }
 0x3fe   : > { %3016 = vmatpush3.bf16.msra.mxu0 %v1894_v29  ;;  %3017 = vmatprep.mubr.msk.bf16.mxu0 %vm3240_vm0, %v3239_v3 }
 0x3ff   : > { %3029 = vmatprep.subr.bf16.mxu0 %v3239_v3 }
 0x405   : > { %3018 = vmatmul.mubr.msk.bf16.vlgmr.msra.gmra.mrb[36].mxu0 %vm1117_vm2, %v1842_v28 }
 0x406   : > { %3033 = vmatprep.mubr.msk.bf16.mxu0 %vm3240_vm0, %v3239_v3  ;;  %3030 = vmatpush3.bf16.msra.mxu0 %v1982_v63 }
 0x407   : > { %3031 = vmatprep.subr.bf16.mxu0 %v3239_v3 }
 0x40a   : > { %3032 = vmatpush3.bf16.msra.mxu0 %v1983_v55  ;;  %v2211_v55 = vpack.c.bf16 %v2200_v6, %v2199_v5 }
 0x40b   : > { %3045 = vmatprep.subr.bf16.mxu0 %v3239_v3 }
 0x494   : > { %v3585_v30 = vpop.f32.mrb[8].mxu0 }
 0x495   : > { %v2941_v31 = vpop.f32.mrb[9].mxu0 }
 0x496   : > { %v1271_v32 = vpop.f32.mrb[10].mxu0 }
 0x497   : > { %v2942_v33 = vpop.f32.mrb[11].mxu0 }
 0x49c   : > { %v3587_v34 = vpop.f32.mrb[12].mxu0 }
 0x49d   : > { %v2947_v35 = vpop.f32.mrb[13].mxu0 }
 0x49e   : > { %v1316_v36 = vpop.f32.mrb[14].mxu0 }
 0x49f   : > { %v2948_v37 = vpop.f32.mrb[15].mxu0 }
 0x4a8   : > { %v1475_v38 = vpop.f32.mrb[16].mxu0 }
 0x4a9   : > { %1937 = vrot.lane.b32.xlu0 %v1475_v38, %s3252_s18  ;;  %v2965_v39 = vpop.f32.mrb[17].mxu0 }
 0x4aa   : > { %v1478_v40 = vpop.f32.mrb[18].mxu0 }
 0x4ab   : > { %v2966_v41 = vpop.f32.mrb[19].mxu0  ;;  %v2805_v40 = vld [vmem:[%s3313_s19] ss:$0 sm:$0xff] }
 0x4b5   : > { %v1520_v45 = vpop.f32.mrb[20].mxu0 }
 0x4b6   : > { %1954 = vrot.lane.b32.xlu1 %v1520_v45, %s3252_s18  ;;  %v2971_v46 = vpop.f32.mrb[21].mxu0  ;;  %s3765_s18 = sld [smem:[#allocation10_spill]] }
 0x4b7   : > { %v1523_v47 = vpop.f32.mrb[22].mxu0 }
 0x4b8   : > { %v2972_v48 = vpop.f32.mrb[23].mxu0 }
 0x4bd   : > { %v1680_v49 = vpop.f32.mrb[24].mxu0 }
 0x4be   : > { %1941 = vrot.lane.b32.xlu0 %v1680_v49, %s3253_s22  ;;  %v2989_v50 = vpop.f32.mrb[25].mxu0 }
 0x4bf   : > { %v1683_v51 = vpop.f32.mrb[26].mxu0  ;;  %v2806_v50 = vld [vmem:[%s3318_s24] ss:$0 sm:$0xff] }
 0x4c0   : > { %v2990_v52 = vpop.f32.mrb[27].mxu0 }
 0x4c5   : > { %v1725_v58 = vpop.f32.mrb[28].mxu0 }
 0x4c6   : > { %v2995_v59 = vpop.f32.mrb[29].mxu0 }
 0x4c7   : > { %v1728_v62 = vpop.f32.mrb[30].mxu0 }
 0x4c8   : > { %v2996_v2 = vpop.f32.mrb[31].mxu0 }
 0x4d0   : > { %v1885_v9 = vpop.f32.mrb[32].mxu0 }
 0x4d1   : > { %1945 = vrot.lane.b32.xlu0 %v1885_v9, %s3254_s23  ;;  %v3013_v10 = vpop.f32.mrb[33].mxu0  ;;  %v2212_v9 = vpack.c.bf16 %v2202_v7, %v2201_v53 }
 0x4d2   : > { %v1888_v11 = vpop.f32.mrb[34].mxu0  ;;  %v2204_v10 = vld [vmem:[%s3348_s4 + $0x8] sm:$0xff] }
 0x4d3   : > { %v3014_v12 = vpop.f32.mrb[35].mxu0 }
 0x4d5   : > { %1958 = vrot.lane.b32.xlu0 %v1725_v58, %s3253_s22  ;;  %s3766_s22 = sld [smem:[#allocation11_spill]] }
 0x4d8   : > { %v1930_v13 = vpop.f32.mrb[36].mxu0 }
 0x4d9   : > { %1962 = vrot.lane.b32.xlu0 %v1930_v13, %s3254_s23  ;;  %v3019_v14 = vpop.f32.mrb[37].mxu0  ;;  %v2216_v13 = vadd.f32 %v2204_v10, %v2200_v6  ;;  %s3767_s23 = sld [smem:[#allocation12_spill]] }
 0x4da   : > { %v1933_v15 = vpop.f32.mrb[38].mxu0  ;;  %v2205_v14 = vld [vmem:[%s3348_s4 + $0x10] sm:$0xff] }
 0x4db   : > { %v3020_v16 = vpop.f32.mrb[39].mxu0  ;;  %v2206_v15 = vld [vmem:[%s3348_s4 + $0x18] sm:$0xff] }
 0x4dc   : > { %v2214_v16 = vpack.c.bf16 %v2206_v15, %v2205_v14 }
 0x51b   : > { %v1938_v17 = vpop.permute.xlu0 %1937 }
 0x51c   : > { %v1948_v19 = vsel %vm1117_vm2, %v3585_v30, %v1938_v17 }
 0x528   : > { %v1955_v26 = vpop.permute.xlu1 %1954 }
 0x529   : > { %v1965_v28 = vsel %vm1117_vm2, %v3587_v34, %v1955_v26 }
 0x530   : > { %v1942_v18 = vpop.permute.xlu0 %1941 }
 0x531   : > { %v1950_v20 = vsel %vm1949_vm4, %v1948_v19, %v1942_v18  ;;  %v2217_v18 = vadd.f32 %v2205_v14, %v2201_v53  ;;  %v2218_v19 = vadd.f32 %v2206_v15, %v2202_v7 }
 0x543   : > { %v1946_v21 = vpop.permute.xlu0 %1945 }
 0x544   : > { %v1952_v22 = vsel %vm1951_vm5, %v1950_v20, %v1946_v21  ;;  %v2220_v20 = vpack.c.bf16 %v2218_v19, %v2217_v18 }
 0x545   : > { %v1976_v25 = vpack.c.bf16 %v1952_v22, %v1952_v22 }
 0x547   : > { %3026 = vmatmul.mubr.msk.bf16.vlgmr.msra.gmra.mrb[20].mxu1 %vm959_vm1, %v1976_v25  ;;  %v1959_v27 = vpop.permute.xlu0 %1958 }
 0x548   : > { %3038 = vmatpush3.bf16.msra.mxu1 %v1988_v4  ;;  %3041 = vmatprep.mubr.msk.bf16.mxu1 %vm3240_vm0, %v3239_v3  ;;  %v1966_v29 = vsel %vm1949_vm4, %v1965_v28, %v1959_v27 }
 0x549   : > { %3039 = vmatprep.subr.bf16.mxu1 %v3239_v3 }
 0x54b   : > { %v1963_v31 = vpop.permute.xlu0 %1962 }
 0x54c   : > { %v1967_v30 = vsel %vm1951_vm5, %v1966_v29, %v1963_v31  ;;  %3040 = vmatpush3.bf16.msra.mxu1 %v1989_v8  ;;  %v2203_v8 = vld [vmem:[%s3348_s4] sm:$0xff] }
 0x54d   : > { %v1977_v32 = vpack.c.bf16 %v1967_v30, %v1967_v30  ;;  %v1978_v33 = vadd.f32 %v1967_v30, %v1952_v22  ;;  %3053 = vmatprep.subr.bf16.mxu1 %v3239_v3  ;;  %v2213_v11 = vpack.c.bf16 %v2204_v10, %v2203_v8  ;;  %v2215_v12 = vadd.f32 %v2203_v8, %v2199_v5  ;;  %v2807_v31 = vld [vmem:[%s3757_s26] ss:$0 sm:$0xff]  ;;  %s3768_s26 = sld [smem:[#allocation13_spill]] }
 0x54f   : > { %v1979_v35 = vpack.c.bf16 %v1978_v33, %v1978_v33  ;;  %3034 = vmatmul.mubr.msk.bf16.vlgmr.msra.gmra.mrb[40].mxu0 %vm959_vm1, %v1977_v32  ;;  %v2219_v17 = vpack.c.bf16 %v2216_v13, %v2215_v12  ;;  %v2808_v32 = vld [vmem:[%s3758_s28] ss:$0 sm:$0xff]  ;;  %s921_s28 = scalar_lea.vmem %s3403_s6, %s3439_s11 }
 0x550   : > { %3049 = vmatprep.mubr.msk.bf16.mxu0 %vm3240_vm0, %v3239_v3  ;;  %3046 = vmatpush3.bf16.msra.mxu0 %v2211_v55 }
 0x551   : > { %3042 = vmatmul.mubr.msk.bf16.vlgmr.msra.gmra.mrb[24].mxu1 %vm959_vm1, %v1979_v35  ;;  %3047 = vmatprep.subr.bf16.mxu0 %v3239_v3 }
 0x552   : > { %3057 = vmatprep.mubr.msk.bf16.mxu1 %vm3240_vm0, %v3239_v3  ;;  %3054 = vmatpush3.bf16.msra.mxu1 %v2213_v11 }
 0x553   : > { %3055 = vmatprep.subr.bf16.mxu1 %v3239_v3 }
 0x554   : > { %3048 = vmatpush3.bf16.msra.mxu0 %v2212_v9 }
 0x555   : > { %3061 = vmatprep.subr.bf16.mxu0 %v3239_v3 }
 0x556   : > { %3056 = vmatpush3.bf16.msra.mxu1 %v2214_v16 }
 0x557   : > { %3069 = vmatprep.subr.bf16.mxu1 %v3239_v3 }
 0x61a   : > { %v2027_v34 = vpop.f32.mrb[20].mxu1 }
 0x61b   : > { %v3027_v36 = vpop.f32.mrb[21].mxu1 }
 0x61c   : > { %v2030_v37 = vpop.f32.mrb[22].mxu1 }
 0x61d   : > { %v3028_v38 = vpop.f32.mrb[23].mxu1 }
 0x61e   : > { %v2810_v38 = vld [vmem:[%s3760_s2] ss:$0 sm:$0xff] }
 0x622   : > { %v2070_v39 = vpop.f32.mrb[40].mxu0 }
 0x623   : > { %v2119_v41 = vsub.f32 %v2027_v34, %v2070_v39  ;;  %v3035_v42 = vpop.f32.mrb[41].mxu0 }
 0x624   : > { %v2073_v43 = vpop.f32.mrb[42].mxu0  ;;  %v2113_v44 = vpop.f32.mrb[24].mxu1 }
 0x625   : > { %v2129_v45 = vadd.f32 %v2805_v40, %v2119_v41  ;;  %v2120_v46 = vsub.f32 %v2113_v44, %v2027_v34  ;;  %v3036_v47 = vpop.f32.mrb[43].mxu0  ;;  %v3043_v48 = vpop.f32.mrb[25].mxu1  ;;  %v2809_v34 = vld [vmem:[%s3759_s1] ss:$0 sm:$0xff]  ;;  %s925_s1 = scalar_lea.vmem %s3408_s30, %s3439_s11 }
 0x626   : > { %v2116_v49 = vpop.f32.mrb[26].mxu1  ;;  %v2406_v48 = vld [vmem:[%s3761_s10 + $0x10] sm:$0xff] }
 0x627   : > { %v2121_v51 = vsub.f32 %v2120_v46, %v2070_v39  ;;  %v3044_v52 = vpop.f32.mrb[27].mxu1  ;;  %v2138_v54 = vadd.f32 %v2129_v45, %v3449_v23  ;;  %v2404_v45 = vld [vmem:[%s3761_s10] sm:$0xff]  ;;  %v2405_v46 = vld [vmem:[%s3761_s10 + $0x8] sm:$0xff]  ;;  %v2407_v49 = vld [vmem:[%s3761_s10 + $0x18] sm:$0xff] }
 0x628   : > { %v2420_v47 = vpack.c.bf16 %v2405_v46, %v2404_v45  ;;  %v2409_v52 = vld [vmem:[%s3761_s10 + $0x28] sm:$0xff] }
 0x629   : > { %v2141_v56 = vsel %vm959_vm1, %v2138_v54, 0.0  ;;  %v2137_v57 = vadd.f32 %v2806_v50, %v2121_v51  ;;  %v2421_v50 = vpack.c.bf16 %v2407_v49, %v2406_v48  ;;  %v2408_v51 = vld [vmem:[%s3761_s10 + $0x20] sm:$0xff] }
 0x62a   : > { %2142 = vadd.xlane.f32.xlu0 %v2141_v56  ;;  %v2410_v56 = vld [vmem:[%s3761_s10 + $0x30] sm:$0xff] }
 0x62b   : > { %v2169_v58 = vadd.f32 %v2137_v57, %v3451_v24  ;;  %v2411_v57 = vld [vmem:[%s3761_s10 + $0x38] sm:$0xff] }
 0x62d   : > { %v2172_v59 = vsel %vm959_vm1, %v2169_v58, 0.0 }
 0x62e   : > { %2173 = vadd.xlane.f32.xlu1 %v2172_v59  ;;  %v2396_v59 = vld [vmem:[%s3762_s0] sm:$0xff] }
 0x62f   : > { %v3685_v6 = vadd.f32 %v2404_v45, %v2396_v59 }
 0x6b7   : > { %v2143_v60 = vpop.xlane.xlu0 %2142 }
 0x6b8   : > { %v2145_v61 = vmul.f32 0.03125, %v2143_v60  ;;  %v2397_v60 = vld [vmem:[%s3762_s0 + $0x8] sm:$0xff] }
 0x6b9   : > { %v3687_v55 = vadd.f32 %v2405_v46, %v2397_v60 }
 0x6ba   : > { %v2146_v62 = vsub.f32 %v2138_v54, %v2145_v61  ;;  %v2422_v54 = vpack.c.bf16 %v2409_v52, %v2408_v51  ;;  %v2416_v61 = vpack.c.bf16 %v2397_v60, %v2396_v59 }
 0x6bb   : > { %v2174_v63 = vpop.xlane.xlu1 %2173  ;;  %v2432_v53 = vpack.c.bf16 %v3687_v55, %v3685_v6 }
 0x6bc   : > { %v2175_v0 = vmul.f32 0.03125, %v2174_v63  ;;  %v2147_v23 = vmul.f32 %v2146_v62, %v2146_v62  ;;  %v2399_v63 = vld [vmem:[%s3762_s0 + $0x18] sm:$0xff] }
 0x6bd   : > { %v3694_v8 = vadd.f32 %v2407_v49, %v2399_v63 }
 0x6be   : > { %v2176_v1 = vsub.f32 %v2169_v58, %v2175_v0  ;;  %v2148_v2 = vsel %vm959_vm1, %v2147_v23, 0.0  ;;  %v2423_v58 = vpack.c.bf16 %v2411_v57, %v2410_v56  ;;  %v2400_v23 = vld [vmem:[%s3762_s0 + $0x20] sm:$0xff] }
 0x6bf   : > { %2149 = vadd.xlane.f32.xlu0 %v2148_v2  ;;  %v3698_v10 = vadd.f32 %v2408_v51, %v2400_v23 }
 0x6c0   : > { %v2177_v4 = vmul.f32 %v2176_v1, %v2176_v1 }
 0x6c2   : > { %v2178_v24 = vsel %vm959_vm1, %v2177_v4, 0.0  ;;  %v2402_v4 = vld [vmem:[%s3762_s0 + $0x30] sm:$0xff] }
 0x6c3   : > { %2179 = vadd.xlane.f32.xlu0 %v2178_v24  ;;  %v2403_v24 = vld [vmem:[%s3762_s0 + $0x38] sm:$0xff]  ;;  %v3704_v13 = vadd.f32 %v2410_v56, %v2402_v4 }
 0x6c4   : > { %v2419_v5 = vpack.c.bf16 %v2403_v24, %v2402_v4  ;;  %v2431_v14 = vadd.f32 %v2411_v57, %v2403_v24 }
 0x6c6   : > { %v2435_v15 = vpack.c.bf16 %v2431_v14, %v3704_v13 }
 0x74c   : > { %v2150_v21 = vpop.xlane.xlu0 %2149 }
 0x74d   : > { %v2151_v22 = vmul.f32 0.03125, %v2150_v21  ;;  %v2814_v21 = vld [vmem:[%s3763_s15] ss:$0 sm:$0xff] }
 0x74f   : > { %v2152_v25 = vadd.f32 1e-05, %v2151_v22 }
 0x750   : > { %v2180_v26 = vpop.xlane.xlu0 %2179 }
 0x751   : > { %3190 = vrsqrt.f32 %v2152_v25  ;;  %v2181_v27 = vmul.f32 0.03125, %v2180_v26 }
 0x753   : > { %v2182_v28 = vadd.f32 1e-05, %v2181_v27 }
 0x755   : > { %3192 = vrsqrt.f32 %v2182_v28 }
 0x75b   : > { %v3191_v29 = vpop.eup %3190 }
 0x75c   : > { %v2154_v30 = vmul.f32 %v3191_v29, %v2146_v62  ;;  %v2398_v62 = vld [vmem:[%s3762_s0 + $0x10] sm:$0xff] }
 0x75d   : > { %v2417_v0 = vpack.c.bf16 %v2399_v63, %v2398_v62  ;;  %v3692_v7 = vadd.f32 %v2406_v48, %v2398_v62 }
 0x75e   : > { %v2161_v33 = vmul.f32 %v2807_v31, %v2154_v30 }
 0x75f   : > { %v3193_v35 = vpop.eup %3192  ;;  %v2433_v9 = vpack.c.bf16 %v3694_v8, %v3692_v7  ;;  %v2819_v8 = vld [vmem:[%s3765_s18] ss:$0 sm:$0xff] }
 0x760   : > { %v2184_v36 = vmul.f32 %v3193_v35, %v2176_v1  ;;  %v3641_v37 = vadd.f32 %v2808_v32, %v2161_v33  ;;  %v2401_v1 = vld [vmem:[%s3762_s0 + $0x28] sm:$0xff]  ;;  %v2815_v33 = vld [vmem:[%s3764_s16] ss:$0 sm:$0xff] }
 0x761   : > { %v2418_v2 = vpack.c.bf16 %v2401_v1, %v2400_v23  ;;  %v3700_v11 = vadd.f32 %v2409_v52, %v2401_v1 }
 0x762   : > { %v2191_v39 = vmul.f32 %v2809_v34, %v2184_v36  ;;  %v2207_v40 = vpack.c.bf16 %v3641_v37, %v3641_v37 }
 0x763   : > { %v2434_v12 = vpack.c.bf16 %v3700_v11, %v3698_v10 }
 0x764   : > { %3050 = vmatmul.mubr.msk.bf16.vlgmr.msra.gmra.mrb[44].mxu0 %vm959_vm1, %v2207_v40  ;;  %v3647_v41 = vadd.f32 %v2810_v38, %v2191_v39 }
 0x765   : > { %3062 = vmatpush3.bf16.msra.mxu0 %v2219_v17  ;;  %3065 = vmatprep.mubr.msk.bf16.mxu0 %vm3240_vm0, %v3239_v3 }
 0x766   : > { %v2208_v42 = vpack.c.bf16 %v3647_v41, %v3647_v41  ;;  %3063 = vmatprep.subr.bf16.mxu0 %v3239_v3  ;;  %v2209_v43 = vadd.f32 %v3647_v41, %v3641_v37 }
 0x768   : > { %3058 = vmatmul.mubr.msk.bf16.vlgmr.msra.gmra.mrb[28].mxu1 %vm959_vm1, %v2208_v42  ;;  %v2210_v44 = vpack.c.bf16 %v2209_v43, %v2209_v43 }
 0x769   : > { %3064 = vmatpush3.bf16.msra.mxu0 %v2220_v20  ;;  %3077 = vmatprep.mubr.msk.bf16.mxu1 %vm3240_vm0, %v3239_v3 }
 0x76a   : > { %3081 = vmatprep.subr.bf16.mxu0 %v3239_v3  ;;  %3070 = vmatpush3.bf16.msra.mxu1 %v2416_v61 }
 0x76b   : > { %3071 = vmatprep.subr.bf16.mxu1 %v3239_v3 }
 0x76c   : > { %3066 = vmatmul.mubr.msk.bf16.vlgmr.msra.gmra.mrb[48].mxu0 %vm959_vm1, %v2210_v44 }
 0x76d   : > { %3089 = vmatprep.mubr.msk.bf16.mxu0 %vm3240_vm0, %v3239_v3  ;;  %3082 = vmatpush3.bf16.msra.mxu0 %v2420_v47 }
 0x76e   : > { %3083 = vmatprep.subr.bf16.mxu0 %v3239_v3  ;;  %3072 = vmatpush3.bf16.msra.mxu1 %v2417_v0 }
 0x76f   : > { %3073 = vmatprep.subr.bf16.mxu1 %v3239_v3 }
 0x771   : > { %3084 = vmatpush3.bf16.msra.mxu0 %v2421_v50 }
 0x772   : > { %3085 = vmatprep.subr.bf16.mxu0 %v3239_v3  ;;  %3074 = vmatpush3.bf16.msra.mxu1 %v2418_v2 }
 0x773   : > { %3075 = vmatprep.subr.bf16.mxu1 %v3239_v3 }
 0x775   : > { %3086 = vmatpush3.bf16.msra.mxu0 %v2422_v54 }
 0x776   : > { %3087 = vmatprep.subr.bf16.mxu0 %v3239_v3  ;;  %3076 = vmatpush3.bf16.msra.mxu1 %v2419_v5 }
 0x777   : > { %3093 = vmatprep.subr.bf16.mxu1 %v3239_v3 }
 0x779   : > { %3088 = vmatpush3.bf16.msra.mxu0 %v2423_v58 }
 0x837   : > { %v2258_v16 = vpop.f32.mrb[44].mxu0 }
 0x838   : > { %v3051_v17 = vpop.f32.mrb[45].mxu0 }
 0x839   : > { %v2261_v18 = vpop.f32.mrb[46].mxu0 }
 0x83a   : > { %v3052_v19 = vpop.f32.mrb[47].mxu0 }
 0x83b   : > { %v2301_v20 = vpop.f32.mrb[28].mxu1  ;;  %v2820_v19 = vld [vmem:[%s3766_s22] ss:$0 sm:$0xff] }
 0x83c   : > { %v2350_v22 = vsub.f32 %v2258_v16, %v2301_v20  ;;  %v3059_v25 = vpop.f32.mrb[29].mxu1 }
 0x83d   : > { %v2304_v26 = vpop.f32.mrb[30].mxu1 }
 0x83e   : > { %v2360_v27 = vadd.f32 %v2814_v21, %v2350_v22  ;;  %v3060_v28 = vpop.f32.mrb[31].mxu1 }
 0x83f   : > { %v2344_v29 = vpop.f32.mrb[48].mxu0 }
 0x840   : > { %v2362_v31 = vmul.f32 0.70710677, %v2360_v27  ;;  %v2351_v30 = vsub.f32 %v2344_v29, %v2258_v16  ;;  %v3067_v32 = vpop.f32.mrb[49].mxu0  ;;  %v2361_v0 = vmul.f32 0.5, %v2360_v27 }
 0x841   : > { %v2347_v35 = vpop.f32.mrb[50].mxu0 }
 0x842   : > { %v2363_v34 = vand.u32 2147483647, %v2362_v31  ;;  %v2352_v36 = vsub.f32 %v2351_v30, %v2301_v20  ;;  %v3068_v38 = vpop.f32.mrb[51].mxu0  ;;  %vm2383_vm7 = vcmp.ge.f32.partialorder %v2362_v31, 0.0 }
 0x844   : > { %v2364_v39 = vmul.f32 0.3275911, %v2363_v34  ;;  %v2395_v40 = vadd.f32 %v2815_v33, %v2352_v36  ;;  %v2377_v44 = vsub.f32 0.0, %v2363_v34 }
 0x846   : > { %v2365_v42 = vadd.f32 1.0, %v2364_v39  ;;  %v2413_v43 = vpack.c.bf16 %v2395_v40, %v2395_v40  ;;  %v2378_v46 = vmul.f32 %v2377_v44, %v2363_v34 }
 0x848   : > { %3194 = vrcp.f32 %v2365_v42  ;;  %3090 = vmatmul.mubr.msk.bf16.vlgmr.msra.gmra.mrb[52].mxu0 %vm2436_vm6, %v2413_v43  ;;  %v2379_v49 = vmul.f32 1.442695, %v2378_v46  ;;  %v2822_v43 = vld [vmem:[%s3768_s26] ss:$0 sm:$0xff] }
 0x84a   : > { %3196 = vpow2.f32 %v2379_v49 }
 0x852   : > { %v3195_v45 = vpop.eup %3194 }
 0x853   : > { %v2368_v47 = vmul.f32 1.0614054, %v3195_v45 }
 0x854   : > { %v3197_v59 = vpop.eup %3196 }
 0x855   : > { %v2369_v48 = vadd.f32 -1.4531521, %v2368_v47 }
 0x857   : > { %v2370_v50 = vmul.f32 %v3195_v45, %v2369_v48 }
 0x859   : > { %v2371_v51 = vadd.f32 1.4214138, %v2370_v50  ;;  %v2823_v50 = vld [vmem:[%s3393_s12] ss:$0 sm:$0xff] }
 0x85b   : > { %v2372_v52 = vmul.f32 %v3195_v45, %v2371_v51 }
 0x85d   : > { %v2373_v54 = vadd.f32 -0.28449672, %v2372_v52  ;;  %v2824_v52 = vld [vmem:[%s3398_s20] ss:$0 sm:$0xff] }
 0x85f   : > { %v2374_v56 = vmul.f32 %v3195_v45, %v2373_v54 }
 0x861   : > { %v2375_v57 = vadd.f32 0.2548296, %v2374_v56 }
 0x863   : > { %v2376_v58 = vmul.f32 %v3195_v45, %v2375_v57 }
 0x865   : > { %v2381_v60 = vmul.f32 %v3197_v59, %v2376_v58 }
 0x867   : > { %v2382_v61 = vsub.f32 1.0, %v2381_v60 }
 0x869   : > { %v2384_v62 = vsub.f32 0.0, %v2382_v61 }
 0x86b   : > { %v2385_v63 = vsel %vm2383_vm7, %v2382_v61, %v2384_v62 }
 0x86c   : > { %v2386_v23 = vadd.f32 1.0, %v2385_v63 }
 0x86e   : > { %v2387_v1 = vmul.f32 %v2386_v23, %v2361_v0 }
 0x870   : > { %v2412_v2 = vpack.c.bf16 %v2387_v1, %v2387_v1  ;;  %v2414_v4 = vadd.f32 %v2395_v40, %v2387_v1  ;;  %v2821_v40 = vld [vmem:[%s3767_s23] ss:$0 sm:$0xff] }
 0x872   : > { %3078 = vmatmul.mubr.msk.bf16.vlgmr.msra.gmra.mrb[32].mxu1 %vm2436_vm6, %v2412_v2  ;;  %v2415_v24 = vpack.c.bf16 %v2414_v4, %v2414_v4 }
 0x873   : > { %3094 = vmatpush3.bf16.msra.mxu1 %v2432_v53  ;;  %3101 = vmatprep.mubr.msk.bf16.mxu1 %vm3240_vm0, %v3239_v3 }
 0x874   : > { %3095 = vmatprep.subr.bf16.mxu1 %v3239_v3 }
 0x877   : > { %3096 = vmatpush3.bf16.msra.mxu1 %v2433_v9 }
 0x878   : > { %3097 = vmatprep.subr.bf16.mxu1 %v3239_v3 }
 0x87b   : > { %3098 = vmatpush3.bf16.msra.mxu1 %v2434_v12 }
 0x87c   : > { %3099 = vmatprep.subr.bf16.mxu1 %v3239_v3 }
 0x87f   : > { %3100 = vmatpush3.bf16.msra.mxu1 %v2435_v15 }
 0x882   : > { %3102 = vmatmul.mubr.msk.bf16.vlgmr.msra.gmra.mrb[36].mxu1 %vm2436_vm6, %v2415_v24 }
 0x91b   : > { %v2517_v5 = vpop.f32.mrb[52].mxu0 }
 0x91c   : > { %v3091_v7 = vpop.f32.mrb[53].mxu0 }
 0x91d   : > { %v2520_v6 = vpop.f32.mrb[54].mxu0 }
 0x91e   : > { %v3092_v55 = vpop.f32.mrb[55].mxu0 }
 0x945   : > { %v2474_v53 = vpop.f32.mrb[32].mxu1 }
 0x946   : > { %v2566_v10 = vsub.f32 %v2474_v53, %v2517_v5  ;;  %v3079_v11 = vpop.f32.mrb[33].mxu1 }
 0x947   : > { %v2477_v13 = vpop.f32.mrb[34].mxu1 }
 0x948   : > { %v2576_v9 = vadd.f32 %v2819_v8, %v2566_v10  ;;  %v3080_v14 = vpop.f32.mrb[35].mxu1 }
 0x94a   : > { %v2585_v12 = vadd.f32 %v2576_v9, %v3641_v37 }
 0x94c   : > { %v2588_v3 = vsel %vm959_vm1, %v2585_v12, 0.0 }
 0x94d   : > { %2589 = vadd.xlane.f32.xlu0 %v2588_v3 }
 0x955   : > { %v2560_v15 = vpop.f32.mrb[36].mxu1 }
 0x956   : > { %v2567_v16 = vsub.f32 %v2560_v15, %v2474_v53  ;;  %v3103_v17 = vpop.f32.mrb[37].mxu1 }
 0x957   : > { %v2563_v18 = vpop.f32.mrb[38].mxu1 }
 0x958   : > { %v2568_v20 = vsub.f32 %v2567_v16, %v2517_v5  ;;  %v3104_v21 = vpop.f32.mrb[39].mxu1 }
 0x95a   : > { %v2584_v22 = vadd.f32 %v2820_v19, %v2568_v20 }
 0x95c   : > { %v2615_v25 = vadd.f32 %v2584_v22, %v3647_v41 }
 0x95e   : > { %v2618_v26 = vsel %vm959_vm1, %v2615_v25, 0.0 }
 0x95f   : > { %2619 = vadd.xlane.f32.xlu1 %v2618_v26 }
 0x9da   : > { %v2590_v27 = vpop.xlane.xlu0 %2589 }
 0x9db   : > { %v2591_v28 = vmul.f32 0.03125, %v2590_v27 }
 0x9dd   : > { %v2592_v37 = vsub.f32 %v2585_v12, %v2591_v28 }
 0x9df   : > { %v2593_v29 = vmul.f32 %v2592_v37, %v2592_v37 }
 0x9e1   : > { %v2594_v31 = vsel %vm959_vm1, %v2593_v29, 0.0 }
 0x9e2   : > { %2595 = vadd.xlane.f32.xlu0 %v2594_v31 }
 0x9ec   : > { %v2620_v30 = vpop.xlane.xlu1 %2619 }
 0x9ed   : > { %v2621_v32 = vmul.f32 0.03125, %v2620_v30 }
 0x9ef   : > { %v2622_v33 = vsub.f32 %v2615_v25, %v2621_v32 }
 0x9f1   : > { %v2623_v35 = vmul.f32 %v2622_v33, %v2622_v33 }
 0x9f3   : > { %v2624_v41 = vsel %vm959_vm1, %v2623_v35, 0.0 }
 0x9f4   : > { %2625 = vadd.xlane.f32.xlu1 %v2624_v41 }
 0xa6f   : > { %v2596_v34 = vpop.xlane.xlu0 %2595 }
 0xa70   : > { %v2597_v36 = vmul.f32 0.03125, %v2596_v34 }
 0xa72   : > { %v2598_v38 = vadd.f32 1e-05, %v2597_v36 }
 0xa74   : > { %3198 = vrsqrt.f32 %v2598_v38 }
 0xa7e   : > { %v3199_v39 = vpop.eup %3198 }
 0xa7f   : > { %v2600_v42 = vmul.f32 %v3199_v39, %v2592_v37 }
 0xa81   : > { %v2607_v44 = vmul.f32 %v2821_v40, %v2600_v42  ;;  %v2626_v45 = vpop.xlane.xlu1 %2625 }
 0xa82   : > { %v2627_v46 = vmul.f32 0.03125, %v2626_v45 }
 0xa83   : > { %v2614_v47 = vadd.f32 %v2822_v43, %v2607_v44 }
 0xa84   : > { %v2628_v48 = vadd.f32 1e-05, %v2627_v46 }
 0xa85   : > { %2645 = vst.msk [vmem:[%s921_s28] sm:$0xff] %vm959_vm1, %v2614_v47 }
 0xa86   : > { %3200 = vrsqrt.f32 %v2628_v48 }
 0xa90   : > { %v3201_v49 = vpop.eup %3200 }
 0xa91   : > { %v2630_v51 = vmul.f32 %v3201_v49, %v2622_v33 }
 0xa93   : > { %v2637_v54 = vmul.f32 %v2823_v50, %v2630_v51 }
 0xa95   : > { %v2644_v56 = vadd.f32 %v2824_v52, %v2637_v54 }
 0xa97   : > { %2646 = vst.msk [vmem:[%s925_s1] sm:$0xff] %vm959_vm1, %v2644_v56 }
 0xa98 PF: > { %s70_s7 = sadd.s32 1, %s3208_s7  }
 0xa99   : > { %p67_p4 = scmp.ge.s32.totalorder %s70_s7, 4  }
 0xa9b   :  { %69 = sbr.rel (!%p67_p4) target bundleno = 47 (0x2f), region = 206 }

</bundles_post_ra>
